<compile_context>
chip_gen: v5e
topology: v5e:2x2
jax: 0.10.0
libtpu: 0.0.40
codegen_flags: <defaults>
</compile_context>

<pallas_src>
import functools

import jax
import jax.numpy as jnp
from jax.experimental import pallas as pl
from jax.experimental.pallas import tpu as pltpu


def _mann_lstm_kernel(x_ref, wih1_ref, whh1_ref, b1_ref,
                      wih2_ref, whh2_ref, b2_ref, y_ref,
                      *, T, B, H1, H2):
    f32 = jnp.float32
    bf16 = jnp.bfloat16

    # ---- weights resident as values (loaded once) ---------------------------
    whh1 = whh1_ref[...]                # [H1, 4H1] bf16 : MXU, layer-1 recurrence
    wih2 = wih2_ref[...]                # [H1, 4H2] bf16 : MXU, layer-2 per-step input
    whh2 = whh2_ref[...]                # [H2, 4H2] f32  : VPU, layer-2 recurrence
    b2 = jnp.broadcast_to(b2_ref[...], (B, 4 * H2))     # hoisted broadcast

    # ---- hoisted gate-select masks: lanes [2H, 3H) are the tanh ('g') block -
    lane1 = jax.lax.broadcasted_iota(jnp.int32, (B, 4 * H1), 1)
    gmask1 = (lane1 >= 2 * H1) & (lane1 < 3 * H1)
    lane2 = jax.lax.broadcasted_iota(jnp.int32, (B, 4 * H2), 1)
    gmask2 = (lane2 >= 2 * H2) & (lane2 < 3 * H2)

    use_vpu_rec2 = H2 <= 16
    if use_vpu_rec2:
        # hoist the weight-row broadcasts out of the time loop
        whh2_rows = [jnp.broadcast_to(whh2[k:k + 1, :], (B, 4 * H2))
                     for k in range(H2)]
    else:
        whh2_bf = whh2.astype(bf16)

    def split_act(gates, gmask, H):
        # 2 full-tile EUP pushes (sigmoid + tanh) + lane-mask select,
        # instead of 4 sliced activations.
        sig = jax.nn.sigmoid(gates)
        th = jnp.tanh(gates)
        act = jnp.where(gmask, th, sig)
        return (act[:, 0:H], act[:, H:2 * H],
                act[:, 2 * H:3 * H], act[:, 3 * H:4 * H])

    def cell1(ih_t, h_prev_bf, c_prev, first):
        gates = ih_t if first else (
            ih_t + jnp.dot(h_prev_bf, whh1, preferred_element_type=f32))
        i_g, f_g, g_g, o_g = split_act(gates, gmask1, H1)
        c_new = i_g * g_g if first else f_g * c_prev + i_g * g_g
        return o_g * jnp.tanh(c_new), c_new

    def cell2(h1_bf, h_prev, c_prev, first):
        # input projection: small MXU dot on h1 from the *previous* iteration,
        # so it overlaps with layer-1's recurrent dot.
        gates = jnp.dot(h1_bf, wih2, preferred_element_type=f32) + b2
        if not first:
            if use_vpu_rec2:
                # 4-element contraction -> H2 VPU broadcast-FMAs, no MXU trip
                rec = h_prev[:, 0:1] * whh2_rows[0]
                for k in range(1, H2):
                    rec = rec + h_prev[:, k:k + 1] * whh2_rows[k]
                gates = gates + rec
            else:
                gates = gates + jnp.dot(h_prev.astype(bf16), whh2_bf,
                                        preferred_element_type=f32)
        i_g, f_g, g_g, o_g = split_act(gates, gmask2, H2)
        c_new = i_g * g_g if first else f_g * c_prev + i_g * g_g
        return o_g * jnp.tanh(c_new), c_new

    # ---- layer-1 input projection (+bias) for the whole sequence: one matmul
    ih1 = jnp.dot(x_ref[0], wih1_ref[...],
                  preferred_element_type=f32) + b1_ref[...]      # [T*B, 4*H1]

    # ---- interleaved (software-pipelined) recurrences -----------------------
    # unrolled step t: layer-1 cell t  and  layer-2 cell t-1 (independent chains
    # except for h1_{t-1}, which is already available at iteration start).
    h1, c1 = cell1(ih1[0:B, :], None, None, first=True)
    h2 = c2 = None
    for t in range(1, T):              # T is static & small -> full unroll
        h1_prev_bf = h1.astype(bf16)
        h1, c1 = cell1(ih1[t * B:(t + 1) * B, :], h1_prev_bf, c1, first=False)
        h2, c2 = cell2(h1_prev_bf, h2, c2, first=(t == 1))
        y_ref[0, t - 1, :, :] = h2     # t-indexed slab store, off the serial chain
    h2, c2 = cell2(h1.astype(bf16), h2, c2, first=(T == 1))
    y_ref[0, T - 1, :, :] = h2


def init_mann_params(key, num_classes, input_size, model_size):
    """Synthetic init matching MANN.__init__, in fused-gate layout:
    xavier-uniform W_ih [D, 4H], default-uniform(+/-1/sqrt(H)) W_hh [H, 4H],
    zero biases [1, 4H] (gate order i, f, g, o).
    NOTE: PyTorch nn.LSTM has two bias vectors (b_ih, b_hh); importing real
    weights requires b = b_ih + b_hh."""
    d1, h1, h2 = input_size + num_classes, model_size, num_classes
    k0, k1, k2, k3 = jax.random.split(key, 4)

    lim1 = (6.0 / (d1 + 4 * h1)) ** 0.5
    wih1 = jax.random.uniform(k0, (d1, 4 * h1), jnp.float32, -lim1, lim1)
    s1 = 1.0 / (h1 ** 0.5)
    whh1 = jax.random.uniform(k1, (h1, 4 * h1), jnp.float32, -s1, s1)
    b1 = jnp.zeros((1, 4 * h1), jnp.float32)

    lim2 = (6.0 / (h1 + 4 * h2)) ** 0.5
    wih2 = jax.random.uniform(k2, (h1, 4 * h2), jnp.float32, -lim2, lim2)
    s2 = 1.0 / (h2 ** 0.5)
    whh2 = jax.random.uniform(k3, (h2, 4 * h2), jnp.float32, -s2, s2)
    b2 = jnp.zeros((1, 4 * h2), jnp.float32)

    return dict(wih1=wih1, whh1=whh1, b1=b1, wih2=wih2, whh2=whh2, b2=b2)


def _default_batch_shards(B):
    """Shard the batch across TensorCores only on dual-TC chips (v7x);
    on single-TC chips extra grid steps would just serialize."""
    try:
        kind = jax.devices()[0].device_kind.lower()
    except Exception:
        return 1
    if ("v7" in kind or "7x" in kind) and B % 2 == 0:
        return 2
    return 1


@functools.partial(jax.jit, static_argnames=("num_classes", "samples_per_class",
                                             "input_size", "batch_shards"))
def mann_forward(input_images, input_labels, params, *,
                 num_classes, samples_per_class, input_size, batch_shards=None):
    """input_images: [B, K+1, N, input_size]; input_labels: [B, K+1, N, N].
    Returns [B, K+1, N, N], matching MANN.forward."""
    B = input_images.shape[0]
    T = num_classes * (samples_per_class + 1)
    D_in = input_size + num_classes
    D_pad = ((D_in + 127) // 128) * 128          # lane/MXU-aligned K dim

    if batch_shards is None:
        batch_shards = _default_batch_shards(B)
    assert B % batch_shards == 0
    Bs = B // batch_shards

    H1 = params["whh1"].shape[0]
    H2 = params["whh2"].shape[0]

    # glue: zero query-step labels, flatten (K+1, N) -> T, concat, pad, to
    # time-major per shard: [shards, T*Bs, D_pad]
    labels = input_labels.at[:, -1].set(0.0)
    imgs = input_images.reshape(B, T, input_size).astype(jnp.float32)
    labs = labels.reshape(B, T, num_classes).astype(jnp.float32)
    x = jnp.concatenate([imgs, labs], axis=2)                    # [B, T, D_in]
    x = jnp.pad(x, ((0, 0), (0, 0), (0, D_pad - D_in)))          # [B, T, D_pad]
    x_tm = jnp.transpose(x, (1, 0, 2))                           # [T, B, D_pad]
    x_sh = (x_tm.reshape(T, batch_shards, Bs, D_pad)
                .transpose(1, 0, 2, 3)
                .reshape(batch_shards, T * Bs, D_pad)
                .astype(jnp.bfloat16))

    wih1 = jnp.pad(params["wih1"],
                   ((0, D_pad - D_in), (0, 0))).astype(jnp.bfloat16)  # [D_pad,4H1]
    whh1 = params["whh1"].astype(jnp.bfloat16)
    b1 = params["b1"].astype(jnp.float32)
    wih2 = params["wih2"].astype(jnp.bfloat16)
    whh2 = params["whh2"].astype(jnp.float32)      # kept f32: consumed on the VPU
    b2 = params["b2"].astype(jnp.float32)

    kernel = functools.partial(_mann_lstm_kernel, T=T, B=Bs, H1=H1, H2=H2)

    y_sh = pl.pallas_call(
        kernel,
        grid=(batch_shards,),
        out_shape=jax.ShapeDtypeStruct((batch_shards, T, Bs, H2), jnp.float32),
        in_specs=[
            pl.BlockSpec((1, T * Bs, D_pad), lambda s: (s, 0, 0)),
            pl.BlockSpec(wih1.shape, lambda s: (0, 0)),
            pl.BlockSpec(whh1.shape, lambda s: (0, 0)),
            pl.BlockSpec(b1.shape, lambda s: (0, 0)),
            pl.BlockSpec(wih2.shape, lambda s: (0, 0)),
            pl.BlockSpec(whh2.shape, lambda s: (0, 0)),
            pl.BlockSpec(b2.shape, lambda s: (0, 0)),
        ],
        out_specs=pl.BlockSpec((1, T, Bs, H2), lambda s: (s, 0, 0, 0)),
        compiler_params=pltpu.CompilerParams(
            dimension_semantics=("parallel",)),
    )(x_sh, wih1, whh1, b1, wih2, whh2, b2)

    y = (y_sh.transpose(1, 0, 2, 3)                  # [T, shards, Bs, H2]
             .reshape(T, B, H2)
             .transpose(1, 0, 2))                    # [B, T, H2]
    return y.reshape(B, samples_per_class + 1, num_classes, num_classes)


def _reference_forward(input_images, input_labels, params, *,
                       num_classes, samples_per_class, input_size,
                       matmul_dtype=jnp.float32):
    """Pure-JAX reference (lax.scan LSTMs) for correctness checks.
    `matmul_dtype` controls only dot operand dtype (accumulation is f32)."""
    B = input_images.shape[0]
    T = num_classes * (samples_per_class + 1)
    labels = input_labels.at[:, -1].set(0.0)
    x = jnp.concatenate(
        [input_images.reshape(B, T, input_size).astype(jnp.float32),
         labels.reshape(B, T, num_classes).astype(jnp.float32)], axis=2)
    x = jnp.transpose(x, (1, 0, 2))  # [T, B, D]

    def run_layer(x_tm, wih, whh, b, H):
        wih = wih.astype(matmul_dtype)
        whh = whh.astype(matmul_dtype)

        def step(carry, x_t):
            h, c = carry
            g = (jnp.dot(x_t.astype(matmul_dtype), wih,
                         preferred_element_type=jnp.float32)
                 + jnp.dot(h.astype(matmul_dtype), whh,
                           preferred_element_type=jnp.float32) + b)
            i_g = jax.nn.sigmoid(g[:, 0:H])
            f_g = jax.nn.sigmoid(g[:, H:2 * H])
            g_g = jnp.tanh(g[:, 2 * H:3 * H])
            o_g = jax.nn.sigmoid(g[:, 3 * H:4 * H])
            c = f_g * c + i_g * g_g
            h = o_g * jnp.tanh(c)
            return (h, c), h

        init = (jnp.zeros((B, H), jnp.float32), jnp.zeros((B, H), jnp.float32))
        _, hs = jax.lax.scan(step, init, x_tm)
        return hs

    h1 = run_layer(x, params["wih1"], params["whh1"], params["b1"],
                   params["whh1"].shape[0])
    h2 = run_layer(h1, params["wih2"], params["whh2"], params["b2"],
                   params["whh2"].shape[0])
    y = jnp.transpose(h2, (1, 0, 2))
    return y.reshape(B, samples_per_class + 1, num_classes, num_classes)


if __name__ == "__main__":
    # small, forward-consistent shapes
    B = 2
    num_classes = 4          # N
    samples_per_class = 2    # K
    input_size = 64
    model_size = 32

    key = jax.random.PRNGKey(0)
    k_img, k_lab, k_par = jax.random.split(key, 3)

    input_images = jax.random.normal(
        k_img, (B, samples_per_class + 1, num_classes, input_size), jnp.float32)
    lab_idx = jax.random.randint(
        k_lab, (B, samples_per_class + 1, num_classes), 0, num_classes)
    input_labels = jax.nn.one_hot(lab_idx, num_classes, dtype=jnp.float32)

    params = init_mann_params(k_par, num_classes, input_size, model_size)

    out = mann_forward(input_images, input_labels, params,
                       num_classes=num_classes,
                       samples_per_class=samples_per_class,
                       input_size=input_size)
    out = jax.block_until_ready(out)
    assert out.shape == (B, samples_per_class + 1, num_classes, num_classes)

    # check vs. a reference using bf16 matmul operands (kernel keeps the tiny
    # layer-2 recurrent contraction in f32, hence the modest tolerance)
    ref_bf16 = jax.block_until_ready(_reference_forward(
        input_images, input_labels, params,
        num_classes=num_classes, samples_per_class=samples_per_class,
        input_size=input_size, matmul_dtype=jnp.bfloat16))
    assert jnp.allclose(out, ref_bf16, atol=1e-2, rtol=1e-2), \
        "mismatch vs bf16-matmul JAX reference"

    # looser check vs. the full-f32 reference (bounds bf16 operand rounding)
    ref_f32 = jax.block_until_ready(_reference_forward(
        input_images, input_labels, params,
        num_classes=num_classes, samples_per_class=samples_per_class,
        input_size=input_size, matmul_dtype=jnp.float32))
    assert jnp.allclose(out, ref_f32, atol=5e-2, rtol=5e-2), \
        "mismatch vs f32 JAX reference"

    print("KERNEL_OK")
</pallas_src>

<mosaic_0001>
module attributes {stable_mosaic.version = 11 : i64} {
  func.func @_mann_lstm_kernel(%arg0: i32, %arg1: memref<1x24x128xbf16, #tpu.memory_space<vmem>>, %arg2: memref<128x128xbf16, #tpu.memory_space<vmem>>, %arg3: memref<32x128xbf16, #tpu.memory_space<vmem>>, %arg4: memref<1x128xf32, #tpu.memory_space<vmem>>, %arg5: memref<32x16xbf16, #tpu.memory_space<vmem>>, %arg6: memref<4x16xf32, #tpu.memory_space<vmem>>, %arg7: memref<1x16xf32, #tpu.memory_space<vmem>>, %arg8: memref<1x12x2x4xf32, #tpu.memory_space<vmem>>) attributes {dimension_semantics = [#tpu.dimension_semantics<parallel>], iteration_bounds = array<i64: 1>, scalar_prefetch = 0 : i64, scratch_operands = 0 : i64, tpu.core_type = #tpu.core_type<tc>, window_params = [{transform_indices = @transform_0, window_bounds = array<i64: 1, 24, 128>}, {pipeline_mode = #tpu.pipeline_mode<synchronous>, transform_indices = @transform_1, window_bounds = array<i64: 128, 128>}, {pipeline_mode = #tpu.pipeline_mode<synchronous>, transform_indices = @transform_2, window_bounds = array<i64: 32, 128>}, {pipeline_mode = #tpu.pipeline_mode<synchronous>, transform_indices = @transform_3, window_bounds = array<i64: 1, 128>}, {pipeline_mode = #tpu.pipeline_mode<synchronous>, transform_indices = @transform_4, window_bounds = array<i64: 32, 16>}, {pipeline_mode = #tpu.pipeline_mode<synchronous>, transform_indices = @transform_5, window_bounds = array<i64: 4, 16>}, {pipeline_mode = #tpu.pipeline_mode<synchronous>, transform_indices = @transform_6, window_bounds = array<i64: 1, 16>}, {transform_indices = @transform_7, window_bounds = array<i64: 1, 12, 2, 4>}]} {
    %c0 = arith.constant 0 : index
    %c0_0 = arith.constant 0 : index
    %0 = vector.load %arg3[%c0, %c0_0] : memref<32x128xbf16, #tpu.memory_space<vmem>>, vector<32x128xbf16>
    %c0_1 = arith.constant 0 : index
    %c0_2 = arith.constant 0 : index
    %1 = vector.load %arg5[%c0_1, %c0_2] : memref<32x16xbf16, #tpu.memory_space<vmem>>, vector<32x16xbf16>
    %c0_3 = arith.constant 0 : index
    %c0_4 = arith.constant 0 : index
    %2 = vector.load %arg6[%c0_3, %c0_4] : memref<4x16xf32, #tpu.memory_space<vmem>>, vector<4x16xf32>
    %c0_5 = arith.constant 0 : index
    %c0_6 = arith.constant 0 : index
    %3 = vector.load %arg7[%c0_5, %c0_6] : memref<1x16xf32, #tpu.memory_space<vmem>>, vector<1x16xf32>
    %4 = vector.shape_cast %3 : vector<1x16xf32> to vector<1x16xf32>
    %5 = vector.broadcast %4 : vector<1x16xf32> to vector<2x16xf32>
    %6 = tpu.iota {dimensions = array<i32: 1>} : vector<2x128xi32>
    %c64_i32 = arith.constant 64 : i32
    %7 = vector.broadcast %c64_i32 : i32 to vector<2x128xi32>
    %8 = arith.cmpi sge, %6, %7 : vector<2x128xi32>
    %c96_i32 = arith.constant 96 : i32
    %9 = vector.broadcast %c96_i32 : i32 to vector<2x128xi32>
    %10 = arith.cmpi slt, %6, %9 : vector<2x128xi32>
    %11 = arith.andi %8, %10 : vector<2x128xi1>
    %12 = tpu.iota {dimensions = array<i32: 1>} : vector<2x16xi32>
    %c8_i32 = arith.constant 8 : i32
    %13 = vector.broadcast %c8_i32 : i32 to vector<2x16xi32>
    %14 = arith.cmpi sge, %12, %13 : vector<2x16xi32>
    %c12_i32 = arith.constant 12 : i32
    %15 = vector.broadcast %c12_i32 : i32 to vector<2x16xi32>
    %16 = arith.cmpi slt, %12, %15 : vector<2x16xi32>
    %17 = arith.andi %14, %16 : vector<2x16xi1>
    %18 = vector.extract_strided_slice %2 {offsets = [0, 0], sizes = [1, 16], strides = [1, 1]} : vector<4x16xf32> to vector<1x16xf32>
    %19 = vector.shape_cast %18 : vector<1x16xf32> to vector<1x16xf32>
    %20 = vector.broadcast %19 : vector<1x16xf32> to vector<2x16xf32>
    %21 = vector.extract_strided_slice %2 {offsets = [1, 0], sizes = [1, 16], strides = [1, 1]} : vector<4x16xf32> to vector<1x16xf32>
    %22 = vector.shape_cast %21 : vector<1x16xf32> to vector<1x16xf32>
    %23 = vector.broadcast %22 : vector<1x16xf32> to vector<2x16xf32>
    %24 = vector.extract_strided_slice %2 {offsets = [2, 0], sizes = [1, 16], strides = [1, 1]} : vector<4x16xf32> to vector<1x16xf32>
    %25 = vector.shape_cast %24 : vector<1x16xf32> to vector<1x16xf32>
    %26 = vector.broadcast %25 : vector<1x16xf32> to vector<2x16xf32>
    %27 = vector.extract_strided_slice %2 {offsets = [3, 0], sizes = [1, 16], strides = [1, 1]} : vector<4x16xf32> to vector<1x16xf32>
    %28 = vector.shape_cast %27 : vector<1x16xf32> to vector<1x16xf32>
    %29 = vector.broadcast %28 : vector<1x16xf32> to vector<2x16xf32>
    %c0_7 = arith.constant 0 : index
    %c0_8 = arith.constant 0 : index
    %c0_9 = arith.constant 0 : index
    %30 = vector.load %arg1[%c0_7, %c0_8, %c0_9] : memref<1x24x128xbf16, #tpu.memory_space<vmem>>, vector<1x24x128xbf16>
    %31 = vector.shape_cast %30 : vector<1x24x128xbf16> to vector<24x128xbf16>
    %c0_10 = arith.constant 0 : index
    %c0_11 = arith.constant 0 : index
    %32 = vector.load %arg2[%c0_10, %c0_11] : memref<128x128xbf16, #tpu.memory_space<vmem>>, vector<128x128xbf16>
    %cst = arith.constant dense<0.000000e+00> : vector<24x128xf32>
    %33 = tpu.matmul %31, %32, %cst {dimension_numbers = #tpu.dot_dimension_numbers<[1], [0], [0], [1], [0, 0, 1, 1], [], []>} : vector<24x128xbf16>, vector<128x128xbf16>, vector<24x128xf32> -> vector<24x128xf32>
    %c0_12 = arith.constant 0 : index
    %c0_13 = arith.constant 0 : index
    %34 = vector.load %arg4[%c0_12, %c0_13] : memref<1x128xf32, #tpu.memory_space<vmem>>, vector<1x128xf32>
    %35 = vector.broadcast %34 : vector<1x128xf32> to vector<24x128xf32>
    %36 = arith.addf %33, %35 : vector<24x128xf32>
    %37 = vector.extract_strided_slice %36 {offsets = [0, 0], sizes = [2, 128], strides = [1, 1]} : vector<24x128xf32> to vector<2x128xf32>
    %38 = arith.negf %37 : vector<2x128xf32>
    %39 = math.exp %38 : vector<2x128xf32>
    %cst_14 = arith.constant 1.000000e+00 : f32
    %40 = vector.broadcast %cst_14 : f32 to vector<2x128xf32>
    %41 = arith.addf %40, %39 : vector<2x128xf32>
    %42 = arith.divf %40, %41 : vector<2x128xf32>
    %43 = math.tanh %37 : vector<2x128xf32>
    %44 = arith.select %11, %43, %42 : vector<2x128xi1>, vector<2x128xf32>
    %45 = vector.extract_strided_slice %44 {offsets = [0, 0], sizes = [2, 32], strides = [1, 1]} : vector<2x128xf32> to vector<2x32xf32>
    %46 = vector.extract_strided_slice %44 {offsets = [0, 64], sizes = [2, 32], strides = [1, 1]} : vector<2x128xf32> to vector<2x32xf32>
    %47 = vector.extract_strided_slice %44 {offsets = [0, 96], sizes = [2, 32], strides = [1, 1]} : vector<2x128xf32> to vector<2x32xf32>
    %48 = arith.mulf %45, %46 : vector<2x32xf32>
    %49 = math.tanh %48 : vector<2x32xf32>
    %50 = arith.mulf %47, %49 : vector<2x32xf32>
    %51 = arith.truncf %50 : vector<2x32xf32> to vector<2x32xbf16>
    %52 = vector.extract_strided_slice %36 {offsets = [2, 0], sizes = [2, 128], strides = [1, 1]} : vector<24x128xf32> to vector<2x128xf32>
    %cst_15 = arith.constant dense<0.000000e+00> : vector<2x128xf32>
    %53 = tpu.matmul %51, %0, %cst_15 {dimension_numbers = #tpu.dot_dimension_numbers<[1], [0], [0], [1], [0, 0, 1, 1], [], []>} : vector<2x32xbf16>, vector<32x128xbf16>, vector<2x128xf32> -> vector<2x128xf32>
    %54 = arith.addf %52, %53 : vector<2x128xf32>
    %55 = arith.negf %54 : vector<2x128xf32>
    %56 = math.exp %55 : vector<2x128xf32>
    %cst_16 = arith.constant 1.000000e+00 : f32
    %57 = vector.broadcast %cst_16 : f32 to vector<2x128xf32>
    %58 = arith.addf %57, %56 : vector<2x128xf32>
    %59 = arith.divf %57, %58 : vector<2x128xf32>
    %60 = math.tanh %54 : vector<2x128xf32>
    %61 = arith.select %11, %60, %59 : vector<2x128xi1>, vector<2x128xf32>
    %62 = vector.extract_strided_slice %61 {offsets = [0, 0], sizes = [2, 32], strides = [1, 1]} : vector<2x128xf32> to vector<2x32xf32>
    %63 = vector.extract_strided_slice %61 {offsets = [0, 32], sizes = [2, 32], strides = [1, 1]} : vector<2x128xf32> to vector<2x32xf32>
    %64 = vector.extract_strided_slice %61 {offsets = [0, 64], sizes = [2, 32], strides = [1, 1]} : vector<2x128xf32> to vector<2x32xf32>
    %65 = vector.extract_strided_slice %61 {offsets = [0, 96], sizes = [2, 32], strides = [1, 1]} : vector<2x128xf32> to vector<2x32xf32>
    %66 = arith.mulf %63, %48 : vector<2x32xf32>
    %67 = arith.mulf %62, %64 : vector<2x32xf32>
    %68 = arith.addf %66, %67 : vector<2x32xf32>
    %69 = math.tanh %68 : vector<2x32xf32>
    %70 = arith.mulf %65, %69 : vector<2x32xf32>
    %cst_17 = arith.constant dense<0.000000e+00> : vector<2x16xf32>
    %71 = tpu.matmul %51, %1, %cst_17 {dimension_numbers = #tpu.dot_dimension_numbers<[1], [0], [0], [1], [0, 0, 1, 1], [], []>} : vector<2x32xbf16>, vector<32x16xbf16>, vector<2x16xf32> -> vector<2x16xf32>
    %72 = arith.addf %71, %5 : vector<2x16xf32>
    %73 = arith.negf %72 : vector<2x16xf32>
    %74 = math.exp %73 : vector<2x16xf32>
    %cst_18 = arith.constant 1.000000e+00 : f32
    %75 = vector.broadcast %cst_18 : f32 to vector<2x16xf32>
    %76 = arith.addf %75, %74 : vector<2x16xf32>
    %77 = arith.divf %75, %76 : vector<2x16xf32>
    %78 = math.tanh %72 : vector<2x16xf32>
    %79 = arith.select %17, %78, %77 : vector<2x16xi1>, vector<2x16xf32>
    %80 = vector.extract_strided_slice %79 {offsets = [0, 0], sizes = [2, 4], strides = [1, 1]} : vector<2x16xf32> to vector<2x4xf32>
    %81 = vector.extract_strided_slice %79 {offsets = [0, 8], sizes = [2, 4], strides = [1, 1]} : vector<2x16xf32> to vector<2x4xf32>
    %82 = vector.extract_strided_slice %79 {offsets = [0, 12], sizes = [2, 4], strides = [1, 1]} : vector<2x16xf32> to vector<2x4xf32>
    %83 = arith.mulf %80, %81 : vector<2x4xf32>
    %84 = math.tanh %83 : vector<2x4xf32>
    %85 = arith.mulf %82, %84 : vector<2x4xf32>
    %c0_19 = arith.constant 0 : index
    %c0_20 = arith.constant 0 : index
    %c0_21 = arith.constant 0 : index
    %c0_22 = arith.constant 0 : index
    %86 = vector.load %arg8[%c0_19, %c0_20, %c0_21, %c0_22] : memref<1x12x2x4xf32, #tpu.memory_space<vmem>>, vector<1x1x2x4xf32>
    %87 = vector.shape_cast %86 : vector<1x1x2x4xf32> to vector<2x4xf32>
    %88 = vector.shape_cast %85 : vector<2x4xf32> to vector<1x1x2x4xf32>
    tpu.vector_store %arg8[%c0_19, %c0_20, %c0_21, %c0_22], %88 {strides = array<i32>} : memref<1x12x2x4xf32, #tpu.memory_space<vmem>>, vector<1x1x2x4xf32>,
    %89 = arith.truncf %70 : vector<2x32xf32> to vector<2x32xbf16>
    %90 = vector.extract_strided_slice %36 {offsets = [4, 0], sizes = [2, 128], strides = [1, 1]} : vector<24x128xf32> to vector<2x128xf32>
    %cst_23 = arith.constant dense<0.000000e+00> : vector<2x128xf32>
    %91 = tpu.matmul %89, %0, %cst_23 {dimension_numbers = #tpu.dot_dimension_numbers<[1], [0], [0], [1], [0, 0, 1, 1], [], []>} : vector<2x32xbf16>, vector<32x128xbf16>, vector<2x128xf32> -> vector<2x128xf32>
    %92 = arith.addf %90, %91 : vector<2x128xf32>
    %93 = arith.negf %92 : vector<2x128xf32>
    %94 = math.exp %93 : vector<2x128xf32>
    %cst_24 = arith.constant 1.000000e+00 : f32
    %95 = vector.broadcast %cst_24 : f32 to vector<2x128xf32>
    %96 = arith.addf %95, %94 : vector<2x128xf32>
    %97 = arith.divf %95, %96 : vector<2x128xf32>
    %98 = math.tanh %92 : vector<2x128xf32>
    %99 = arith.select %11, %98, %97 : vector<2x128xi1>, vector<2x128xf32>
    %100 = vector.extract_strided_slice %99 {offsets = [0, 0], sizes = [2, 32], strides = [1, 1]} : vector<2x128xf32> to vector<2x32xf32>
    %101 = vector.extract_strided_slice %99 {offsets = [0, 32], sizes = [2, 32], strides = [1, 1]} : vector<2x128xf32> to vector<2x32xf32>
    %102 = vector.extract_strided_slice %99 {offsets = [0, 64], sizes = [2, 32], strides = [1, 1]} : vector<2x128xf32> to vector<2x32xf32>
    %103 = vector.extract_strided_slice %99 {offsets = [0, 96], sizes = [2, 32], strides = [1, 1]} : vector<2x128xf32> to vector<2x32xf32>
    %104 = arith.mulf %101, %68 : vector<2x32xf32>
    %105 = arith.mulf %100, %102 : vector<2x32xf32>
    %106 = arith.addf %104, %105 : vector<2x32xf32>
    %107 = math.tanh %106 : vector<2x32xf32>
    %108 = arith.mulf %103, %107 : vector<2x32xf32>
    %cst_25 = arith.constant dense<0.000000e+00> : vector<2x16xf32>
    %109 = tpu.matmul %89, %1, %cst_25 {dimension_numbers = #tpu.dot_dimension_numbers<[1], [0], [0], [1], [0, 0, 1, 1], [], []>} : vector<2x32xbf16>, vector<32x16xbf16>, vector<2x16xf32> -> vector<2x16xf32>
    %110 = arith.addf %109, %5 : vector<2x16xf32>
    %111 = vector.extract_strided_slice %85 {offsets = [0, 0], sizes = [2, 1], strides = [1, 1]} : vector<2x4xf32> to vector<2x1xf32>
    %112 = vector.broadcast %111 : vector<2x1xf32> to vector<2x16xf32>
    %113 = arith.mulf %112, %20 : vector<2x16xf32>
    %114 = vector.extract_strided_slice %85 {offsets = [0, 1], sizes = [2, 1], strides = [1, 1]} : vector<2x4xf32> to vector<2x1xf32>
    %115 = vector.broadcast %114 : vector<2x1xf32> to vector<2x16xf32>
    %116 = arith.mulf %115, %23 : vector<2x16xf32>
    %117 = arith.addf %113, %116 : vector<2x16xf32>
    %118 = vector.extract_strided_slice %85 {offsets = [0, 2], sizes = [2, 1], strides = [1, 1]} : vector<2x4xf32> to vector<2x1xf32>
    %119 = vector.broadcast %118 : vector<2x1xf32> to vector<2x16xf32>
    %120 = arith.mulf %119, %26 : vector<2x16xf32>
    %121 = arith.addf %117, %120 : vector<2x16xf32>
    %122 = vector.extract_strided_slice %85 {offsets = [0, 3], sizes = [2, 1], strides = [1, 1]} : vector<2x4xf32> to vector<2x1xf32>
    %123 = vector.broadcast %122 : vector<2x1xf32> to vector<2x16xf32>
    %124 = arith.mulf %123, %29 : vector<2x16xf32>
    %125 = arith.addf %121, %124 : vector<2x16xf32>
    %126 = arith.addf %110, %125 : vector<2x16xf32>
    %127 = arith.negf %126 : vector<2x16xf32>
    %128 = math.exp %127 : vector<2x16xf32>
    %cst_26 = arith.constant 1.000000e+00 : f32
    %129 = vector.broadcast %cst_26 : f32 to vector<2x16xf32>
    %130 = arith.addf %129, %128 : vector<2x16xf32>
    %131 = arith.divf %129, %130 : vector<2x16xf32>
    %132 = math.tanh %126 : vector<2x16xf32>
    %133 = arith.select %17, %132, %131 : vector<2x16xi1>, vector<2x16xf32>
    %134 = vector.extract_strided_slice %133 {offsets = [0, 0], sizes = [2, 4], strides = [1, 1]} : vector<2x16xf32> to vector<2x4xf32>
    %135 = vector.extract_strided_slice %133 {offsets = [0, 4], sizes = [2, 4], strides = [1, 1]} : vector<2x16xf32> to vector<2x4xf32>
    %136 = vector.extract_strided_slice %133 {offsets = [0, 8], sizes = [2, 4], strides = [1, 1]} : vector<2x16xf32> to vector<2x4xf32>
    %137 = vector.extract_strided_slice %133 {offsets = [0, 12], sizes = [2, 4], strides = [1, 1]} : vector<2x16xf32> to vector<2x4xf32>
    %138 = arith.mulf %135, %83 : vector<2x4xf32>
    %139 = arith.mulf %134, %136 : vector<2x4xf32>
    %140 = arith.addf %138, %139 : vector<2x4xf32>
    %141 = math.tanh %140 : vector<2x4xf32>
    %142 = arith.mulf %137, %141 : vector<2x4xf32>
    %c0_27 = arith.constant 0 : index
    %c1 = arith.constant 1 : index
    %c0_28 = arith.constant 0 : index
    %c0_29 = arith.constant 0 : index
    %143 = vector.load %arg8[%c0_27, %c1, %c0_28, %c0_29] : memref<1x12x2x4xf32, #tpu.memory_space<vmem>>, vector<1x1x2x4xf32>
    %144 = vector.shape_cast %143 : vector<1x1x2x4xf32> to vector<2x4xf32>
    %145 = vector.shape_cast %142 : vector<2x4xf32> to vector<1x1x2x4xf32>
    tpu.vector_store %arg8[%c0_27, %c1, %c0_28, %c0_29], %145 {strides = array<i32>} : memref<1x12x2x4xf32, #tpu.memory_space<vmem>>, vector<1x1x2x4xf32>,
    %146 = arith.truncf %108 : vector<2x32xf32> to vector<2x32xbf16>
    %147 = vector.extract_strided_slice %36 {offsets = [6, 0], sizes = [2, 128], strides = [1, 1]} : vector<24x128xf32> to vector<2x128xf32>
    %cst_30 = arith.constant dense<0.000000e+00> : vector<2x128xf32>
    %148 = tpu.matmul %146, %0, %cst_30 {dimension_numbers = #tpu.dot_dimension_numbers<[1], [0], [0], [1], [0, 0, 1, 1], [], []>} : vector<2x32xbf16>, vector<32x128xbf16>, vector<2x128xf32> -> vector<2x128xf32>
    %149 = arith.addf %147, %148 : vector<2x128xf32>
    %150 = arith.negf %149 : vector<2x128xf32>
    %151 = math.exp %150 : vector<2x128xf32>
    %cst_31 = arith.constant 1.000000e+00 : f32
    %152 = vector.broadcast %cst_31 : f32 to vector<2x128xf32>
    %153 = arith.addf %152, %151 : vector<2x128xf32>
    %154 = arith.divf %152, %153 : vector<2x128xf32>
    %155 = math.tanh %149 : vector<2x128xf32>
    %156 = arith.select %11, %155, %154 : vector<2x128xi1>, vector<2x128xf32>
    %157 = vector.extract_strided_slice %156 {offsets = [0, 0], sizes = [2, 32], strides = [1, 1]} : vector<2x128xf32> to vector<2x32xf32>
    %158 = vector.extract_strided_slice %156 {offsets = [0, 32], sizes = [2, 32], strides = [1, 1]} : vector<2x128xf32> to vector<2x32xf32>
    %159 = vector.extract_strided_slice %156 {offsets = [0, 64], sizes = [2, 32], strides = [1, 1]} : vector<2x128xf32> to vector<2x32xf32>
    %160 = vector.extract_strided_slice %156 {offsets = [0, 96], sizes = [2, 32], strides = [1, 1]} : vector<2x128xf32> to vector<2x32xf32>
    %161 = arith.mulf %158, %106 : vector<2x32xf32>
    %162 = arith.mulf %157, %159 : vector<2x32xf32>
    %163 = arith.addf %161, %162 : vector<2x32xf32>
    %164 = math.tanh %163 : vector<2x32xf32>
    %165 = arith.mulf %160, %164 : vector<2x32xf32>
    %cst_32 = arith.constant dense<0.000000e+00> : vector<2x16xf32>
    %166 = tpu.matmul %146, %1, %cst_32 {dimension_numbers = #tpu.dot_dimension_numbers<[1], [0], [0], [1], [0, 0, 1, 1], [], []>} : vector<2x32xbf16>, vector<32x16xbf16>, vector<2x16xf32> -> vector<2x16xf32>
    %167 = arith.addf %166, %5 : vector<2x16xf32>
    %168 = vector.extract_strided_slice %142 {offsets = [0, 0], sizes = [2, 1], strides = [1, 1]} : vector<2x4xf32> to vector<2x1xf32>
    %169 = vector.broadcast %168 : vector<2x1xf32> to vector<2x16xf32>
    %170 = arith.mulf %169, %20 : vector<2x16xf32>
    %171 = vector.extract_strided_slice %142 {offsets = [0, 1], sizes = [2, 1], strides = [1, 1]} : vector<2x4xf32> to vector<2x1xf32>
    %172 = vector.broadcast %171 : vector<2x1xf32> to vector<2x16xf32>
    %173 = arith.mulf %172, %23 : vector<2x16xf32>
    %174 = arith.addf %170, %173 : vector<2x16xf32>
    %175 = vector.extract_strided_slice %142 {offsets = [0, 2], sizes = [2, 1], strides = [1, 1]} : vector<2x4xf32> to vector<2x1xf32>
    %176 = vector.broadcast %175 : vector<2x1xf32> to vector<2x16xf32>
    %177 = arith.mulf %176, %26 : vector<2x16xf32>
    %178 = arith.addf %174, %177 : vector<2x16xf32>
    %179 = vector.extract_strided_slice %142 {offsets = [0, 3], sizes = [2, 1], strides = [1, 1]} : vector<2x4xf32> to vector<2x1xf32>
    %180 = vector.broadcast %179 : vector<2x1xf32> to vector<2x16xf32>
    %181 = arith.mulf %180, %29 : vector<2x16xf32>
    %182 = arith.addf %178, %181 : vector<2x16xf32>
    %183 = arith.addf %167, %182 : vector<2x16xf32>
    %184 = arith.negf %183 : vector<2x16xf32>
    %185 = math.exp %184 : vector<2x16xf32>
    %cst_33 = arith.constant 1.000000e+00 : f32
    %186 = vector.broadcast %cst_33 : f32 to vector<2x16xf32>
    %187 = arith.addf %186, %185 : vector<2x16xf32>
    %188 = arith.divf %186, %187 : vector<2x16xf32>
    %189 = math.tanh %183 : vector<2x16xf32>
    %190 = arith.select %17, %189, %188 : vector<2x16xi1>, vector<2x16xf32>
    %191 = vector.extract_strided_slice %190 {offsets = [0, 0], sizes = [2, 4], strides = [1, 1]} : vector<2x16xf32> to vector<2x4xf32>
    %192 = vector.extract_strided_slice %190 {offsets = [0, 4], sizes = [2, 4], strides = [1, 1]} : vector<2x16xf32> to vector<2x4xf32>
    %193 = vector.extract_strided_slice %190 {offsets = [0, 8], sizes = [2, 4], strides = [1, 1]} : vector<2x16xf32> to vector<2x4xf32>
    %194 = vector.extract_strided_slice %190 {offsets = [0, 12], sizes = [2, 4], strides = [1, 1]} : vector<2x16xf32> to vector<2x4xf32>
    %195 = arith.mulf %192, %140 : vector<2x4xf32>
    %196 = arith.mulf %191, %193 : vector<2x4xf32>
    %197 = arith.addf %195, %196 : vector<2x4xf32>
    %198 = math.tanh %197 : vector<2x4xf32>
    %199 = arith.mulf %194, %198 : vector<2x4xf32>
    %c0_34 = arith.constant 0 : index
    %c2 = arith.constant 2 : index
    %c0_35 = arith.constant 0 : index
    %c0_36 = arith.constant 0 : index
    %200 = vector.load %arg8[%c0_34, %c2, %c0_35, %c0_36] : memref<1x12x2x4xf32, #tpu.memory_space<vmem>>, vector<1x1x2x4xf32>
    %201 = vector.shape_cast %200 : vector<1x1x2x4xf32> to vector<2x4xf32>
    %202 = vector.shape_cast %199 : vector<2x4xf32> to vector<1x1x2x4xf32>
    tpu.vector_store %arg8[%c0_34, %c2, %c0_35, %c0_36], %202 {strides = array<i32>} : memref<1x12x2x4xf32, #tpu.memory_space<vmem>>, vector<1x1x2x4xf32>,
    %203 = arith.truncf %165 : vector<2x32xf32> to vector<2x32xbf16>
    %204 = vector.extract_strided_slice %36 {offsets = [8, 0], sizes = [2, 128], strides = [1, 1]} : vector<24x128xf32> to vector<2x128xf32>
    %cst_37 = arith.constant dense<0.000000e+00> : vector<2x128xf32>
    %205 = tpu.matmul %203, %0, %cst_37 {dimension_numbers = #tpu.dot_dimension_numbers<[1], [0], [0], [1], [0, 0, 1, 1], [], []>} : vector<2x32xbf16>, vector<32x128xbf16>, vector<2x128xf32> -> vector<2x128xf32>
    %206 = arith.addf %204, %205 : vector<2x128xf32>
    %207 = arith.negf %206 : vector<2x128xf32>
    %208 = math.exp %207 : vector<2x128xf32>
    %cst_38 = arith.constant 1.000000e+00 : f32
    %209 = vector.broadcast %cst_38 : f32 to vector<2x128xf32>
    %210 = arith.addf %209, %208 : vector<2x128xf32>
    %211 = arith.divf %209, %210 : vector<2x128xf32>
    %212 = math.tanh %206 : vector<2x128xf32>
    %213 = arith.select %11, %212, %211 : vector<2x128xi1>, vector<2x128xf32>
    %214 = vector.extract_strided_slice %213 {offsets = [0, 0], sizes = [2, 32], strides = [1, 1]} : vector<2x128xf32> to vector<2x32xf32>
    %215 = vector.extract_strided_slice %213 {offsets = [0, 32], sizes = [2, 32], strides = [1, 1]} : vector<2x128xf32> to vector<2x32xf32>
    %216 = vector.extract_strided_slice %213 {offsets = [0, 64], sizes = [2, 32], strides = [1, 1]} : vector<2x128xf32> to vector<2x32xf32>
    %217 = vector.extract_strided_slice %213 {offsets = [0, 96], sizes = [2, 32], strides = [1, 1]} : vector<2x128xf32> to vector<2x32xf32>
    %218 = arith.mulf %215, %163 : vector<2x32xf32>
    %219 = arith.mulf %214, %216 : vector<2x32xf32>
    %220 = arith.addf %218, %219 : vector<2x32xf32>
    %221 = math.tanh %220 : vector<2x32xf32>
    %222 = arith.mulf %217, %221 : vector<2x32xf32>
    %cst_39 = arith.constant dense<0.000000e+00> : vector<2x16xf32>
    %223 = tpu.matmul %203, %1, %cst_39 {dimension_numbers = #tpu.dot_dimension_numbers<[1], [0], [0], [1], [0, 0, 1, 1], [], []>} : vector<2x32xbf16>, vector<32x16xbf16>, vector<2x16xf32> -> vector<2x16xf32>
    %224 = arith.addf %223, %5 : vector<2x16xf32>
    %225 = vector.extract_strided_slice %199 {offsets = [0, 0], sizes = [2, 1], strides = [1, 1]} : vector<2x4xf32> to vector<2x1xf32>
    %226 = vector.broadcast %225 : vector<2x1xf32> to vector<2x16xf32>
    %227 = arith.mulf %226, %20 : vector<2x16xf32>
    %228 = vector.extract_strided_slice %199 {offsets = [0, 1], sizes = [2, 1], strides = [1, 1]} : vector<2x4xf32> to vector<2x1xf32>
    %229 = vector.broadcast %228 : vector<2x1xf32> to vector<2x16xf32>
    %230 = arith.mulf %229, %23 : vector<2x16xf32>
    %231 = arith.addf %227, %230 : vector<2x16xf32>
    %232 = vector.extract_strided_slice %199 {offsets = [0, 2], sizes = [2, 1], strides = [1, 1]} : vector<2x4xf32> to vector<2x1xf32>
    %233 = vector.broadcast %232 : vector<2x1xf32> to vector<2x16xf32>
    %234 = arith.mulf %233, %26 : vector<2x16xf32>
    %235 = arith.addf %231, %234 : vector<2x16xf32>
    %236 = vector.extract_strided_slice %199 {offsets = [0, 3], sizes = [2, 1], strides = [1, 1]} : vector<2x4xf32> to vector<2x1xf32>
    %237 = vector.broadcast %236 : vector<2x1xf32> to vector<2x16xf32>
    %238 = arith.mulf %237, %29 : vector<2x16xf32>
    %239 = arith.addf %235, %238 : vector<2x16xf32>
    %240 = arith.addf %224, %239 : vector<2x16xf32>
    %241 = arith.negf %240 : vector<2x16xf32>
    %242 = math.exp %241 : vector<2x16xf32>
    %cst_40 = arith.constant 1.000000e+00 : f32
    %243 = vector.broadcast %cst_40 : f32 to vector<2x16xf32>
    %244 = arith.addf %243, %242 : vector<2x16xf32>
    %245 = arith.divf %243, %244 : vector<2x16xf32>
    %246 = math.tanh %240 : vector<2x16xf32>
    %247 = arith.select %17, %246, %245 : vector<2x16xi1>, vector<2x16xf32>
    %248 = vector.extract_strided_slice %247 {offsets = [0, 0], sizes = [2, 4], strides = [1, 1]} : vector<2x16xf32> to vector<2x4xf32>
    %249 = vector.extract_strided_slice %247 {offsets = [0, 4], sizes = [2, 4], strides = [1, 1]} : vector<2x16xf32> to vector<2x4xf32>
    %250 = vector.extract_strided_slice %247 {offsets = [0, 8], sizes = [2, 4], strides = [1, 1]} : vector<2x16xf32> to vector<2x4xf32>
    %251 = vector.extract_strided_slice %247 {offsets = [0, 12], sizes = [2, 4], strides = [1, 1]} : vector<2x16xf32> to vector<2x4xf32>
    %252 = arith.mulf %249, %197 : vector<2x4xf32>
    %253 = arith.mulf %248, %250 : vector<2x4xf32>
    %254 = arith.addf %252, %253 : vector<2x4xf32>
    %255 = math.tanh %254 : vector<2x4xf32>
    %256 = arith.mulf %251, %255 : vector<2x4xf32>
    %c0_41 = arith.constant 0 : index
    %c3 = arith.constant 3 : index
    %c0_42 = arith.constant 0 : index
    %c0_43 = arith.constant 0 : index
    %257 = vector.load %arg8[%c0_41, %c3, %c0_42, %c0_43] : memref<1x12x2x4xf32, #tpu.memory_space<vmem>>, vector<1x1x2x4xf32>
    %258 = vector.shape_cast %257 : vector<1x1x2x4xf32> to vector<2x4xf32>
    %259 = vector.shape_cast %256 : vector<2x4xf32> to vector<1x1x2x4xf32>
    tpu.vector_store %arg8[%c0_41, %c3, %c0_42, %c0_43], %259 {strides = array<i32>} : memref<1x12x2x4xf32, #tpu.memory_space<vmem>>, vector<1x1x2x4xf32>,
    %260 = arith.truncf %222 : vector<2x32xf32> to vector<2x32xbf16>
    %261 = vector.extract_strided_slice %36 {offsets = [10, 0], sizes = [2, 128], strides = [1, 1]} : vector<24x128xf32> to vector<2x128xf32>
    %cst_44 = arith.constant dense<0.000000e+00> : vector<2x128xf32>
    %262 = tpu.matmul %260, %0, %cst_44 {dimension_numbers = #tpu.dot_dimension_numbers<[1], [0], [0], [1], [0, 0, 1, 1], [], []>} : vector<2x32xbf16>, vector<32x128xbf16>, vector<2x128xf32> -> vector<2x128xf32>
    %263 = arith.addf %261, %262 : vector<2x128xf32>
    %264 = arith.negf %263 : vector<2x128xf32>
    %265 = math.exp %264 : vector<2x128xf32>
    %cst_45 = arith.constant 1.000000e+00 : f32
    %266 = vector.broadcast %cst_45 : f32 to vector<2x128xf32>
    %267 = arith.addf %266, %265 : vector<2x128xf32>
    %268 = arith.divf %266, %267 : vector<2x128xf32>
    %269 = math.tanh %263 : vector<2x128xf32>
    %270 = arith.select %11, %269, %268 : vector<2x128xi1>, vector<2x128xf32>
    %271 = vector.extract_strided_slice %270 {offsets = [0, 0], sizes = [2, 32], strides = [1, 1]} : vector<2x128xf32> to vector<2x32xf32>
    %272 = vector.extract_strided_slice %270 {offsets = [0, 32], sizes = [2, 32], strides = [1, 1]} : vector<2x128xf32> to vector<2x32xf32>
    %273 = vector.extract_strided_slice %270 {offsets = [0, 64], sizes = [2, 32], strides = [1, 1]} : vector<2x128xf32> to vector<2x32xf32>
    %274 = vector.extract_strided_slice %270 {offsets = [0, 96], sizes = [2, 32], strides = [1, 1]} : vector<2x128xf32> to vector<2x32xf32>
    %275 = arith.mulf %272, %220 : vector<2x32xf32>
    %276 = arith.mulf %271, %273 : vector<2x32xf32>
    %277 = arith.addf %275, %276 : vector<2x32xf32>
    %278 = math.tanh %277 : vector<2x32xf32>
    %279 = arith.mulf %274, %278 : vector<2x32xf32>
    %cst_46 = arith.constant dense<0.000000e+00> : vector<2x16xf32>
    %280 = tpu.matmul %260, %1, %cst_46 {dimension_numbers = #tpu.dot_dimension_numbers<[1], [0], [0], [1], [0, 0, 1, 1], [], []>} : vector<2x32xbf16>, vector<32x16xbf16>, vector<2x16xf32> -> vector<2x16xf32>
    %281 = arith.addf %280, %5 : vector<2x16xf32>
    %282 = vector.extract_strided_slice %256 {offsets = [0, 0], sizes = [2, 1], strides = [1, 1]} : vector<2x4xf32> to vector<2x1xf32>
    %283 = vector.broadcast %282 : vector<2x1xf32> to vector<2x16xf32>
    %284 = arith.mulf %283, %20 : vector<2x16xf32>
    %285 = vector.extract_strided_slice %256 {offsets = [0, 1], sizes = [2, 1], strides = [1, 1]} : vector<2x4xf32> to vector<2x1xf32>
    %286 = vector.broadcast %285 : vector<2x1xf32> to vector<2x16xf32>
    %287 = arith.mulf %286, %23 : vector<2x16xf32>
    %288 = arith.addf %284, %287 : vector<2x16xf32>
    %289 = vector.extract_strided_slice %256 {offsets = [0, 2], sizes = [2, 1], strides = [1, 1]} : vector<2x4xf32> to vector<2x1xf32>
    %290 = vector.broadcast %289 : vector<2x1xf32> to vector<2x16xf32>
    %291 = arith.mulf %290, %26 : vector<2x16xf32>
    %292 = arith.addf %288, %291 : vector<2x16xf32>
    %293 = vector.extract_strided_slice %256 {offsets = [0, 3], sizes = [2, 1], strides = [1, 1]} : vector<2x4xf32> to vector<2x1xf32>
    %294 = vector.broadcast %293 : vector<2x1xf32> to vector<2x16xf32>
    %295 = arith.mulf %294, %29 : vector<2x16xf32>
    %296 = arith.addf %292, %295 : vector<2x16xf32>
    %297 = arith.addf %281, %296 : vector<2x16xf32>
    %298 = arith.negf %297 : vector<2x16xf32>
    %299 = math.exp %298 : vector<2x16xf32>
    %cst_47 = arith.constant 1.000000e+00 : f32
    %300 = vector.broadcast %cst_47 : f32 to vector<2x16xf32>
    %301 = arith.addf %300, %299 : vector<2x16xf32>
    %302 = arith.divf %300, %301 : vector<2x16xf32>
    %303 = math.tanh %297 : vector<2x16xf32>
    %304 = arith.select %17, %303, %302 : vector<2x16xi1>, vector<2x16xf32>
    %305 = vector.extract_strided_slice %304 {offsets = [0, 0], sizes = [2, 4], strides = [1, 1]} : vector<2x16xf32> to vector<2x4xf32>
    %306 = vector.extract_strided_slice %304 {offsets = [0, 4], sizes = [2, 4], strides = [1, 1]} : vector<2x16xf32> to vector<2x4xf32>
    %307 = vector.extract_strided_slice %304 {offsets = [0, 8], sizes = [2, 4], strides = [1, 1]} : vector<2x16xf32> to vector<2x4xf32>
    %308 = vector.extract_strided_slice %304 {offsets = [0, 12], sizes = [2, 4], strides = [1, 1]} : vector<2x16xf32> to vector<2x4xf32>
    %309 = arith.mulf %306, %254 : vector<2x4xf32>
    %310 = arith.mulf %305, %307 : vector<2x4xf32>
    %311 = arith.addf %309, %310 : vector<2x4xf32>
    %312 = math.tanh %311 : vector<2x4xf32>
    %313 = arith.mulf %308, %312 : vector<2x4xf32>
    %c0_48 = arith.constant 0 : index
    %c4 = arith.constant 4 : index
    %c0_49 = arith.constant 0 : index
    %c0_50 = arith.constant 0 : index
    %314 = vector.load %arg8[%c0_48, %c4, %c0_49, %c0_50] : memref<1x12x2x4xf32, #tpu.memory_space<vmem>>, vector<1x1x2x4xf32>
    %315 = vector.shape_cast %314 : vector<1x1x2x4xf32> to vector<2x4xf32>
    %316 = vector.shape_cast %313 : vector<2x4xf32> to vector<1x1x2x4xf32>
    tpu.vector_store %arg8[%c0_48, %c4, %c0_49, %c0_50], %316 {strides = array<i32>} : memref<1x12x2x4xf32, #tpu.memory_space<vmem>>, vector<1x1x2x4xf32>,
    %317 = arith.truncf %279 : vector<2x32xf32> to vector<2x32xbf16>
    %318 = vector.extract_strided_slice %36 {offsets = [12, 0], sizes = [2, 128], strides = [1, 1]} : vector<24x128xf32> to vector<2x128xf32>
    %cst_51 = arith.constant dense<0.000000e+00> : vector<2x128xf32>
    %319 = tpu.matmul %317, %0, %cst_51 {dimension_numbers = #tpu.dot_dimension_numbers<[1], [0], [0], [1], [0, 0, 1, 1], [], []>} : vector<2x32xbf16>, vector<32x128xbf16>, vector<2x128xf32> -> vector<2x128xf32>
    %320 = arith.addf %318, %319 : vector<2x128xf32>
    %321 = arith.negf %320 : vector<2x128xf32>
    %322 = math.exp %321 : vector<2x128xf32>
    %cst_52 = arith.constant 1.000000e+00 : f32
    %323 = vector.broadcast %cst_52 : f32 to vector<2x128xf32>
    %324 = arith.addf %323, %322 : vector<2x128xf32>
    %325 = arith.divf %323, %324 : vector<2x128xf32>
    %326 = math.tanh %320 : vector<2x128xf32>
    %327 = arith.select %11, %326, %325 : vector<2x128xi1>, vector<2x128xf32>
    %328 = vector.extract_strided_slice %327 {offsets = [0, 0], sizes = [2, 32], strides = [1, 1]} : vector<2x128xf32> to vector<2x32xf32>
    %329 = vector.extract_strided_slice %327 {offsets = [0, 32], sizes = [2, 32], strides = [1, 1]} : vector<2x128xf32> to vector<2x32xf32>
    %330 = vector.extract_strided_slice %327 {offsets = [0, 64], sizes = [2, 32], strides = [1, 1]} : vector<2x128xf32> to vector<2x32xf32>
    %331 = vector.extract_strided_slice %327 {offsets = [0, 96], sizes = [2, 32], strides = [1, 1]} : vector<2x128xf32> to vector<2x32xf32>
    %332 = arith.mulf %329, %277 : vector<2x32xf32>
    %333 = arith.mulf %328, %330 : vector<2x32xf32>
    %334 = arith.addf %332, %333 : vector<2x32xf32>
    %335 = math.tanh %334 : vector<2x32xf32>
    %336 = arith.mulf %331, %335 : vector<2x32xf32>
    %cst_53 = arith.constant dense<0.000000e+00> : vector<2x16xf32>
    %337 = tpu.matmul %317, %1, %cst_53 {dimension_numbers = #tpu.dot_dimension_numbers<[1], [0], [0], [1], [0, 0, 1, 1], [], []>} : vector<2x32xbf16>, vector<32x16xbf16>, vector<2x16xf32> -> vector<2x16xf32>
    %338 = arith.addf %337, %5 : vector<2x16xf32>
    %339 = vector.extract_strided_slice %313 {offsets = [0, 0], sizes = [2, 1], strides = [1, 1]} : vector<2x4xf32> to vector<2x1xf32>
    %340 = vector.broadcast %339 : vector<2x1xf32> to vector<2x16xf32>
    %341 = arith.mulf %340, %20 : vector<2x16xf32>
    %342 = vector.extract_strided_slice %313 {offsets = [0, 1], sizes = [2, 1], strides = [1, 1]} : vector<2x4xf32> to vector<2x1xf32>
    %343 = vector.broadcast %342 : vector<2x1xf32> to vector<2x16xf32>
    %344 = arith.mulf %343, %23 : vector<2x16xf32>
    %345 = arith.addf %341, %344 : vector<2x16xf32>
    %346 = vector.extract_strided_slice %313 {offsets = [0, 2], sizes = [2, 1], strides = [1, 1]} : vector<2x4xf32> to vector<2x1xf32>
    %347 = vector.broadcast %346 : vector<2x1xf32> to vector<2x16xf32>
    %348 = arith.mulf %347, %26 : vector<2x16xf32>
    %349 = arith.addf %345, %348 : vector<2x16xf32>
    %350 = vector.extract_strided_slice %313 {offsets = [0, 3], sizes = [2, 1], strides = [1, 1]} : vector<2x4xf32> to vector<2x1xf32>
    %351 = vector.broadcast %350 : vector<2x1xf32> to vector<2x16xf32>
    %352 = arith.mulf %351, %29 : vector<2x16xf32>
    %353 = arith.addf %349, %352 : vector<2x16xf32>
    %354 = arith.addf %338, %353 : vector<2x16xf32>
    %355 = arith.negf %354 : vector<2x16xf32>
    %356 = math.exp %355 : vector<2x16xf32>
    %cst_54 = arith.constant 1.000000e+00 : f32
    %357 = vector.broadcast %cst_54 : f32 to vector<2x16xf32>
    %358 = arith.addf %357, %356 : vector<2x16xf32>
    %359 = arith.divf %357, %358 : vector<2x16xf32>
    %360 = math.tanh %354 : vector<2x16xf32>
    %361 = arith.select %17, %360, %359 : vector<2x16xi1>, vector<2x16xf32>
    %362 = vector.extract_strided_slice %361 {offsets = [0, 0], sizes = [2, 4], strides = [1, 1]} : vector<2x16xf32> to vector<2x4xf32>
    %363 = vector.extract_strided_slice %361 {offsets = [0, 4], sizes = [2, 4], strides = [1, 1]} : vector<2x16xf32> to vector<2x4xf32>
    %364 = vector.extract_strided_slice %361 {offsets = [0, 8], sizes = [2, 4], strides = [1, 1]} : vector<2x16xf32> to vector<2x4xf32>
    %365 = vector.extract_strided_slice %361 {offsets = [0, 12], sizes = [2, 4], strides = [1, 1]} : vector<2x16xf32> to vector<2x4xf32>
    %366 = arith.mulf %363, %311 : vector<2x4xf32>
    %367 = arith.mulf %362, %364 : vector<2x4xf32>
    %368 = arith.addf %366, %367 : vector<2x4xf32>
    %369 = math.tanh %368 : vector<2x4xf32>
    %370 = arith.mulf %365, %369 : vector<2x4xf32>
    %c0_55 = arith.constant 0 : index
    %c5 = arith.constant 5 : index
    %c0_56 = arith.constant 0 : index
    %c0_57 = arith.constant 0 : index
    %371 = vector.load %arg8[%c0_55, %c5, %c0_56, %c0_57] : memref<1x12x2x4xf32, #tpu.memory_space<vmem>>, vector<1x1x2x4xf32>
    %372 = vector.shape_cast %371 : vector<1x1x2x4xf32> to vector<2x4xf32>
    %373 = vector.shape_cast %370 : vector<2x4xf32> to vector<1x1x2x4xf32>
    tpu.vector_store %arg8[%c0_55, %c5, %c0_56, %c0_57], %373 {strides = array<i32>} : memref<1x12x2x4xf32, #tpu.memory_space<vmem>>, vector<1x1x2x4xf32>,
    %374 = arith.truncf %336 : vector<2x32xf32> to vector<2x32xbf16>
    %375 = vector.extract_strided_slice %36 {offsets = [14, 0], sizes = [2, 128], strides = [1, 1]} : vector<24x128xf32> to vector<2x128xf32>
    %cst_58 = arith.constant dense<0.000000e+00> : vector<2x128xf32>
    %376 = tpu.matmul %374, %0, %cst_58 {dimension_numbers = #tpu.dot_dimension_numbers<[1], [0], [0], [1], [0, 0, 1, 1], [], []>} : vector<2x32xbf16>, vector<32x128xbf16>, vector<2x128xf32> -> vector<2x128xf32>
    %377 = arith.addf %375, %376 : vector<2x128xf32>
    %378 = arith.negf %377 : vector<2x128xf32>
    %379 = math.exp %378 : vector<2x128xf32>
    %cst_59 = arith.constant 1.000000e+00 : f32
    %380 = vector.broadcast %cst_59 : f32 to vector<2x128xf32>
    %381 = arith.addf %380, %379 : vector<2x128xf32>
    %382 = arith.divf %380, %381 : vector<2x128xf32>
    %383 = math.tanh %377 : vector<2x128xf32>
    %384 = arith.select %11, %383, %382 : vector<2x128xi1>, vector<2x128xf32>
    %385 = vector.extract_strided_slice %384 {offsets = [0, 0], sizes = [2, 32], strides = [1, 1]} : vector<2x128xf32> to vector<2x32xf32>
    %386 = vector.extract_strided_slice %384 {offsets = [0, 32], sizes = [2, 32], strides = [1, 1]} : vector<2x128xf32> to vector<2x32xf32>
    %387 = vector.extract_strided_slice %384 {offsets = [0, 64], sizes = [2, 32], strides = [1, 1]} : vector<2x128xf32> to vector<2x32xf32>
    %388 = vector.extract_strided_slice %384 {offsets = [0, 96], sizes = [2, 32], strides = [1, 1]} : vector<2x128xf32> to vector<2x32xf32>
    %389 = arith.mulf %386, %334 : vector<2x32xf32>
    %390 = arith.mulf %385, %387 : vector<2x32xf32>
    %391 = arith.addf %389, %390 : vector<2x32xf32>
    %392 = math.tanh %391 : vector<2x32xf32>
    %393 = arith.mulf %388, %392 : vector<2x32xf32>
    %cst_60 = arith.constant dense<0.000000e+00> : vector<2x16xf32>
    %394 = tpu.matmul %374, %1, %cst_60 {dimension_numbers = #tpu.dot_dimension_numbers<[1], [0], [0], [1], [0, 0, 1, 1], [], []>} : vector<2x32xbf16>, vector<32x16xbf16>, vector<2x16xf32> -> vector<2x16xf32>
    %395 = arith.addf %394, %5 : vector<2x16xf32>
    %396 = vector.extract_strided_slice %370 {offsets = [0, 0], sizes = [2, 1], strides = [1, 1]} : vector<2x4xf32> to vector<2x1xf32>
    %397 = vector.broadcast %396 : vector<2x1xf32> to vector<2x16xf32>
    %398 = arith.mulf %397, %20 : vector<2x16xf32>
    %399 = vector.extract_strided_slice %370 {offsets = [0, 1], sizes = [2, 1], strides = [1, 1]} : vector<2x4xf32> to vector<2x1xf32>
    %400 = vector.broadcast %399 : vector<2x1xf32> to vector<2x16xf32>
    %401 = arith.mulf %400, %23 : vector<2x16xf32>
    %402 = arith.addf %398, %401 : vector<2x16xf32>
    %403 = vector.extract_strided_slice %370 {offsets = [0, 2], sizes = [2, 1], strides = [1, 1]} : vector<2x4xf32> to vector<2x1xf32>
    %404 = vector.broadcast %403 : vector<2x1xf32> to vector<2x16xf32>
    %405 = arith.mulf %404, %26 : vector<2x16xf32>
    %406 = arith.addf %402, %405 : vector<2x16xf32>
    %407 = vector.extract_strided_slice %370 {offsets = [0, 3], sizes = [2, 1], strides = [1, 1]} : vector<2x4xf32> to vector<2x1xf32>
    %408 = vector.broadcast %407 : vector<2x1xf32> to vector<2x16xf32>
    %409 = arith.mulf %408, %29 : vector<2x16xf32>
    %410 = arith.addf %406, %409 : vector<2x16xf32>
    %411 = arith.addf %395, %410 : vector<2x16xf32>
    %412 = arith.negf %411 : vector<2x16xf32>
    %413 = math.exp %412 : vector<2x16xf32>
    %cst_61 = arith.constant 1.000000e+00 : f32
    %414 = vector.broadcast %cst_61 : f32 to vector<2x16xf32>
    %415 = arith.addf %414, %413 : vector<2x16xf32>
    %416 = arith.divf %414, %415 : vector<2x16xf32>
    %417 = math.tanh %411 : vector<2x16xf32>
    %418 = arith.select %17, %417, %416 : vector<2x16xi1>, vector<2x16xf32>
    %419 = vector.extract_strided_slice %418 {offsets = [0, 0], sizes = [2, 4], strides = [1, 1]} : vector<2x16xf32> to vector<2x4xf32>
    %420 = vector.extract_strided_slice %418 {offsets = [0, 4], sizes = [2, 4], strides = [1, 1]} : vector<2x16xf32> to vector<2x4xf32>
    %421 = vector.extract_strided_slice %418 {offsets = [0, 8], sizes = [2, 4], strides = [1, 1]} : vector<2x16xf32> to vector<2x4xf32>
    %422 = vector.extract_strided_slice %418 {offsets = [0, 12], sizes = [2, 4], strides = [1, 1]} : vector<2x16xf32> to vector<2x4xf32>
    %423 = arith.mulf %420, %368 : vector<2x4xf32>
    %424 = arith.mulf %419, %421 : vector<2x4xf32>
    %425 = arith.addf %423, %424 : vector<2x4xf32>
    %426 = math.tanh %425 : vector<2x4xf32>
    %427 = arith.mulf %422, %426 : vector<2x4xf32>
    %c0_62 = arith.constant 0 : index
    %c6 = arith.constant 6 : index
    %c0_63 = arith.constant 0 : index
    %c0_64 = arith.constant 0 : index
    %428 = vector.load %arg8[%c0_62, %c6, %c0_63, %c0_64] : memref<1x12x2x4xf32, #tpu.memory_space<vmem>>, vector<1x1x2x4xf32>
    %429 = vector.shape_cast %428 : vector<1x1x2x4xf32> to vector<2x4xf32>
    %430 = vector.shape_cast %427 : vector<2x4xf32> to vector<1x1x2x4xf32>
    tpu.vector_store %arg8[%c0_62, %c6, %c0_63, %c0_64], %430 {strides = array<i32>} : memref<1x12x2x4xf32, #tpu.memory_space<vmem>>, vector<1x1x2x4xf32>,
    %431 = arith.truncf %393 : vector<2x32xf32> to vector<2x32xbf16>
    %432 = vector.extract_strided_slice %36 {offsets = [16, 0], sizes = [2, 128], strides = [1, 1]} : vector<24x128xf32> to vector<2x128xf32>
    %cst_65 = arith.constant dense<0.000000e+00> : vector<2x128xf32>
    %433 = tpu.matmul %431, %0, %cst_65 {dimension_numbers = #tpu.dot_dimension_numbers<[1], [0], [0], [1], [0, 0, 1, 1], [], []>} : vector<2x32xbf16>, vector<32x128xbf16>, vector<2x128xf32> -> vector<2x128xf32>
    %434 = arith.addf %432, %433 : vector<2x128xf32>
    %435 = arith.negf %434 : vector<2x128xf32>
    %436 = math.exp %435 : vector<2x128xf32>
    %cst_66 = arith.constant 1.000000e+00 : f32
    %437 = vector.broadcast %cst_66 : f32 to vector<2x128xf32>
    %438 = arith.addf %437, %436 : vector<2x128xf32>
    %439 = arith.divf %437, %438 : vector<2x128xf32>
    %440 = math.tanh %434 : vector<2x128xf32>
    %441 = arith.select %11, %440, %439 : vector<2x128xi1>, vector<2x128xf32>
    %442 = vector.extract_strided_slice %441 {offsets = [0, 0], sizes = [2, 32], strides = [1, 1]} : vector<2x128xf32> to vector<2x32xf32>
    %443 = vector.extract_strided_slice %441 {offsets = [0, 32], sizes = [2, 32], strides = [1, 1]} : vector<2x128xf32> to vector<2x32xf32>
    %444 = vector.extract_strided_slice %441 {offsets = [0, 64], sizes = [2, 32], strides = [1, 1]} : vector<2x128xf32> to vector<2x32xf32>
    %445 = vector.extract_strided_slice %441 {offsets = [0, 96], sizes = [2, 32], strides = [1, 1]} : vector<2x128xf32> to vector<2x32xf32>
    %446 = arith.mulf %443, %391 : vector<2x32xf32>
    %447 = arith.mulf %442, %444 : vector<2x32xf32>
    %448 = arith.addf %446, %447 : vector<2x32xf32>
    %449 = math.tanh %448 : vector<2x32xf32>
    %450 = arith.mulf %445, %449 : vector<2x32xf32>
    %cst_67 = arith.constant dense<0.000000e+00> : vector<2x16xf32>
    %451 = tpu.matmul %431, %1, %cst_67 {dimension_numbers = #tpu.dot_dimension_numbers<[1], [0], [0], [1], [0, 0, 1, 1], [], []>} : vector<2x32xbf16>, vector<32x16xbf16>, vector<2x16xf32> -> vector<2x16xf32>
    %452 = arith.addf %451, %5 : vector<2x16xf32>
    %453 = vector.extract_strided_slice %427 {offsets = [0, 0], sizes = [2, 1], strides = [1, 1]} : vector<2x4xf32> to vector<2x1xf32>
    %454 = vector.broadcast %453 : vector<2x1xf32> to vector<2x16xf32>
    %455 = arith.mulf %454, %20 : vector<2x16xf32>
    %456 = vector.extract_strided_slice %427 {offsets = [0, 1], sizes = [2, 1], strides = [1, 1]} : vector<2x4xf32> to vector<2x1xf32>
    %457 = vector.broadcast %456 : vector<2x1xf32> to vector<2x16xf32>
    %458 = arith.mulf %457, %23 : vector<2x16xf32>
    %459 = arith.addf %455, %458 : vector<2x16xf32>
    %460 = vector.extract_strided_slice %427 {offsets = [0, 2], sizes = [2, 1], strides = [1, 1]} : vector<2x4xf32> to vector<2x1xf32>
    %461 = vector.broadcast %460 : vector<2x1xf32> to vector<2x16xf32>
    %462 = arith.mulf %461, %26 : vector<2x16xf32>
    %463 = arith.addf %459, %462 : vector<2x16xf32>
    %464 = vector.extract_strided_slice %427 {offsets = [0, 3], sizes = [2, 1], strides = [1, 1]} : vector<2x4xf32> to vector<2x1xf32>
    %465 = vector.broadcast %464 : vector<2x1xf32> to vector<2x16xf32>
    %466 = arith.mulf %465, %29 : vector<2x16xf32>
    %467 = arith.addf %463, %466 : vector<2x16xf32>
    %468 = arith.addf %452, %467 : vector<2x16xf32>
    %469 = arith.negf %468 : vector<2x16xf32>
    %470 = math.exp %469 : vector<2x16xf32>
    %cst_68 = arith.constant 1.000000e+00 : f32
    %471 = vector.broadcast %cst_68 : f32 to vector<2x16xf32>
    %472 = arith.addf %471, %470 : vector<2x16xf32>
    %473 = arith.divf %471, %472 : vector<2x16xf32>
    %474 = math.tanh %468 : vector<2x16xf32>
    %475 = arith.select %17, %474, %473 : vector<2x16xi1>, vector<2x16xf32>
    %476 = vector.extract_strided_slice %475 {offsets = [0, 0], sizes = [2, 4], strides = [1, 1]} : vector<2x16xf32> to vector<2x4xf32>
    %477 = vector.extract_strided_slice %475 {offsets = [0, 4], sizes = [2, 4], strides = [1, 1]} : vector<2x16xf32> to vector<2x4xf32>
    %478 = vector.extract_strided_slice %475 {offsets = [0, 8], sizes = [2, 4], strides = [1, 1]} : vector<2x16xf32> to vector<2x4xf32>
    %479 = vector.extract_strided_slice %475 {offsets = [0, 12], sizes = [2, 4], strides = [1, 1]} : vector<2x16xf32> to vector<2x4xf32>
    %480 = arith.mulf %477, %425 : vector<2x4xf32>
    %481 = arith.mulf %476, %478 : vector<2x4xf32>
    %482 = arith.addf %480, %481 : vector<2x4xf32>
    %483 = math.tanh %482 : vector<2x4xf32>
    %484 = arith.mulf %479, %483 : vector<2x4xf32>
    %c0_69 = arith.constant 0 : index
    %c7 = arith.constant 7 : index
    %c0_70 = arith.constant 0 : index
    %c0_71 = arith.constant 0 : index
    %485 = vector.load %arg8[%c0_69, %c7, %c0_70, %c0_71] : memref<1x12x2x4xf32, #tpu.memory_space<vmem>>, vector<1x1x2x4xf32>
    %486 = vector.shape_cast %485 : vector<1x1x2x4xf32> to vector<2x4xf32>
    %487 = vector.shape_cast %484 : vector<2x4xf32> to vector<1x1x2x4xf32>
    tpu.vector_store %arg8[%c0_69, %c7, %c0_70, %c0_71], %487 {strides = array<i32>} : memref<1x12x2x4xf32, #tpu.memory_space<vmem>>, vector<1x1x2x4xf32>,
    %488 = arith.truncf %450 : vector<2x32xf32> to vector<2x32xbf16>
    %489 = vector.extract_strided_slice %36 {offsets = [18, 0], sizes = [2, 128], strides = [1, 1]} : vector<24x128xf32> to vector<2x128xf32>
    %cst_72 = arith.constant dense<0.000000e+00> : vector<2x128xf32>
    %490 = tpu.matmul %488, %0, %cst_72 {dimension_numbers = #tpu.dot_dimension_numbers<[1], [0], [0], [1], [0, 0, 1, 1], [], []>} : vector<2x32xbf16>, vector<32x128xbf16>, vector<2x128xf32> -> vector<2x128xf32>
    %491 = arith.addf %489, %490 : vector<2x128xf32>
    %492 = arith.negf %491 : vector<2x128xf32>
    %493 = math.exp %492 : vector<2x128xf32>
    %cst_73 = arith.constant 1.000000e+00 : f32
    %494 = vector.broadcast %cst_73 : f32 to vector<2x128xf32>
    %495 = arith.addf %494, %493 : vector<2x128xf32>
    %496 = arith.divf %494, %495 : vector<2x128xf32>
    %497 = math.tanh %491 : vector<2x128xf32>
    %498 = arith.select %11, %497, %496 : vector<2x128xi1>, vector<2x128xf32>
    %499 = vector.extract_strided_slice %498 {offsets = [0, 0], sizes = [2, 32], strides = [1, 1]} : vector<2x128xf32> to vector<2x32xf32>
    %500 = vector.extract_strided_slice %498 {offsets = [0, 32], sizes = [2, 32], strides = [1, 1]} : vector<2x128xf32> to vector<2x32xf32>
    %501 = vector.extract_strided_slice %498 {offsets = [0, 64], sizes = [2, 32], strides = [1, 1]} : vector<2x128xf32> to vector<2x32xf32>
    %502 = vector.extract_strided_slice %498 {offsets = [0, 96], sizes = [2, 32], strides = [1, 1]} : vector<2x128xf32> to vector<2x32xf32>
    %503 = arith.mulf %500, %448 : vector<2x32xf32>
    %504 = arith.mulf %499, %501 : vector<2x32xf32>
    %505 = arith.addf %503, %504 : vector<2x32xf32>
    %506 = math.tanh %505 : vector<2x32xf32>
    %507 = arith.mulf %502, %506 : vector<2x32xf32>
    %cst_74 = arith.constant dense<0.000000e+00> : vector<2x16xf32>
    %508 = tpu.matmul %488, %1, %cst_74 {dimension_numbers = #tpu.dot_dimension_numbers<[1], [0], [0], [1], [0, 0, 1, 1], [], []>} : vector<2x32xbf16>, vector<32x16xbf16>, vector<2x16xf32> -> vector<2x16xf32>
    %509 = arith.addf %508, %5 : vector<2x16xf32>
    %510 = vector.extract_strided_slice %484 {offsets = [0, 0], sizes = [2, 1], strides = [1, 1]} : vector<2x4xf32> to vector<2x1xf32>
    %511 = vector.broadcast %510 : vector<2x1xf32> to vector<2x16xf32>
    %512 = arith.mulf %511, %20 : vector<2x16xf32>
    %513 = vector.extract_strided_slice %484 {offsets = [0, 1], sizes = [2, 1], strides = [1, 1]} : vector<2x4xf32> to vector<2x1xf32>
    %514 = vector.broadcast %513 : vector<2x1xf32> to vector<2x16xf32>
    %515 = arith.mulf %514, %23 : vector<2x16xf32>
    %516 = arith.addf %512, %515 : vector<2x16xf32>
    %517 = vector.extract_strided_slice %484 {offsets = [0, 2], sizes = [2, 1], strides = [1, 1]} : vector<2x4xf32> to vector<2x1xf32>
    %518 = vector.broadcast %517 : vector<2x1xf32> to vector<2x16xf32>
    %519 = arith.mulf %518, %26 : vector<2x16xf32>
    %520 = arith.addf %516, %519 : vector<2x16xf32>
    %521 = vector.extract_strided_slice %484 {offsets = [0, 3], sizes = [2, 1], strides = [1, 1]} : vector<2x4xf32> to vector<2x1xf32>
    %522 = vector.broadcast %521 : vector<2x1xf32> to vector<2x16xf32>
    %523 = arith.mulf %522, %29 : vector<2x16xf32>
    %524 = arith.addf %520, %523 : vector<2x16xf32>
    %525 = arith.addf %509, %524 : vector<2x16xf32>
    %526 = arith.negf %525 : vector<2x16xf32>
    %527 = math.exp %526 : vector<2x16xf32>
    %cst_75 = arith.constant 1.000000e+00 : f32
    %528 = vector.broadcast %cst_75 : f32 to vector<2x16xf32>
    %529 = arith.addf %528, %527 : vector<2x16xf32>
    %530 = arith.divf %528, %529 : vector<2x16xf32>
    %531 = math.tanh %525 : vector<2x16xf32>
    %532 = arith.select %17, %531, %530 : vector<2x16xi1>, vector<2x16xf32>
    %533 = vector.extract_strided_slice %532 {offsets = [0, 0], sizes = [2, 4], strides = [1, 1]} : vector<2x16xf32> to vector<2x4xf32>
    %534 = vector.extract_strided_slice %532 {offsets = [0, 4], sizes = [2, 4], strides = [1, 1]} : vector<2x16xf32> to vector<2x4xf32>
    %535 = vector.extract_strided_slice %532 {offsets = [0, 8], sizes = [2, 4], strides = [1, 1]} : vector<2x16xf32> to vector<2x4xf32>
    %536 = vector.extract_strided_slice %532 {offsets = [0, 12], sizes = [2, 4], strides = [1, 1]} : vector<2x16xf32> to vector<2x4xf32>
    %537 = arith.mulf %534, %482 : vector<2x4xf32>
    %538 = arith.mulf %533, %535 : vector<2x4xf32>
    %539 = arith.addf %537, %538 : vector<2x4xf32>
    %540 = math.tanh %539 : vector<2x4xf32>
    %541 = arith.mulf %536, %540 : vector<2x4xf32>
    %c0_76 = arith.constant 0 : index
    %c8 = arith.constant 8 : index
    %c0_77 = arith.constant 0 : index
    %c0_78 = arith.constant 0 : index
    %542 = vector.load %arg8[%c0_76, %c8, %c0_77, %c0_78] : memref<1x12x2x4xf32, #tpu.memory_space<vmem>>, vector<1x1x2x4xf32>
    %543 = vector.shape_cast %542 : vector<1x1x2x4xf32> to vector<2x4xf32>
    %544 = vector.shape_cast %541 : vector<2x4xf32> to vector<1x1x2x4xf32>
    tpu.vector_store %arg8[%c0_76, %c8, %c0_77, %c0_78], %544 {strides = array<i32>} : memref<1x12x2x4xf32, #tpu.memory_space<vmem>>, vector<1x1x2x4xf32>,
    %545 = arith.truncf %507 : vector<2x32xf32> to vector<2x32xbf16>
    %546 = vector.extract_strided_slice %36 {offsets = [20, 0], sizes = [2, 128], strides = [1, 1]} : vector<24x128xf32> to vector<2x128xf32>
    %cst_79 = arith.constant dense<0.000000e+00> : vector<2x128xf32>
    %547 = tpu.matmul %545, %0, %cst_79 {dimension_numbers = #tpu.dot_dimension_numbers<[1], [0], [0], [1], [0, 0, 1, 1], [], []>} : vector<2x32xbf16>, vector<32x128xbf16>, vector<2x128xf32> -> vector<2x128xf32>
    %548 = arith.addf %546, %547 : vector<2x128xf32>
    %549 = arith.negf %548 : vector<2x128xf32>
    %550 = math.exp %549 : vector<2x128xf32>
    %cst_80 = arith.constant 1.000000e+00 : f32
    %551 = vector.broadcast %cst_80 : f32 to vector<2x128xf32>
    %552 = arith.addf %551, %550 : vector<2x128xf32>
    %553 = arith.divf %551, %552 : vector<2x128xf32>
    %554 = math.tanh %548 : vector<2x128xf32>
    %555 = arith.select %11, %554, %553 : vector<2x128xi1>, vector<2x128xf32>
    %556 = vector.extract_strided_slice %555 {offsets = [0, 0], sizes = [2, 32], strides = [1, 1]} : vector<2x128xf32> to vector<2x32xf32>
    %557 = vector.extract_strided_slice %555 {offsets = [0, 32], sizes = [2, 32], strides = [1, 1]} : vector<2x128xf32> to vector<2x32xf32>
    %558 = vector.extract_strided_slice %555 {offsets = [0, 64], sizes = [2, 32], strides = [1, 1]} : vector<2x128xf32> to vector<2x32xf32>
    %559 = vector.extract_strided_slice %555 {offsets = [0, 96], sizes = [2, 32], strides = [1, 1]} : vector<2x128xf32> to vector<2x32xf32>
    %560 = arith.mulf %557, %505 : vector<2x32xf32>
    %561 = arith.mulf %556, %558 : vector<2x32xf32>
    %562 = arith.addf %560, %561 : vector<2x32xf32>
    %563 = math.tanh %562 : vector<2x32xf32>
    %564 = arith.mulf %559, %563 : vector<2x32xf32>
    %cst_81 = arith.constant dense<0.000000e+00> : vector<2x16xf32>
    %565 = tpu.matmul %545, %1, %cst_81 {dimension_numbers = #tpu.dot_dimension_numbers<[1], [0], [0], [1], [0, 0, 1, 1], [], []>} : vector<2x32xbf16>, vector<32x16xbf16>, vector<2x16xf32> -> vector<2x16xf32>
    %566 = arith.addf %565, %5 : vector<2x16xf32>
    %567 = vector.extract_strided_slice %541 {offsets = [0, 0], sizes = [2, 1], strides = [1, 1]} : vector<2x4xf32> to vector<2x1xf32>
    %568 = vector.broadcast %567 : vector<2x1xf32> to vector<2x16xf32>
    %569 = arith.mulf %568, %20 : vector<2x16xf32>
    %570 = vector.extract_strided_slice %541 {offsets = [0, 1], sizes = [2, 1], strides = [1, 1]} : vector<2x4xf32> to vector<2x1xf32>
    %571 = vector.broadcast %570 : vector<2x1xf32> to vector<2x16xf32>
    %572 = arith.mulf %571, %23 : vector<2x16xf32>
    %573 = arith.addf %569, %572 : vector<2x16xf32>
    %574 = vector.extract_strided_slice %541 {offsets = [0, 2], sizes = [2, 1], strides = [1, 1]} : vector<2x4xf32> to vector<2x1xf32>
    %575 = vector.broadcast %574 : vector<2x1xf32> to vector<2x16xf32>
    %576 = arith.mulf %575, %26 : vector<2x16xf32>
    %577 = arith.addf %573, %576 : vector<2x16xf32>
    %578 = vector.extract_strided_slice %541 {offsets = [0, 3], sizes = [2, 1], strides = [1, 1]} : vector<2x4xf32> to vector<2x1xf32>
    %579 = vector.broadcast %578 : vector<2x1xf32> to vector<2x16xf32>
    %580 = arith.mulf %579, %29 : vector<2x16xf32>
    %581 = arith.addf %577, %580 : vector<2x16xf32>
    %582 = arith.addf %566, %581 : vector<2x16xf32>
    %583 = arith.negf %582 : vector<2x16xf32>
    %584 = math.exp %583 : vector<2x16xf32>
    %cst_82 = arith.constant 1.000000e+00 : f32
    %585 = vector.broadcast %cst_82 : f32 to vector<2x16xf32>
    %586 = arith.addf %585, %584 : vector<2x16xf32>
    %587 = arith.divf %585, %586 : vector<2x16xf32>
    %588 = math.tanh %582 : vector<2x16xf32>
    %589 = arith.select %17, %588, %587 : vector<2x16xi1>, vector<2x16xf32>
    %590 = vector.extract_strided_slice %589 {offsets = [0, 0], sizes = [2, 4], strides = [1, 1]} : vector<2x16xf32> to vector<2x4xf32>
    %591 = vector.extract_strided_slice %589 {offsets = [0, 4], sizes = [2, 4], strides = [1, 1]} : vector<2x16xf32> to vector<2x4xf32>
    %592 = vector.extract_strided_slice %589 {offsets = [0, 8], sizes = [2, 4], strides = [1, 1]} : vector<2x16xf32> to vector<2x4xf32>
    %593 = vector.extract_strided_slice %589 {offsets = [0, 12], sizes = [2, 4], strides = [1, 1]} : vector<2x16xf32> to vector<2x4xf32>
    %594 = arith.mulf %591, %539 : vector<2x4xf32>
    %595 = arith.mulf %590, %592 : vector<2x4xf32>
    %596 = arith.addf %594, %595 : vector<2x4xf32>
    %597 = math.tanh %596 : vector<2x4xf32>
    %598 = arith.mulf %593, %597 : vector<2x4xf32>
    %c0_83 = arith.constant 0 : index
    %c9 = arith.constant 9 : index
    %c0_84 = arith.constant 0 : index
    %c0_85 = arith.constant 0 : index
    %599 = vector.load %arg8[%c0_83, %c9, %c0_84, %c0_85] : memref<1x12x2x4xf32, #tpu.memory_space<vmem>>, vector<1x1x2x4xf32>
    %600 = vector.shape_cast %599 : vector<1x1x2x4xf32> to vector<2x4xf32>
    %601 = vector.shape_cast %598 : vector<2x4xf32> to vector<1x1x2x4xf32>
    tpu.vector_store %arg8[%c0_83, %c9, %c0_84, %c0_85], %601 {strides = array<i32>} : memref<1x12x2x4xf32, #tpu.memory_space<vmem>>, vector<1x1x2x4xf32>,
    %602 = arith.truncf %564 : vector<2x32xf32> to vector<2x32xbf16>
    %603 = vector.extract_strided_slice %36 {offsets = [22, 0], sizes = [2, 128], strides = [1, 1]} : vector<24x128xf32> to vector<2x128xf32>
    %cst_86 = arith.constant dense<0.000000e+00> : vector<2x128xf32>
    %604 = tpu.matmul %602, %0, %cst_86 {dimension_numbers = #tpu.dot_dimension_numbers<[1], [0], [0], [1], [0, 0, 1, 1], [], []>} : vector<2x32xbf16>, vector<32x128xbf16>, vector<2x128xf32> -> vector<2x128xf32>
    %605 = arith.addf %603, %604 : vector<2x128xf32>
    %606 = arith.negf %605 : vector<2x128xf32>
    %607 = math.exp %606 : vector<2x128xf32>
    %cst_87 = arith.constant 1.000000e+00 : f32
    %608 = vector.broadcast %cst_87 : f32 to vector<2x128xf32>
    %609 = arith.addf %608, %607 : vector<2x128xf32>
    %610 = arith.divf %608, %609 : vector<2x128xf32>
    %611 = math.tanh %605 : vector<2x128xf32>
    %612 = arith.select %11, %611, %610 : vector<2x128xi1>, vector<2x128xf32>
    %613 = vector.extract_strided_slice %612 {offsets = [0, 0], sizes = [2, 32], strides = [1, 1]} : vector<2x128xf32> to vector<2x32xf32>
    %614 = vector.extract_strided_slice %612 {offsets = [0, 32], sizes = [2, 32], strides = [1, 1]} : vector<2x128xf32> to vector<2x32xf32>
    %615 = vector.extract_strided_slice %612 {offsets = [0, 64], sizes = [2, 32], strides = [1, 1]} : vector<2x128xf32> to vector<2x32xf32>
    %616 = vector.extract_strided_slice %612 {offsets = [0, 96], sizes = [2, 32], strides = [1, 1]} : vector<2x128xf32> to vector<2x32xf32>
    %617 = arith.mulf %614, %562 : vector<2x32xf32>
    %618 = arith.mulf %613, %615 : vector<2x32xf32>
    %619 = arith.addf %617, %618 : vector<2x32xf32>
    %620 = math.tanh %619 : vector<2x32xf32>
    %621 = arith.mulf %616, %620 : vector<2x32xf32>
    %cst_88 = arith.constant dense<0.000000e+00> : vector<2x16xf32>
    %622 = tpu.matmul %602, %1, %cst_88 {dimension_numbers = #tpu.dot_dimension_numbers<[1], [0], [0], [1], [0, 0, 1, 1], [], []>} : vector<2x32xbf16>, vector<32x16xbf16>, vector<2x16xf32> -> vector<2x16xf32>
    %623 = arith.addf %622, %5 : vector<2x16xf32>
    %624 = vector.extract_strided_slice %598 {offsets = [0, 0], sizes = [2, 1], strides = [1, 1]} : vector<2x4xf32> to vector<2x1xf32>
    %625 = vector.broadcast %624 : vector<2x1xf32> to vector<2x16xf32>
    %626 = arith.mulf %625, %20 : vector<2x16xf32>
    %627 = vector.extract_strided_slice %598 {offsets = [0, 1], sizes = [2, 1], strides = [1, 1]} : vector<2x4xf32> to vector<2x1xf32>
    %628 = vector.broadcast %627 : vector<2x1xf32> to vector<2x16xf32>
    %629 = arith.mulf %628, %23 : vector<2x16xf32>
    %630 = arith.addf %626, %629 : vector<2x16xf32>
    %631 = vector.extract_strided_slice %598 {offsets = [0, 2], sizes = [2, 1], strides = [1, 1]} : vector<2x4xf32> to vector<2x1xf32>
    %632 = vector.broadcast %631 : vector<2x1xf32> to vector<2x16xf32>
    %633 = arith.mulf %632, %26 : vector<2x16xf32>
    %634 = arith.addf %630, %633 : vector<2x16xf32>
    %635 = vector.extract_strided_slice %598 {offsets = [0, 3], sizes = [2, 1], strides = [1, 1]} : vector<2x4xf32> to vector<2x1xf32>
    %636 = vector.broadcast %635 : vector<2x1xf32> to vector<2x16xf32>
    %637 = arith.mulf %636, %29 : vector<2x16xf32>
    %638 = arith.addf %634, %637 : vector<2x16xf32>
    %639 = arith.addf %623, %638 : vector<2x16xf32>
    %640 = arith.negf %639 : vector<2x16xf32>
    %641 = math.exp %640 : vector<2x16xf32>
    %cst_89 = arith.constant 1.000000e+00 : f32
    %642 = vector.broadcast %cst_89 : f32 to vector<2x16xf32>
    %643 = arith.addf %642, %641 : vector<2x16xf32>
    %644 = arith.divf %642, %643 : vector<2x16xf32>
    %645 = math.tanh %639 : vector<2x16xf32>
    %646 = arith.select %17, %645, %644 : vector<2x16xi1>, vector<2x16xf32>
    %647 = vector.extract_strided_slice %646 {offsets = [0, 0], sizes = [2, 4], strides = [1, 1]} : vector<2x16xf32> to vector<2x4xf32>
    %648 = vector.extract_strided_slice %646 {offsets = [0, 4], sizes = [2, 4], strides = [1, 1]} : vector<2x16xf32> to vector<2x4xf32>
    %649 = vector.extract_strided_slice %646 {offsets = [0, 8], sizes = [2, 4], strides = [1, 1]} : vector<2x16xf32> to vector<2x4xf32>
    %650 = vector.extract_strided_slice %646 {offsets = [0, 12], sizes = [2, 4], strides = [1, 1]} : vector<2x16xf32> to vector<2x4xf32>
    %651 = arith.mulf %648, %596 : vector<2x4xf32>
    %652 = arith.mulf %647, %649 : vector<2x4xf32>
    %653 = arith.addf %651, %652 : vector<2x4xf32>
    %654 = math.tanh %653 : vector<2x4xf32>
    %655 = arith.mulf %650, %654 : vector<2x4xf32>
    %c0_90 = arith.constant 0 : index
    %c10 = arith.constant 10 : index
    %c0_91 = arith.constant 0 : index
    %c0_92 = arith.constant 0 : index
    %656 = vector.load %arg8[%c0_90, %c10, %c0_91, %c0_92] : memref<1x12x2x4xf32, #tpu.memory_space<vmem>>, vector<1x1x2x4xf32>
    %657 = vector.shape_cast %656 : vector<1x1x2x4xf32> to vector<2x4xf32>
    %658 = vector.shape_cast %655 : vector<2x4xf32> to vector<1x1x2x4xf32>
    tpu.vector_store %arg8[%c0_90, %c10, %c0_91, %c0_92], %658 {strides = array<i32>} : memref<1x12x2x4xf32, #tpu.memory_space<vmem>>, vector<1x1x2x4xf32>,
    %659 = arith.truncf %621 : vector<2x32xf32> to vector<2x32xbf16>
    %cst_93 = arith.constant dense<0.000000e+00> : vector<2x16xf32>
    %660 = tpu.matmul %659, %1, %cst_93 {dimension_numbers = #tpu.dot_dimension_numbers<[1], [0], [0], [1], [0, 0, 1, 1], [], []>} : vector<2x32xbf16>, vector<32x16xbf16>, vector<2x16xf32> -> vector<2x16xf32>
    %661 = arith.addf %660, %5 : vector<2x16xf32>
    %662 = vector.extract_strided_slice %655 {offsets = [0, 0], sizes = [2, 1], strides = [1, 1]} : vector<2x4xf32> to vector<2x1xf32>
    %663 = vector.broadcast %662 : vector<2x1xf32> to vector<2x16xf32>
    %664 = arith.mulf %663, %20 : vector<2x16xf32>
    %665 = vector.extract_strided_slice %655 {offsets = [0, 1], sizes = [2, 1], strides = [1, 1]} : vector<2x4xf32> to vector<2x1xf32>
    %666 = vector.broadcast %665 : vector<2x1xf32> to vector<2x16xf32>
    %667 = arith.mulf %666, %23 : vector<2x16xf32>
    %668 = arith.addf %664, %667 : vector<2x16xf32>
    %669 = vector.extract_strided_slice %655 {offsets = [0, 2], sizes = [2, 1], strides = [1, 1]} : vector<2x4xf32> to vector<2x1xf32>
    %670 = vector.broadcast %669 : vector<2x1xf32> to vector<2x16xf32>
    %671 = arith.mulf %670, %26 : vector<2x16xf32>
    %672 = arith.addf %668, %671 : vector<2x16xf32>
    %673 = vector.extract_strided_slice %655 {offsets = [0, 3], sizes = [2, 1], strides = [1, 1]} : vector<2x4xf32> to vector<2x1xf32>
    %674 = vector.broadcast %673 : vector<2x1xf32> to vector<2x16xf32>
    %675 = arith.mulf %674, %29 : vector<2x16xf32>
    %676 = arith.addf %672, %675 : vector<2x16xf32>
    %677 = arith.addf %661, %676 : vector<2x16xf32>
    %678 = arith.negf %677 : vector<2x16xf32>
    %679 = math.exp %678 : vector<2x16xf32>
    %cst_94 = arith.constant 1.000000e+00 : f32
    %680 = vector.broadcast %cst_94 : f32 to vector<2x16xf32>
    %681 = arith.addf %680, %679 : vector<2x16xf32>
    %682 = arith.divf %680, %681 : vector<2x16xf32>
    %683 = math.tanh %677 : vector<2x16xf32>
    %684 = arith.select %17, %683, %682 : vector<2x16xi1>, vector<2x16xf32>
    %685 = vector.extract_strided_slice %684 {offsets = [0, 0], sizes = [2, 4], strides = [1, 1]} : vector<2x16xf32> to vector<2x4xf32>
    %686 = vector.extract_strided_slice %684 {offsets = [0, 4], sizes = [2, 4], strides = [1, 1]} : vector<2x16xf32> to vector<2x4xf32>
    %687 = vector.extract_strided_slice %684 {offsets = [0, 8], sizes = [2, 4], strides = [1, 1]} : vector<2x16xf32> to vector<2x4xf32>
    %688 = vector.extract_strided_slice %684 {offsets = [0, 12], sizes = [2, 4], strides = [1, 1]} : vector<2x16xf32> to vector<2x4xf32>
    %689 = arith.mulf %686, %653 : vector<2x4xf32>
    %690 = arith.mulf %685, %687 : vector<2x4xf32>
    %691 = arith.addf %689, %690 : vector<2x4xf32>
    %692 = math.tanh %691 : vector<2x4xf32>
    %693 = arith.mulf %688, %692 : vector<2x4xf32>
    %c0_95 = arith.constant 0 : index
    %c11 = arith.constant 11 : index
    %c0_96 = arith.constant 0 : index
    %c0_97 = arith.constant 0 : index
    %694 = vector.load %arg8[%c0_95, %c11, %c0_96, %c0_97] : memref<1x12x2x4xf32, #tpu.memory_space<vmem>>, vector<1x1x2x4xf32>
    %695 = vector.shape_cast %694 : vector<1x1x2x4xf32> to vector<2x4xf32>
    %696 = vector.shape_cast %693 : vector<2x4xf32> to vector<1x1x2x4xf32>
    tpu.vector_store %arg8[%c0_95, %c11, %c0_96, %c0_97], %696 {strides = array<i32>} : memref<1x12x2x4xf32, #tpu.memory_space<vmem>>, vector<1x1x2x4xf32>,
    return
  }
  func.func @transform_0(%arg0: i32) -> (i32, i32, i32) {
    %c0_i32 = arith.constant 0 : i32
    %c0_i32_0 = arith.constant 0 : i32
    %c0_i32_1 = arith.constant 0 : i32
    return %arg0, %c0_i32, %c0_i32_0 : i32, i32, i32
  }
  func.func @transform_1(%arg0: i32) -> (i32, i32) {
    %c0_i32 = arith.constant 0 : i32
    %c0_i32_0 = arith.constant 0 : i32
    %c0_i32_1 = arith.constant 0 : i32
    return %c0_i32, %c0_i32_0 : i32, i32
  }
  func.func @transform_2(%arg0: i32) -> (i32, i32) {
    %c0_i32 = arith.constant 0 : i32
    %c0_i32_0 = arith.constant 0 : i32
    %c0_i32_1 = arith.constant 0 : i32
    return %c0_i32, %c0_i32_0 : i32, i32
  }
  func.func @transform_3(%arg0: i32) -> (i32, i32) {
    %c0_i32 = arith.constant 0 : i32
    %c0_i32_0 = arith.constant 0 : i32
    %c0_i32_1 = arith.constant 0 : i32
    return %c0_i32, %c0_i32_0 : i32, i32
  }
  func.func @transform_4(%arg0: i32) -> (i32, i32) {
    %c0_i32 = arith.constant 0 : i32
    %c0_i32_0 = arith.constant 0 : i32
    %c0_i32_1 = arith.constant 0 : i32
    return %c0_i32, %c0_i32_0 : i32, i32
  }
  func.func @transform_5(%arg0: i32) -> (i32, i32) {
    %c0_i32 = arith.constant 0 : i32
    %c0_i32_0 = arith.constant 0 : i32
    %c0_i32_1 = arith.constant 0 : i32
    return %c0_i32, %c0_i32_0 : i32, i32
  }
  func.func @transform_6(%arg0: i32) -> (i32, i32) {
    %c0_i32 = arith.constant 0 : i32
    %c0_i32_0 = arith.constant 0 : i32
    %c0_i32_1 = arith.constant 0 : i32
    return %c0_i32, %c0_i32_0 : i32, i32
  }
  func.func @transform_7(%arg0: i32) -> (i32, i32, i32, i32) {
    %c0_i32 = arith.constant 0 : i32
    %c0_i32_0 = arith.constant 0 : i32
    %c0_i32_1 = arith.constant 0 : i32
    %c0_i32_2 = arith.constant 0 : i32
    return %arg0, %c0_i32, %c0_i32_0, %c0_i32_1 : i32, i32, i32, i32
  }
}

</mosaic_0001>

<bundles_post_ra>
// kernel: mann_forward.1
= control target key start
LH: loop header
LB: loop body
LE: loop exit
PB: predicated region body
PF: predicated region fallthrough
CT: control target
= control target key end

     0   :  { %v40_v15 = vlaneseq  ;;  %s2260_s21 = smov 32   ;;  %s2261_s22 = smov 96   ;;  %vm199_vm7 = vcmask 261120   ;;  %s2972_s1 = inlined_call_operand.vmem [shape: bf16[128,128], index: 1, kind: input, shape index: {}]   ;;  %s2973_s3 = inlined_call_operand.vmem [shape: f32[1,128], index: 3, kind: input, shape index: {}]   ;;  %s2974_s0 = inlined_call_operand.vmem [shape: bf16[1,24,128], index: 0, kind: input, shape index: {}]   ;;  %s2975_s2 = inlined_call_operand.vmem [shape: bf16[32,128], index: 2, kind: input, shape index: {}]   ;;  %s2976_s4 = inlined_call_operand.vmem [shape: bf16[32,16], index: 4, kind: input, shape index: {}]   ;;  %s2977_s6 = inlined_call_operand.vmem [shape: f32[1,16], index: 6, kind: input, shape index: {}]   ;;  %s2978_s5 = inlined_call_operand.vmem [shape: f32[4,16], index: 5, kind: input, shape index: {}]   ;;  %s2979_s7 = inlined_call_operand.vmem [shape: f32[1,12,2,4], index: 7, kind: output, shape index: {}]  }
   0x1   :  { %v2007_v0 = vld [vmem:[%s2972_s1 + $0x38] sm:$0xff]  ;;  %v2006_v1 = vld [vmem:[%s2972_s1 + $0x30] sm:$0xff]  ;;  %v2005_v2 = vld [vmem:[%s2972_s1 + $0x28] sm:$0xff]  ;;  %s2262_s9 = smov 120   ;;  %s2263_s10 = smov 12  }
   0x2   :  { %133 = vmatpush.bf16.msra.mxu0 %v2007_v0  ;;  %v2004_v3 = vld [vmem:[%s2972_s1 + $0x20] sm:$0xff]  ;;  %v2003_v4 = vld [vmem:[%s2972_s1 + $0x18] sm:$0xff]  ;;  %v2002_v5 = vld [vmem:[%s2972_s1 + $0x10] sm:$0xff]  ;;  %v2347_v17 = vand.u32 127, %v40_v15  ;;  %s2268_s11 = smov 4  }
   0x3   :  { %v2001_v6 = vld [vmem:[%s2972_s1 + $0x8] sm:$0xff]  ;;  %v2000_v7 = vld [vmem:[%s2972_s1] sm:$0xff]  ;;  %s2259_s1 = smov 64  }
   0x4   :  { %v1999_v8 = vld [vmem:[%s2974_s0] sm:$0xff]  ;;  %vm42_vm0 = vcmp.ge.s32.totalorder %v2347_v17, 64  ;;  %vm43_vm1 = vcmp.lt.s32.totalorder %v2347_v17, 96  ;;  %v2363_v34 = vld [vmem:[%s2975_s2 + $0x8] sm:$0xff] }
   0x5   :  { %v2341_v9 = vld [vmem:[%s2973_s3] ss:$0 sm:$0xff]  ;;  %vm2352_vm3 = vmand %vm42_vm0, %vm43_vm1  ;;  %v2368_v35 = vld [vmem:[%s2976_s4 + $0x8] sm:$0xff]  ;;  %209 = vmatpush.bf16.msra.mxu1 %v2363_v34  ;;  %340 = vmatpush.bf16.msra.mxu3 %v2363_v34 }
   0x6   :  { %134 = vmatpush.bf16.msra.mxu0 %v2006_v1  ;;  %281 = vmatpush.bf16.msra.mxu2 %v2368_v35  ;;  %v2375_v36 = vld [vmem:[%s2975_s2] sm:$0xff] }
   0x7   :  { %v2380_v37 = vld [vmem:[%s2976_s4] sm:$0xff] }
   0x9   :  { %210 = vmatpush.bf16.msra.mxu1 %v2375_v36  ;;  %341 = vmatpush.bf16.msra.mxu3 %v2375_v36 }
   0xa   :  { %135 = vmatpush.bf16.msra.mxu0 %v2005_v2  ;;  %282 = vmatpush.bf16.msra.mxu2 %v2380_v37 }
   0xd   :  { %398 = vmatpush.bf16.msrb.mxu1 %v2368_v35  ;;  %549 = vmatpush.bf16.msrb.mxu3 %v2368_v35 }
   0xe   :  { %136 = vmatpush.bf16.msra.mxu0 %v2004_v3  ;;  %491 = vmatpush.bf16.msrb.mxu2 %v2363_v34 }
  0x11   :  { %399 = vmatpush.bf16.msrb.mxu1 %v2380_v37  ;;  %550 = vmatpush.bf16.msrb.mxu3 %v2380_v37 }
  0x12   :  { %137 = vmatpush.bf16.msra.mxu0 %v2003_v4  ;;  %492 = vmatpush.bf16.msrb.mxu2 %v2375_v36 }
  0x16   :  { %138 = vmatpush.bf16.msra.mxu0 %v2002_v5 }
  0x1a   :  { %139 = vmatpush.bf16.msra.mxu0 %v2001_v6 }
  0x1e   :  { %140 = vmatpush.bf16.msra.mxu0 %v2000_v7 }
  0x21   :  { %141 = vmatmul.bf16.vlgmr.msra.gmra.mxu0 %v1999_v8 }
  0x22   :  { %1075 = vmatpush.bf16.msrb.mxu0 %v2363_v34 }
  0x26   :  { %1076 = vmatpush.bf16.msrb.mxu0 %v2375_v36 }
  0x2a   :  { %1365 = vmatpush.bf16.msra.mxu0 %v2363_v34 }
  0x2e   :  { %1366 = vmatpush.bf16.msra.mxu0 %v2375_v36 }
  0x9e   :  { %v142_v10 = vpop.f32.mrf.mxu0 }
  0x9f   :  { %v2344_v11 = vadd.f32 %v2341_v9, %v142_v10 }
  0xa1   :  { %v1921_v12 = vmul.f32 -1.442695, %v2344_v11 }
  0xa3   :  { %2063 = vpow2.f32 %v1921_v12 }
  0xa9   :  { %v2064_v13 = vpop.eup %2063 }
  0xaa   :  { %v154_v14 = vadd.f32 1.0, %v2064_v13 }
  0xac   :  { %2065 = vrcp.f32 %v154_v14  ;;  %v166_v20 = vand.u32 2147483648, %v154_v14  ;;  %v164_v22 = vand.u32 2147483647, %v154_v14  ;;  %vm160_vm4 = vweird.f32 %v154_v14 }
  0xad   :  { %2067 = vtanh.f32 %v2344_v11 }
  0xae   :  { %v167_v25 = vor.u32 1.1754944e-38, %v166_v20  ;;  %vm165_vm6 = vcmp.eq.f32.partialorder %v164_v22, 8.507059e+37 }
  0xb2   :  { %v2066_v16 = vpop.eup %2065 }
  0xb3   :  { %v156_v18 = vmul.f32 %v2066_v16, %v154_v14  ;;  %vm161_vm2 = vweird.f32 %v2066_v16  ;;  %v2068_v27 = vpop.eup %2067 }
  0xb4   :  { %vm162_vm5 = vmor %vm160_vm4, %vm161_vm2 }
  0xb5   :  { %v157_v19 = vsub.f32 1.0, %v156_v18 }
  0xb7   :  { %v158_v21 = vmul.f32 %v2066_v16, %v157_v19 }
  0xb9   :  { %v159_v24 = vadd.f32 %v2066_v16, %v158_v21 }
  0xbb   :  { %v163_v26 = vsel %vm162_vm5, %v2066_v16, %v159_v24 }
  0xbc   :  { %v168_v28 = vsel %vm165_vm6, %v167_v25, %v163_v26 }
  0xbd   :  { %v171_v29 = vsel %vm2352_vm3, %v2068_v27, %v168_v28 }
  0xbe   :  { %173 = vrot.lane.b32.xlu0 %v171_v29, %s2259_s1 }
 0x130   :  { %v174_v30 = vpop.permute.xlu0 %173 }
 0x131   :  { %v176_v31 = vmul.f32 %v174_v30, %v171_v29 }
 0x133   :  { %2069 = vtanh.f32 %v176_v31  ;;  %v242_v32 = vrot.slane %v176_v31, 6 }
 0x135   :  { %243 = vrot.lane.b32.xlu2 %v242_v32, %s2260_s21 }
 0x139   :  { %v2070_v33 = vpop.eup %2069 }
 0x13a   :  { %179 = vrot.lane.b32.xlu0 %v2070_v33, %s2261_s22 }
 0x18f   :  { %v244_v1 = vpop.permute.xlu2 %243 }
 0x1ac   :  { %v180_v38 = vpop.permute.xlu0 %179 }
 0x1ad   :  { %v182_v39 = vmul.f32 %v180_v38, %v171_v29 }
 0x1af   :  { %v183_v40 = vpack.c.bf16 %v182_v39, %v182_v39 }
 0x1b1   :  { %185 = vrot.lane.b32.xlu1 %v183_v40, %s2260_s21 }
 0x223   :  { %v186_v41 = vpop.permute.xlu1 %185 }
 0x224   :  { %1930 = vmatmul.msk.bf16.vlgmr.msra.gmra.mxu1 %vm199_vm7, %v186_v41  ;;  %1940 = vmatmul.msk.bf16.vlgmr.msra.gmra.mxu2 %vm199_vm7, %v186_v41 }
 0x225   :  { %638 = vmatpush.bf16.msra.mxu1 %v2363_v34  ;;  %693 = vmatpush.bf16.msra.mxu2 %v2368_v35 }
 0x229   :  { %639 = vmatpush.bf16.msra.mxu1 %v2375_v36  ;;  %694 = vmatpush.bf16.msra.mxu2 %v2380_v37 }
 0x2a1   :  { %v212_v42 = vpop.f32.mrf.mxu1 }
 0x2a2   :  { %v217_v43 = vrot.slane %v212_v42, 6 }
 0x2a4   :  { %v219_v44 = vadd.f32 %v217_v43, %v2344_v11 }
 0x2a6   :  { %v1931_v45 = vmul.f32 -1.442695, %v219_v44 }
 0x2a7   :  { %v2404_v46 = vpop.f32.mrf.mxu2 }
 0x2a8   :  { %2071 = vpow2.f32 %v1931_v45 }
 0x2a9   :  { %v214_v47 = vpop.f32.mrf.mxu1 }
 0x2ae   :  { %v2072_v48 = vpop.eup %2071 }
 0x2af   :  { %v223_v49 = vadd.f32 1.0, %v2072_v48  ;;  %v286_v50 = vpop.f32.mrf.mxu2 }
 0x2b1   :  { %2073 = vrcp.f32 %v223_v49  ;;  %v235_v54 = vand.u32 2147483648, %v223_v49  ;;  %v233_v56 = vand.u32 2147483647, %v223_v49  ;;  %vm229_vm9 = vweird.f32 %v223_v49 }
 0x2b2   :  { %2075 = vtanh.f32 %v219_v44 }
 0x2b3   :  { %v236_v58 = vor.u32 1.1754944e-38, %v235_v54  ;;  %vm234_vm11 = vcmp.eq.f32.partialorder %v233_v56, 8.507059e+37 }
 0x2b7   :  { %v2074_v51 = vpop.eup %2073 }
 0x2b8   :  { %v225_v52 = vmul.f32 %v2074_v51, %v223_v49  ;;  %vm230_vm8 = vweird.f32 %v2074_v51  ;;  %v2076_v60 = vpop.eup %2075 }
 0x2b9   :  { %vm231_vm10 = vmor %vm229_vm9, %vm230_vm8 }
 0x2ba   :  { %v226_v53 = vsub.f32 1.0, %v225_v52 }
 0x2bc   :  { %v227_v55 = vmul.f32 %v2074_v51, %v226_v53 }
 0x2be   :  { %v228_v57 = vadd.f32 %v2074_v51, %v227_v55 }
 0x2c0   :  { %v232_v59 = vsel %vm231_vm10, %v2074_v51, %v228_v57 }
 0x2c1   :  { %v237_v61 = vsel %vm234_vm11, %v236_v58, %v232_v59 }
 0x2c2   :  { %v240_v62 = vsel %vm2352_vm3, %v2076_v60, %v237_v61 }
 0x2c3   :  { %248 = vrot.lane.b32.xlu1 %v240_v62, %s2259_s1  ;;  %v246_v2 = vmul.f32 %v244_v1, %v240_v62 }
 0x335   :  { %v249_v63 = vpop.permute.xlu1 %248 }
 0x336   :  { %v251_v0 = vmul.f32 %v249_v63, %v240_v62 }
 0x338   :  { %253 = vrot.lane.b32.xlu2 %v251_v0, %s2260_s21 }
 0x392   :  { %v254_v3 = vpop.permute.xlu2 %253 }
 0x393   :  { %v256_v4 = vadd.f32 %v254_v3, %v246_v2 }
 0x395   :  { %2077 = vtanh.f32 %v256_v4  ;;  %v373_v42 = vrot.slane %v256_v4, 6 }
 0x39b   :  { %v2078_v5 = vpop.eup %2077 }
 0x39c   :  { %259 = vrot.lane.b32.xlu0 %v2078_v5, %s2259_s1 }
 0x40e   :  { %v260_v6 = vpop.permute.xlu0 %259 }
 0x40f   :  { %v262_v7 = vmul.f32 %v260_v6, %v240_v62 }
 0x411   :  { %v326_v8 = vpack.c.bf16 %v262_v7, %v262_v7 }
 0x413   :  { %v328_v10 = vrot.slane %v326_v8, 1 }
 0x415   :  { %329 = vrot.lane.b32.xlu1 %v328_v10, %s2260_s21 }
 0x487   :  { %v330_v12 = vpop.permute.xlu1 %329 }
 0x488   :  { %1942 = vmatmul.msk.bf16.vlgmr.msra.gmra.mxu3 %vm199_vm7, %v330_v12  ;;  %1944 = vmatmul.msk.bf16.vlgmr.msrb.gmra.mxu1 %vm199_vm7, %v330_v12 }
 0x489   :  { %781 = vmatpush.bf16.msra.mxu3 %v2363_v34  ;;  %839 = vmatpush.bf16.msrb.mxu1 %v2368_v35 }
 0x48d   :  { %782 = vmatpush.bf16.msra.mxu3 %v2375_v36  ;;  %840 = vmatpush.bf16.msrb.mxu1 %v2380_v37 }
 0x505   :  { %v2418_v13 = vpop.f32.mrf.mxu1 }
 0x50b   :  { %v343_v14 = vpop.f32.mrf.mxu3 }
 0x50c   :  { %v348_v15 = vrot.slane %v343_v14, 4 }
 0x50d   :  { %v403_v16 = vpop.f32.mrf.mxu1 }
 0x50e   :  { %v350_v18 = vadd.f32 %v348_v15, %v2344_v11 }
 0x510   :  { %v1943_v19 = vmul.f32 -1.442695, %v350_v18 }
 0x512   :  { %2079 = vpow2.f32 %v1943_v19 }
 0x513   :  { %v345_v20 = vpop.f32.mrf.mxu3 }
 0x518   :  { %v2080_v21 = vpop.eup %2079 }
 0x519   :  { %v354_v22 = vadd.f32 1.0, %v2080_v21 }
 0x51b   :  { %2081 = vrcp.f32 %v354_v22  ;;  %v366_v27 = vand.u32 2147483648, %v354_v22  ;;  %v364_v29 = vand.u32 2147483647, %v354_v22  ;;  %vm360_vm13 = vweird.f32 %v354_v22 }
 0x51c   :  { %2083 = vtanh.f32 %v350_v18 }
 0x51d   :  { %v367_v31 = vor.u32 1.1754944e-38, %v366_v27  ;;  %vm365_vm15 = vcmp.eq.f32.partialorder %v364_v29, 8.507059e+37 }
 0x521   :  { %v2082_v24 = vpop.eup %2081 }
 0x522   :  { %v356_v25 = vmul.f32 %v2082_v24, %v354_v22  ;;  %vm361_vm12 = vweird.f32 %v2082_v24  ;;  %v2084_v33 = vpop.eup %2083 }
 0x523   :  { %vm362_vm14 = vmor %vm360_vm13, %vm361_vm12 }
 0x524   :  { %v357_v26 = vsub.f32 1.0, %v356_v25 }
 0x526   :  { %v358_v28 = vmul.f32 %v2082_v24, %v357_v26  ;;  %v144_v26 = vpop.f32.mrf.mxu0 }
 0x527   :  { %v2449_v27 = vadd.f32 %v2341_v9, %v144_v26 }
 0x528   :  { %v359_v30 = vadd.f32 %v2082_v24, %v358_v28 }
 0x52a   :  { %v363_v32 = vsel %vm362_vm14, %v2082_v24, %v359_v30 }
 0x52b   :  { %v368_v38 = vsel %vm365_vm15, %v367_v31, %v363_v32 }
 0x52c   :  { %v371_v39 = vsel %vm2352_vm3, %v2084_v33, %v368_v38 }
 0x52d   :  { %377 = vrot.lane.b32.xlu2 %v371_v39, %s2259_s1  ;;  %v375_v43 = vmul.f32 %v373_v42, %v371_v39 }
 0x587   :  { %v378_v40 = vpop.permute.xlu2 %377 }
 0x588   :  { %v380_v41 = vmul.f32 %v378_v40, %v371_v39 }
 0x58a   :  { %382 = vrot.lane.b32.xlu0 %v380_v41, %s2260_s21 }
 0x5fc   :  { %v383_v44 = vpop.permute.xlu0 %382 }
 0x5fd   :  { %v385_v45 = vadd.f32 %v383_v44, %v375_v43 }
 0x5ff   :  { %2085 = vtanh.f32 %v385_v45  ;;  %v524_v14 = vrot.slane %v385_v45, 6 }
 0x605   :  { %v2086_v47 = vpop.eup %2085 }
 0x606   :  { %388 = vrot.lane.b32.xlu1 %v2086_v47, %s2259_s1 }
 0x678   :  { %v389_v48 = vpop.permute.xlu1 %388 }
 0x679   :  { %v391_v49 = vmul.f32 %v389_v48, %v371_v39 }
 0x67b   :  { %v477_v50 = vpack.c.bf16 %v391_v49, %v391_v49 }
 0x67d   :  { %v479_v51 = vrot.slane %v477_v50, 2 }
 0x67f   :  { %480 = vrot.lane.b32.xlu2 %v479_v51, %s2260_s21 }
 0x6d9   :  { %v481_v52 = vpop.permute.xlu2 %480 }
 0x6da   :  { %1947 = vmatmul.msk.bf16.vlgmr.msrb.gmra.mxu2 %vm199_vm7, %v481_v52  ;;  %1949 = vmatmul.msk.bf16.vlgmr.msrb.gmra.mxu3 %vm199_vm7, %v481_v52 }
 0x6db   :  { %928 = vmatpush.bf16.msrb.mxu2 %v2363_v34  ;;  %986 = vmatpush.bf16.msrb.mxu3 %v2368_v35 }
 0x6df   :  { %929 = vmatpush.bf16.msrb.mxu2 %v2375_v36  ;;  %987 = vmatpush.bf16.msrb.mxu3 %v2380_v37 }
 0x75d   :  { %v494_v53 = vpop.f32.mrf.mxu2  ;;  %v2433_v54 = vpop.f32.mrf.mxu3 }
 0x75e   :  { %v499_v55 = vrot.slane %v494_v53, 2 }
 0x760   :  { %v501_v56 = vadd.f32 %v499_v55, %v2344_v11 }
 0x762   :  { %v1948_v57 = vmul.f32 -1.442695, %v501_v56 }
 0x764   :  { %2087 = vpow2.f32 %v1948_v57 }
 0x765   :  { %v496_v58 = vpop.f32.mrf.mxu2  ;;  %v554_v59 = vpop.f32.mrf.mxu3 }
 0x76a   :  { %v2088_v60 = vpop.eup %2087 }
 0x76b   :  { %v505_v61 = vadd.f32 1.0, %v2088_v60 }
 0x76d   :  { %2089 = vrcp.f32 %v505_v61  ;;  %v517_v1 = vand.u32 2147483648, %v505_v61  ;;  %v515_v3 = vand.u32 2147483647, %v505_v61  ;;  %vm511_vm1 = vweird.f32 %v505_v61 }
 0x76e   :  { %2091 = vtanh.f32 %v501_v56 }
 0x76f   :  { %v518_v5 = vor.u32 1.1754944e-38, %v517_v1  ;;  %vm516_vm4 = vcmp.eq.f32.partialorder %v515_v3, 8.507059e+37 }
 0x773   :  { %v2090_v62 = vpop.eup %2089 }
 0x774   :  { %v507_v63 = vmul.f32 %v2090_v62, %v505_v61  ;;  %vm512_vm0 = vweird.f32 %v2090_v62  ;;  %v2092_v6 = vpop.eup %2091 }
 0x775   :  { %vm513_vm2 = vmor %vm511_vm1, %vm512_vm0  ;;  %vm45_vm1 = vcmp.ge.s32.totalorder %v2347_v17, 8 }
 0x776   :  { %v508_v0 = vsub.f32 1.0, %v507_v63 }
 0x778   :  { %v509_v2 = vmul.f32 %v2090_v62, %v508_v0  ;;  %v2472_v0 = vld [vmem:[%s2977_s6] ss:$0 sm:$0xff] }
 0x779   :  { %v285_v1 = vadd.f32 %v2472_v0, %v2404_v46 }
 0x77a   :  { %v510_v4 = vadd.f32 %v2090_v62, %v509_v2 }
 0x77b   :  { %v1941_v2 = vmul.f32 -1.442695, %v285_v1 }
 0x77c   :  { %v514_v11 = vsel %vm513_vm2, %v2090_v62, %v510_v4  ;;  %vm46_vm2 = vcmp.lt.s32.totalorder %v2347_v17, 12 }
 0x77d   :  { %v519_v7 = vsel %vm516_vm4, %v518_v5, %v514_v11 }
 0x77e   :  { %v522_v8 = vsel %vm2352_vm3, %v2092_v6, %v519_v7 }
 0x77f   :  { %528 = vrot.lane.b32.xlu0 %v522_v8, %s2259_s1  ;;  %v526_v15 = vmul.f32 %v524_v14, %v522_v8 }
 0x7f1   :  { %v529_v10 = vpop.permute.xlu0 %528 }
 0x7f2   :  { %v531_v12 = vmul.f32 %v529_v10, %v522_v8 }
 0x7f4   :  { %533 = vrot.lane.b32.xlu1 %v531_v12, %s2260_s21 }
 0x866   :  { %v534_v16 = vpop.permute.xlu1 %533 }
 0x867   :  { %v536_v18 = vadd.f32 %v534_v16, %v526_v15 }
 0x869   :  { %2093 = vtanh.f32 %v536_v18  ;;  %v668_v55 = vrot.slane %v536_v18, 6 }
 0x86f   :  { %v2094_v19 = vpop.eup %2093 }
 0x870   :  { %539 = vrot.lane.b32.xlu2 %v2094_v19, %s2259_s1 }
 0x8ca   :  { %v540_v20 = vpop.permute.xlu2 %539 }
 0x8cb   :  { %v542_v21 = vmul.f32 %v540_v20, %v522_v8 }
 0x8cd   :  { %v624_v22 = vpack.c.bf16 %v542_v21, %v542_v21 }
 0x8cf   :  { %v626_v24 = vrot.slane %v624_v22, 3 }
 0x8d1   :  { %627 = vrot.lane.b32.xlu0 %v626_v24, %s2260_s21 }
 0x943   :  { %v628_v25 = vpop.permute.xlu0 %627 }
 0x944   :  { %1952 = vmatmul.msk.bf16.vlgmr.msra.gmra.mxu1 %vm199_vm7, %v628_v25  ;;  %1954 = vmatmul.msk.bf16.vlgmr.msra.gmra.mxu2 %vm199_vm7, %v628_v25 }
 0x945   :  { %1133 = vmatpush.bf16.msra.mxu1 %v2368_v35  ;;  %1222 = vmatpush.bf16.msra.mxu2 %v2363_v34 }
 0x949   :  { %1134 = vmatpush.bf16.msra.mxu1 %v2380_v37  ;;  %1223 = vmatpush.bf16.msra.mxu2 %v2375_v36 }
 0x9c1   :  { %v641_v28 = vpop.f32.mrf.mxu1 }
 0x9c2   :  { %v645_v29 = vadd.f32 %v641_v28, %v2449_v27 }
 0x9c4   :  { %v1953_v30 = vmul.f32 -1.442695, %v645_v29 }
 0x9c6   :  { %2095 = vpow2.f32 %v1953_v30 }
 0x9c7   :  { %v2452_v31 = vpop.f32.mrf.mxu2 }
 0x9c9   :  { %v643_v32 = vpop.f32.mrf.mxu1 }
 0x9cc   :  { %v2096_v33 = vpop.eup %2095 }
 0x9cd   :  { %v649_v38 = vadd.f32 1.0, %v2096_v33 }
 0x9cf   :  { %2097 = vrcp.f32 %v649_v38  ;;  %v698_v39 = vpop.f32.mrf.mxu2  ;;  %v661_v43 = vand.u32 2147483648, %v649_v38  ;;  %v659_v9 = vand.u32 2147483647, %v649_v38  ;;  %vm655_vm6 = vweird.f32 %v649_v38 }
 0x9d0   :  { %2099 = vtanh.f32 %v645_v29 }
 0x9d1   :  { %v662_v47 = vor.u32 1.1754944e-38, %v661_v43  ;;  %vm660_vm9 = vcmp.eq.f32.partialorder %v659_v9, 8.507059e+37 }
 0x9d5   :  { %v2098_v40 = vpop.eup %2097 }
 0x9d6   :  { %v651_v41 = vmul.f32 %v2098_v40, %v649_v38  ;;  %vm656_vm5 = vweird.f32 %v2098_v40  ;;  %v2100_v49 = vpop.eup %2099 }
 0x9d7   :  { %vm657_vm8 = vmor %vm655_vm6, %vm656_vm5 }
 0x9d8   :  { %v652_v42 = vsub.f32 1.0, %v651_v41  ;;  %vm2484_vm5 = vmand %vm45_vm1, %vm46_vm2 }
 0x9da   :  { %v653_v44 = vmul.f32 %v2098_v40, %v652_v42 }
 0x9dc   :  { %v654_v45 = vadd.f32 %v2098_v40, %v653_v44 }
 0x9de   :  { %v658_v48 = vsel %vm657_vm8, %v2098_v40, %v654_v45 }
 0x9df   :  { %v663_v50 = vsel %vm660_vm9, %v662_v47, %v658_v48 }
 0x9e0   :  { %v666_v51 = vsel %vm2352_vm3, %v2100_v49, %v663_v50 }
 0x9e1   :  { %672 = vrot.lane.b32.xlu1 %v666_v51, %s2259_s1  ;;  %v670_v56 = vmul.f32 %v668_v55, %v666_v51 }
 0xa53   :  { %v673_v52 = vpop.permute.xlu1 %672 }
 0xa54   :  { %v675_v53 = vmul.f32 %v673_v52, %v666_v51 }
 0xa56   :  { %677 = vrot.lane.b32.xlu2 %v675_v53, %s2260_s21 }
 0xab0   :  { %v678_v57 = vpop.permute.xlu2 %677 }
 0xab1   :  { %v2458_v58 = vadd.f32 %v678_v57, %v670_v56 }
 0xab3   :  { %2101 = vtanh.f32 %v2458_v58  ;;  %v814_v17 = vrot.slane %v2458_v58, 6  ;;  %v2266_v58 = vmov 13  }
 0xab4   :  { %2103 = vpow2.f32 %v1941_v2  ;;  %2021 = vset.pattern.permute.xlu0 %v2266_v58 }
 0xab9   :  { %v2102_v59 = vpop.eup %2101 }
 0xaba   :  { %683 = vrot.lane.b32.xlu0 %v2102_v59, %s2259_s1  ;;  %v2104_v6 = vpop.eup %2103  ;;  %v2264_v59 = vmov 14  }
 0xabb   :  { %v291_v10 = vadd.f32 1.0, %v2104_v6  ;;  %2022 = vset.pattern.permute.xlu1 %v2264_v59 }
 0xabd   :  { %v303_v39 = vand.u32 2147483648, %v291_v10  ;;  %vm297_vm15 = vweird.f32 %v291_v10  ;;  %v301_v41 = vand.u32 2147483647, %v291_v10 }
 0xabf   :  { %v304_v43 = vor.u32 1.1754944e-38, %v303_v39  ;;  %vm302_vm4 = vcmp.eq.f32.partialorder %v301_v41, 8.507059e+37 }
 0xb2c   :  { %v684_v60 = vpop.permute.xlu0 %683 }
 0xb2d   :  { %v686_v61 = vmul.f32 %v684_v60, %v666_v51  ;;  %v2265_v60 = vmov 12  }
 0xb2e   :  { %2020 = vset.pattern.permute.xlu2 %v2265_v60 }
 0xb2f   :  { %v768_v62 = vpack.c.bf16 %v686_v61, %v686_v61 }
 0xb31   :  { %770 = vrot.lane.b32.xlu1 %v768_v62, %s2260_s21 }
 0xba3   :  { %v771_v63 = vpop.permute.xlu1 %770 }
 0xba4   :  { %1957 = vmatmul.msk.bf16.vlgmr.msra.gmra.mxu3 %vm199_vm7, %v771_v63  ;;  %1959 = vmatmul.msk.bf16.vlgmr.msrb.gmra.mxu1 %vm199_vm7, %v771_v63 }
 0xba5   :  { %1277 = vmatpush.bf16.msra.mxu3 %v2368_v35  ;;  %1423 = vmatpush.bf16.msrb.mxu1 %v2368_v35 }
 0xba9   :  { %1278 = vmatpush.bf16.msra.mxu3 %v2380_v37  ;;  %1424 = vmatpush.bf16.msrb.mxu1 %v2380_v37 }
 0xc21   :  { %v2476_v3 = vpop.f32.mrf.mxu1 }
 0xc27   :  { %v784_v4 = vpop.f32.mrf.mxu3 }
 0xc28   :  { %v789_v5 = vrot.slane %v784_v4, 6 }
 0xc29   :  { %v844_v11 = vpop.f32.mrf.mxu1 }
 0xc2a   :  { %v791_v7 = vadd.f32 %v789_v5, %v2449_v27  ;;  %v2267_v5 = vmov 15  }
 0xc2c   :  { %v1958_v8 = vmul.f32 -1.442695, %v791_v7 }
 0xc2e   :  { %2105 = vpow2.f32 %v1958_v8 }
 0xc2f   :  { %v786_v12 = vpop.f32.mrf.mxu3  ;;  %2107 = vrcp.f32 %v291_v10 }
 0xc34   :  { %v2106_v14 = vpop.eup %2105 }
 0xc35   :  { %v795_v15 = vadd.f32 1.0, %v2106_v14  ;;  %v2108_v16 = vpop.eup %2107 }
 0xc36   :  { %v293_v46 = vmul.f32 %v2108_v16, %v291_v10  ;;  %vm298_vm14 = vweird.f32 %v2108_v16 }
 0xc37   :  { %2109 = vrcp.f32 %v795_v15  ;;  %v807_v22 = vand.u32 2147483648, %v795_v15  ;;  %v805_v25 = vand.u32 2147483647, %v795_v15  ;;  %vm801_vm11 = vweird.f32 %v795_v15  ;;  %vm299_vm0 = vmor %vm297_vm15, %vm298_vm14 }
 0xc38   :  { %v294_v20 = vsub.f32 1.0, %v293_v46  ;;  %2111 = vtanh.f32 %v791_v7  ;;  %v35_v7 = vld [vmem:[%s2978_s5] sm:$0xf]  ;;  %s2269_s5 = smov 8  }
 0xc39   :  { %v808_v29 = vor.u32 1.1754944e-38, %v807_v22  ;;  %vm806_vm13 = vcmp.eq.f32.partialorder %v805_v25, 8.507059e+37  ;;  %2113 = vtanh.f32 %v285_v1  ;;  %v2519_v8 = vperm.slane %v35_v7, 0 }
 0xc3a   :  { %v295_v26 = vmul.f32 %v2108_v16, %v294_v20  ;;  %v2521_v10 = vperm.slane %v35_v7, 1  ;;  %v2525_v12 = vperm.slane %v35_v7, 2  ;;  %v2528_v46 = vperm.slane %v35_v7, 3 }
 0xc3b   :  { %v402_v25 = vadd.f32 %v2472_v0, %v2418_v13 }
 0xc3c   :  { %v296_v32 = vadd.f32 %v2108_v16, %v295_v26 }
 0xc3d   :  { %v2110_v18 = vpop.eup %2109 }
 0xc3e   :  { %v797_v19 = vmul.f32 %v2110_v18, %v795_v15  ;;  %vm802_vm10 = vweird.f32 %v2110_v18  ;;  %v2112_v33 = vpop.eup %2111  ;;  %v300_v42 = vsel %vm299_vm0, %v2108_v16, %v296_v32 }
 0xc3f   :  { %vm803_vm12 = vmor %vm801_vm11, %vm802_vm10  ;;  %v305_v9 = vsel %vm302_vm4, %v304_v43, %v300_v42  ;;  %v2114_v45 = vpop.eup %2113 }
 0xc40   :  { %v798_v21 = vsub.f32 1.0, %v797_v19  ;;  %v308_v47 = vsel %vm2484_vm5, %v2114_v45, %v305_v9 }
 0xc42   :  { %v799_v24 = vmul.f32 %v2110_v18, %v798_v21 }
 0xc44   :  { %v800_v28 = vadd.f32 %v2110_v18, %v799_v24 }
 0xc46   :  { %v804_v30 = vsel %vm803_vm12, %v2110_v18, %v800_v28 }
 0xc47   :  { %v809_v38 = vsel %vm806_vm13, %v808_v29, %v804_v30 }
 0xc48   :  { %v812_v40 = vsel %vm2352_vm3, %v2112_v33, %v809_v38 }
 0xc49   :  { %818 = vrot.lane.b32.xlu2 %v812_v40, %s2259_s1  ;;  %v816_v50 = vmul.f32 %v814_v17, %v812_v40 }
 0xc51   :  { %310 = vrot.lane.b32.xlu2 %v308_v47, %s2262_s9 }
 0xca3   :  { %v819_v48 = vpop.permute.xlu2 %818 }
 0xca4   :  { %v821_v49 = vmul.f32 %v819_v48, %v812_v40 }
 0xca6   :  { %823 = vrot.lane.b32.xlu0 %v821_v49, %s2260_s21 }
 0xcab   :  { %v311_v53 = vpop.permute.xlu2 %310 }
 0xcac   :  { %v313_v55 = vmul.f32 %v311_v53, %v308_v47 }
 0xd18   :  { %v824_v51 = vpop.permute.xlu0 %823 }
 0xd19   :  { %v2493_v52 = vadd.f32 %v824_v51, %v816_v50 }
 0xd1b   :  { %2115 = vtanh.f32 %v2493_v52 }
 0xd1c   :  { %2117 = vtanh.f32 %v313_v55 }
 0xd21   :  { %v2116_v56 = vpop.eup %2115 }
 0xd22   :  { %829 = vrot.lane.b32.xlu1 %v2116_v56, %s2259_s1  ;;  %v2118_v57 = vpop.eup %2117 }
 0xd2a   :  { %316 = vrot.lane.b32.xlu1 %v2118_v57, %s2263_s10 }
 0xd94   :  { %v830_v61 = vpop.permute.xlu1 %829 }
 0xd95   :  { %v832_v62 = vmul.f32 %v830_v61, %v812_v40 }
 0xd97   :  { %v914_v63 = vpack.c.bf16 %v832_v62, %v832_v62 }
 0xd99   :  { %v916_v1 = vrot.slane %v914_v63, 1 }
 0xd9b   :  { %917 = vrot.lane.b32.xlu0 %v916_v1, %s2260_s21 }
 0xd9c   :  { %v317_v2 = vpop.permute.xlu1 %316 }
 0xd9d   :  { %v2501_v4 = vmul.f32 %v317_v2, %v308_v47 }
 0xd9f   :  { %417 = vperm.xlu1 %2022, %v2501_v4   ;;  %406 = vperm.xlu2 %2020, %v2501_v4  }
 0xda3   :  { %411 = vperm.xlu0 %2021, %v2501_v4  }
 0xda7   :  { %2023 = vset.pattern.permute.xlu2 %v2267_v5  ;;  %2024 = vset.pattern.permute.xlu1 %v2265_v60 }
 0xda8   :  { %423 = vperm.xlu2 %2023, %v2501_v4  }
 0xdab   :  { %2026 = vset.pattern.permute.xlu0 %v2264_v59 }
 0xdb0   :  { %451 = vrot.lane.b32.xlu2 %v313_v55, %s2268_s11 }
 0xdb1   :  { %2025 = vset.pattern.permute.xlu2 %v2266_v58 }
 0xdf9   :  { %v407_v11 = vpop.permute.xlu2 %406 }
 0xdfa   :  { %v409_v16 = vmul.f32 %v407_v11, %v2519_v8 }
 0xe02   :  { %v424_v19 = vpop.permute.xlu2 %423 }
 0xe03   :  { %v426_v22 = vmul.f32 %v424_v19, %v2528_v46 }
 0xe0d   :  { %v918_v6 = vpop.permute.xlu0 %917 }
 0xe0e   :  { %1962 = vmatmul.msk.bf16.vlgmr.msrb.gmra.mxu2 %vm199_vm7, %v918_v6  ;;  %1964 = vmatmul.msk.bf16.vlgmr.msrb.gmra.mxu3 %vm199_vm7, %v918_v6 }
 0xe0f   :  { %1512 = vmatpush.bf16.msrb.mxu2 %v2363_v34  ;;  %1570 = vmatpush.bf16.msrb.mxu3 %v2368_v35 }
 0xe11   :  { %v418_v14 = vpop.permute.xlu1 %417 }
 0xe12   :  { %v420_v20 = vmul.f32 %v418_v14, %v2525_v12 }
 0xe13   :  { %1513 = vmatpush.bf16.msrb.mxu2 %v2375_v36  ;;  %1571 = vmatpush.bf16.msrb.mxu3 %v2380_v37 }
 0xe15   :  { %v412_v15 = vpop.permute.xlu0 %411 }
 0xe16   :  { %v414_v18 = vmul.f32 %v412_v15, %v2521_v10 }
 0xe18   :  { %v415_v21 = vadd.f32 %v414_v18, %v409_v16 }
 0xe1a   :  { %v421_v24 = vadd.f32 %v420_v20, %v415_v21 }
 0xe1c   :  { %v427_v26 = vadd.f32 %v426_v22, %v421_v24  ;;  %v452_v22 = vpop.permute.xlu2 %451 }
 0xe1e   :  { %v428_v28 = vadd.f32 %v427_v26, %v402_v25 }
 0xe20   :  { %v1945_v29 = vmul.f32 -1.442695, %v428_v28 }
 0xe22   :  { %2119 = vpow2.f32 %v1945_v29 }
 0xe28   :  { %v2120_v30 = vpop.eup %2119 }
 0xe29   :  { %v432_v32 = vadd.f32 1.0, %v2120_v30 }
 0xe2b   :  { %2121 = vrcp.f32 %v432_v32  ;;  %v444_v40 = vand.u32 2147483648, %v432_v32  ;;  %v442_v42 = vand.u32 2147483647, %v432_v32  ;;  %vm438_vm8 = vweird.f32 %v432_v32 }
 0xe2c   :  { %2123 = vtanh.f32 %v428_v28 }
 0xe2d   :  { %v445_v9 = vor.u32 1.1754944e-38, %v444_v40  ;;  %vm443_vm10 = vcmp.eq.f32.partialorder %v442_v42, 8.507059e+37 }
 0xe31   :  { %v2122_v33 = vpop.eup %2121 }
 0xe32   :  { %v434_v38 = vmul.f32 %v2122_v33, %v432_v32  ;;  %vm439_vm6 = vweird.f32 %v2122_v33  ;;  %v2124_v45 = vpop.eup %2123 }
 0xe33   :  { %vm440_vm9 = vmor %vm438_vm8, %vm439_vm6 }
 0xe34   :  { %v435_v39 = vsub.f32 1.0, %v434_v38  ;;  %v961_v38 = vrot.slane %v2493_v52, 6 }
 0xe36   :  { %v436_v41 = vmul.f32 %v2122_v33, %v435_v39 }
 0xe38   :  { %v437_v43 = vadd.f32 %v2122_v33, %v436_v41 }
 0xe3a   :  { %v441_v13 = vsel %vm440_vm9, %v2122_v33, %v437_v43 }
 0xe3b   :  { %v446_v47 = vsel %vm443_vm10, %v445_v9, %v441_v13 }
 0xe3c   :  { %v449_v48 = vsel %vm2484_vm5, %v2124_v45, %v446_v47 }
 0xe3d   :  { %456 = vrot.lane.b32.xlu1 %v449_v48, %s2262_s9  ;;  %v454_v24 = vmul.f32 %v452_v22, %v449_v48 }
 0xe91   :  { %v931_v49 = vpop.f32.mrf.mxu2  ;;  %v2538_v17 = vpop.f32.mrf.mxu3 }
 0xe92   :  { %v936_v50 = vrot.slane %v931_v49, 4 }
 0xe94   :  { %v938_v51 = vadd.f32 %v936_v50, %v2449_v27 }
 0xe96   :  { %v1963_v53 = vmul.f32 -1.442695, %v938_v51 }
 0xe98   :  { %2125 = vpow2.f32 %v1963_v53 }
 0xe99   :  { %v933_v55 = vpop.f32.mrf.mxu2  ;;  %v991_v56 = vpop.f32.mrf.mxu3 }
 0xe9e   :  { %v2126_v57 = vpop.eup %2125 }
 0xe9f   :  { %v942_v61 = vadd.f32 1.0, %v2126_v57 }
 0xea1   :  { %2127 = vrcp.f32 %v942_v61  ;;  %v954_v2 = vand.u32 2147483648, %v942_v61  ;;  %v952_v6 = vand.u32 2147483647, %v942_v61  ;;  %vm948_vm12 = vweird.f32 %v942_v61 }
 0xea2   :  { %2129 = vtanh.f32 %v938_v51 }
 0xea3   :  { %v955_v15 = vor.u32 1.1754944e-38, %v954_v2  ;;  %vm953_vm14 = vcmp.eq.f32.partialorder %v952_v6, 8.507059e+37 }
 0xea7   :  { %v2128_v62 = vpop.eup %2127 }
 0xea8   :  { %v944_v63 = vmul.f32 %v2128_v62, %v942_v61  ;;  %vm949_vm11 = vweird.f32 %v2128_v62  ;;  %v2130_v19 = vpop.eup %2129  ;;  %v553_v61 = vadd.f32 %v2472_v0, %v2433_v54 }
 0xea9   :  { %vm950_vm13 = vmor %vm948_vm12, %vm949_vm11 }
 0xeaa   :  { %v945_v1 = vsub.f32 1.0, %v944_v63  ;;  %v54_v63 = vld [vmem:[%s2974_s0 + $0x8] sm:$0xf] }
 0xeab   :  { %v80_v2 = vunpack.c.l.b16 %v54_v63 }
 0xeac   :  { %v946_v11 = vmul.f32 %v2128_v62, %v945_v1 }
 0xead   :  { %v82_v6 = vpack.c.b16 %v80_v2, %v80_v2 }
 0xeae   :  { %v947_v7 = vadd.f32 %v2128_v62, %v946_v11 }
 0xeaf   :  { %v457_v14 = vpop.permute.xlu1 %456  ;;  %146 = vmatmul.bf16.gmra.mxu0 %v82_v6 }
 0xeb0   :  { %v459_v16 = vmul.f32 %v457_v14, %v449_v48  ;;  %v951_v18 = vsel %vm950_vm13, %v2128_v62, %v947_v7 }
 0xeb1   :  { %v956_v20 = vsel %vm953_vm14, %v955_v15, %v951_v18 }
 0xeb2   :  { %461 = vrot.lane.b32.xlu0 %v459_v16, %s2268_s11  ;;  %v959_v21 = vsel %vm2352_vm3, %v2130_v19, %v956_v20 }
 0xeb3   :  { %965 = vrot.lane.b32.xlu1 %v959_v21, %s2259_s1  ;;  %v963_v39 = vmul.f32 %v961_v38, %v959_v21 }
 0xf24   :  { %v462_v25 = vpop.permute.xlu0 %461 }
 0xf25   :  { %v2545_v26 = vadd.f32 %v462_v25, %v454_v24  ;;  %v966_v28 = vpop.permute.xlu1 %965 }
 0xf26   :  { %v968_v29 = vmul.f32 %v966_v28, %v959_v21 }
 0xf27   :  { %2131 = vtanh.f32 %v2545_v26 }
 0xf28   :  { %970 = vrot.lane.b32.xlu0 %v968_v29, %s2260_s21 }
 0xf2d   :  { %v2132_v30 = vpop.eup %2131 }
 0xf2e   :  { %467 = vrot.lane.b32.xlu2 %v2132_v30, %s2269_s5 }
 0xf88   :  { %v468_v32 = vpop.permute.xlu2 %467 }
 0xf89   :  { %v2550_v33 = vmul.f32 %v468_v32, %v449_v48  ;;  %v2584_v32 = vpop.f32.mrf.mxu0 }
 0xf8b   :  { %568 = vperm.xlu0 %2026, %v2550_v33   ;;  %562 = vperm.xlu2 %2025, %v2550_v33  }
 0xf8c   :  { %557 = vperm.xlu1 %2024, %v2550_v33  }
 0xf91   :  { %v149_v38 = vpop.f32.mrf.mxu0 }
 0xf93   :  { %2029 = vset.pattern.permute.xlu0 %v2266_v58  ;;  %2028 = vset.pattern.permute.xlu2 %v2265_v60 }
 0xf94   :  { %2027 = vset.pattern.permute.xlu1 %v2267_v5 }
 0xf95   :  { %574 = vperm.xlu1 %2027, %v2550_v33  }
 0xf9a   :  { %v971_v40 = vpop.permute.xlu0 %970 }
 0xf9b   :  { %v2560_v41 = vadd.f32 %v971_v40, %v963_v39 }
 0xf9d   :  { %2133 = vtanh.f32 %v2560_v41  ;;  %2030 = vset.pattern.permute.xlu1 %v2264_v59 }
 0xfa3   :  { %v2134_v42 = vpop.eup %2133 }
 0xfa4   :  { %976 = vrot.lane.b32.xlu2 %v2134_v42, %s2259_s1 }
 0xfe5   :  { %v563_v43 = vpop.permute.xlu2 %562 }
 0xfe6   :  { %v565_v52 = vmul.f32 %v563_v43, %v2521_v10 }
 0xffd   :  { %v569_v49 = vpop.permute.xlu0 %568 }
 0xffe   :  { %v558_v9 = vpop.permute.xlu1 %557  ;;  %v977_v13 = vpop.permute.xlu2 %976  ;;  %v571_v53 = vmul.f32 %v569_v49, %v2525_v12 }
 0xfff   :  { %v979_v45 = vmul.f32 %v977_v13, %v959_v21  ;;  %v560_v47 = vmul.f32 %v558_v9, %v2519_v8 }
0x1001   :  { %v1061_v48 = vpack.c.bf16 %v979_v45, %v979_v45  ;;  %v566_v51 = vadd.f32 %v565_v52, %v560_v47 }
0x1003   :  { %v1063_v50 = vrot.slane %v1061_v48, 2  ;;  %v572_v56 = vadd.f32 %v571_v53, %v566_v51 }
0x1005   :  { %1064 = vrot.lane.b32.xlu2 %v1063_v50, %s2260_s21 }
0x1007   :  { %v575_v55 = vpop.permute.xlu1 %574 }
0x1008   :  { %v577_v57 = vmul.f32 %v575_v55, %v2528_v46 }
0x100a   :  { %v578_v62 = vadd.f32 %v577_v57, %v572_v56 }
0x100c   :  { %v579_v1 = vadd.f32 %v578_v62, %v553_v61 }
0x100e   :  { %v1950_v11 = vmul.f32 -1.442695, %v579_v1 }
0x1010   :  { %2135 = vpow2.f32 %v1950_v11 }
0x1016   :  { %v2136_v7 = vpop.eup %2135 }
0x1017   :  { %v583_v14 = vadd.f32 1.0, %v2136_v7 }
0x1019   :  { %2137 = vrcp.f32 %v583_v14  ;;  %v595_v19 = vand.u32 2147483648, %v583_v14  ;;  %v593_v20 = vand.u32 2147483647, %v583_v14  ;;  %vm589_vm0 = vweird.f32 %v583_v14 }
0x101a   :  { %2139 = vtanh.f32 %v579_v1 }
0x101b   :  { %v596_v22 = vor.u32 1.1754944e-38, %v595_v19  ;;  %vm594_vm2 = vcmp.eq.f32.partialorder %v593_v20, 8.507059e+37 }
0x101f   :  { %v2138_v15 = vpop.eup %2137 }
0x1020   :  { %v585_v16 = vmul.f32 %v2138_v15, %v583_v14  ;;  %vm590_vm15 = vweird.f32 %v2138_v15  ;;  %v2140_v25 = vpop.eup %2139 }
0x1021   :  { %vm591_vm1 = vmor %vm589_vm0, %vm590_vm15 }
0x1022   :  { %v586_v18 = vsub.f32 1.0, %v585_v16 }
0x1024   :  { %v587_v54 = vmul.f32 %v2138_v15, %v586_v18 }
0x1026   :  { %v588_v21 = vadd.f32 %v2138_v15, %v587_v54 }
0x1028   :  { %v592_v24 = vsel %vm591_vm1, %v2138_v15, %v588_v21 }
0x1029   :  { %v597_v28 = vsel %vm594_vm2, %v596_v22, %v592_v24  ;;  %v697_v22 = vadd.f32 %v2472_v0, %v2452_v31 }
0x102a   :  { %v600_v29 = vsel %vm2484_vm5, %v2140_v25, %v597_v28 }
0x102b   :  { %603 = vrot.lane.b32.xlu1 %v600_v29, %s2262_s9 }
0x105f   :  { %v1065_v30 = vpop.permute.xlu2 %1064 }
0x1060   :  { %1967 = vmatmul.msk.bf16.vlgmr.msrb.gmra.mxu0 %vm199_vm7, %v1065_v30  ;;  %1969 = vmatmul.msk.bf16.vlgmr.msra.gmra.mxu1 %vm199_vm7, %v1065_v30 }
0x1061   :  { %1659 = vmatpush.bf16.msrb.mxu0 %v2363_v34  ;;  %1717 = vmatpush.bf16.msra.mxu1 %v2368_v35  ;;  %v601_v34 = vmul.f32 %v600_v29, %v2545_v26 }
0x1065   :  { %1660 = vmatpush.bf16.msrb.mxu0 %v2375_v36  ;;  %1718 = vmatpush.bf16.msra.mxu1 %v2380_v37 }
0x109d   :  { %v604_v39 = vpop.permute.xlu1 %603 }
0x109e   :  { %v606_v40 = vmul.f32 %v604_v39, %v600_v29 }
0x10a0   :  { %608 = vrot.lane.b32.xlu0 %v606_v40, %s2268_s11 }
0x10dd   :  { %v1078_v42 = vpop.f32.mrf.mxu0  ;;  %v2587_v43 = vpop.f32.mrf.mxu1 }
0x10de   :  { %v1083_v37 = vrot.slane %v1078_v42, 2 }
0x10e0   :  { %v1085_v47 = vadd.f32 %v1083_v37, %v2449_v27 }
0x10e2   :  { %v1968_v48 = vmul.f32 -1.442695, %v1085_v47 }
0x10e5   :  { %v1080_v9 = vpop.f32.mrf.mxu0  ;;  %v1138_v13 = vpop.f32.mrf.mxu1 }
0x1112   :  { %v609_v45 = vpop.permute.xlu0 %608 }
0x1113   :  { %v2590_v35 = vadd.f32 %v609_v45, %v601_v34 }
0x1115   :  { %2141 = vtanh.f32 %v2590_v35 }
0x1116   :  { %2143 = vpow2.f32 %v1968_v48 }
0x111b   :  { %v2142_v36 = vpop.eup %2141 }
0x111c   :  { %614 = vrot.lane.b32.xlu1 %v2142_v36, %s2269_s5  ;;  %v2144_v52 = vpop.eup %2143 }
0x111d   :  { %v1089_v49 = vadd.f32 1.0, %v2144_v52 }
0x111f   :  { %2145 = vrcp.f32 %v1089_v49  ;;  %v1101_v61 = vand.u32 2147483648, %v1089_v49  ;;  %vm1095_vm6 = vweird.f32 %v1089_v49  ;;  %v1099_v62 = vand.u32 2147483647, %v1089_v49 }
0x1120   :  { %2147 = vtanh.f32 %v1085_v47 }
0x1121   :  { %v1102_v63 = vor.u32 1.1754944e-38, %v1101_v61  ;;  %vm1100_vm9 = vcmp.eq.f32.partialorder %v1099_v62, 8.507059e+37 }
0x1125   :  { %v2146_v50 = vpop.eup %2145 }
0x1126   :  { %v1091_v51 = vmul.f32 %v2146_v50, %v1089_v49  ;;  %vm1096_vm4 = vweird.f32 %v2146_v50  ;;  %v2148_v2 = vpop.eup %2147  ;;  %v1108_v49 = vrot.slane %v2560_v41, 6 }
0x1127   :  { %vm1097_vm8 = vmor %vm1095_vm6, %vm1096_vm4 }
0x1128   :  { %v1092_v53 = vsub.f32 1.0, %v1091_v51 }
0x112a   :  { %v1093_v26 = vmul.f32 %v2146_v50, %v1092_v53 }
0x112c   :  { %v1094_v56 = vadd.f32 %v2146_v50, %v1093_v26 }
0x112e   :  { %v1098_v27 = vsel %vm1097_vm8, %v2146_v50, %v1094_v56 }
0x112f   :  { %v1103_v1 = vsel %vm1100_vm9, %v1102_v63, %v1098_v27 }
0x1130   :  { %v1106_v11 = vsel %vm2352_vm3, %v2148_v2, %v1103_v1 }
0x1131   :  { %v1110_v50 = vmul.f32 %v1108_v49, %v1106_v11 }
0x118e   :  { %v615_v55 = vpop.permute.xlu1 %614 }
0x118f   :  { %v2595_v57 = vmul.f32 %v615_v55, %v600_v29 }
0x1191   :  { %712 = vperm.xlu1 %2030, %v2595_v57   ;;  %706 = vperm.xlu0 %2029, %v2595_v57  }
0x1192   :  { %701 = vperm.xlu2 %2028, %v2595_v57  }
0x1199   :  { %1112 = vrot.lane.b32.xlu1 %v1106_v11, %s2259_s1 }
0x119a   :  { %2031 = vset.pattern.permute.xlu2 %v2267_v5 }
0x119b   :  { %718 = vperm.xlu2 %2031, %v2595_v57  }
0x11a3   :  { %2032 = vset.pattern.permute.xlu2 %v2265_v60 }
0x11ec   :  { %v702_v6 = vpop.permute.xlu2 %701 }
0x11ed   :  { %v704_v15 = vmul.f32 %v702_v6, %v2519_v8 }
0x11f5   :  { %v719_v18 = vpop.permute.xlu2 %718 }
0x11f6   :  { %v721_v20 = vmul.f32 %v719_v18, %v2528_v46 }
0x1203   :  { %v713_v7 = vpop.permute.xlu1 %712  ;;  %v707_v14 = vpop.permute.xlu0 %706 }
0x1204   :  { %v709_v16 = vmul.f32 %v707_v14, %v2521_v10  ;;  %v715_v19 = vmul.f32 %v713_v7, %v2525_v12 }
0x1206   :  { %v710_v54 = vadd.f32 %v709_v16, %v704_v15 }
0x1208   :  { %v716_v21 = vadd.f32 %v715_v19, %v710_v54  ;;  %v2257_v54 = vld [vmem:[%s2973_s3] ss:$0 sm:$0xff] }
0x120a   :  { %v722_v24 = vadd.f32 %v721_v20, %v716_v21  ;;  %v2652_v20 = vadd.f32 %v2257_v54, %v2584_v32 }
0x120b   :  { %v1113_v25 = vpop.permute.xlu1 %1112 }
0x120c   :  { %v723_v28 = vadd.f32 %v722_v24, %v697_v22  ;;  %v1115_v29 = vmul.f32 %v1113_v25, %v1106_v11 }
0x120e   :  { %v1955_v30 = vmul.f32 -1.442695, %v723_v28  ;;  %1117 = vrot.lane.b32.xlu0 %v1115_v29, %s2260_s21 }
0x1210   :  { %2149 = vpow2.f32 %v1955_v30 }
0x1216   :  { %v2150_v38 = vpop.eup %2149 }
0x1217   :  { %v727_v39 = vadd.f32 1.0, %v2150_v38 }
0x1219   :  { %2151 = vrcp.f32 %v727_v39  ;;  %v739_v13 = vand.u32 2147483648, %v727_v39  ;;  %v737_v45 = vand.u32 2147483647, %v727_v39  ;;  %vm733_vm11 = vweird.f32 %v727_v39 }
0x121a   :  { %2153 = vtanh.f32 %v723_v28 }
0x121b   :  { %v740_v36 = vor.u32 1.1754944e-38, %v739_v13  ;;  %vm738_vm13 = vcmp.eq.f32.partialorder %v737_v45, 8.507059e+37  ;;  %v843_v13 = vadd.f32 %v2472_v0, %v2476_v3 }
0x121f   :  { %v2152_v40 = vpop.eup %2151 }
0x1220   :  { %v729_v42 = vmul.f32 %v2152_v40, %v727_v39  ;;  %vm734_vm10 = vweird.f32 %v2152_v40  ;;  %v2154_v47 = vpop.eup %2153 }
0x1221   :  { %vm735_vm12 = vmor %vm733_vm11, %vm734_vm10 }
0x1222   :  { %v730_v9 = vsub.f32 1.0, %v729_v42 }
0x1224   :  { %v731_v34 = vmul.f32 %v2152_v40, %v730_v9 }
0x1226   :  { %v732_v31 = vadd.f32 %v2152_v40, %v731_v34 }
0x1228   :  { %v736_v37 = vsel %vm735_vm12, %v2152_v40, %v732_v31 }
0x1229   :  { %v741_v48 = vsel %vm738_vm13, %v740_v36, %v736_v37 }
0x122a   :  { %v744_v52 = vsel %vm2484_vm5, %v2154_v47, %v741_v48 }
0x122b   :  { %747 = vrot.lane.b32.xlu2 %v744_v52, %s2262_s9  ;;  %v745_v41 = vmul.f32 %v744_v52, %v2590_v35  ;;  %v2256_v35 = vld [vmem:[%s2976_s4] sm:$0xff] }
0x1280   :  { %v1118_v51 = vpop.permute.xlu0 %1117 }
0x1281   :  { %v2617_v53 = vadd.f32 %v1118_v51, %v1110_v50 }
0x1283   :  { %2155 = vtanh.f32 %v2617_v53 }
0x1285   :  { %v748_v26 = vpop.permute.xlu2 %747 }
0x1286   :  { %v750_v55 = vmul.f32 %v748_v26, %v744_v52 }
0x1288   :  { %752 = vrot.lane.b32.xlu1 %v750_v55, %s2268_s11 }
0x1289   :  { %v2156_v56 = vpop.eup %2155 }
0x128a   :  { %1123 = vrot.lane.b32.xlu2 %v2156_v56, %s2259_s1 }
0x12e4   :  { %v1124_v61 = vpop.permute.xlu2 %1123 }
0x12e5   :  { %v1126_v62 = vmul.f32 %v1124_v61, %v1106_v11  ;;  %v2255_v11 = vld [vmem:[%s2976_s4 + $0x8] sm:$0xff] }
0x12e7   :  { %v1208_v27 = vpack.c.bf16 %v1126_v62, %v1126_v62 }
0x12e9   :  { %v1210_v63 = vrot.slane %v1208_v27, 3 }
0x12eb   :  { %1211 = vrot.lane.b32.xlu1 %v1210_v63, %s2260_s21 }
0x12fa   :  { %v753_v1 = vpop.permute.xlu1 %752 }
0x12fb   :  { %v2624_v2 = vadd.f32 %v753_v1, %v745_v41 }
0x12fd   :  { %2157 = vtanh.f32 %v2624_v2 }
0x1303   :  { %v2158_v6 = vpop.eup %2157 }
0x1304   :  { %758 = vrot.lane.b32.xlu0 %v2158_v6, %s2269_s5 }
0x135d   :  { %v1212_v7 = vpop.permute.xlu1 %1211 }
0x135e   :  { %1972 = vmatmul.msk.bf16.vlgmr.msra.gmra.mxu2 %vm199_vm7, %v1212_v7  ;;  %1974 = vmatmul.msk.bf16.vlgmr.msra.gmra.mxu3 %vm199_vm7, %v1212_v7 }
0x135f   :  { %1806 = vmatpush.bf16.msra.mxu2 %v2255_v11 }
0x1363   :  { %1807 = vmatpush.bf16.msra.mxu2 %v2256_v35 }
0x1376   :  { %v759_v14 = vpop.permute.xlu0 %758 }
0x1377   :  { %v2636_v15 = vmul.f32 %v759_v14, %v744_v52 }
0x1379   :  { %858 = vperm.xlu1 %2030, %v2636_v15   ;;  %852 = vperm.xlu0 %2029, %v2636_v15  }
0x137a   :  { %847 = vperm.xlu2 %2032, %v2636_v15  }
0x1381   :  { %2034 = vset.pattern.permute.xlu1 %v2265_v60  ;;  %2036 = vset.pattern.permute.xlu0 %v2264_v59 }
0x1382   :  { %2033 = vset.pattern.permute.xlu2 %v2267_v5 }
0x1383   :  { %864 = vperm.xlu2 %2033, %v2636_v15  }
0x138b   :  { %2035 = vset.pattern.permute.xlu2 %v2266_v58 }
0x13d4   :  { %v848_v19 = vpop.permute.xlu2 %847 }
0x13d5   :  { %v850_v30 = vmul.f32 %v848_v19, %v2519_v8 }
0x13dd   :  { %v865_v39 = vpop.permute.xlu2 %864 }
0x13de   :  { %v867_v9 = vmul.f32 %v865_v39, %v2528_v46 }
0x13e1   :  { %v1225_v16 = vpop.f32.mrf.mxu2  ;;  %v2646_v18 = vpop.f32.mrf.mxu3 }
0x13e2   :  { %v1229_v21 = vadd.f32 %v1225_v16, %v2652_v20 }
0x13e4   :  { %v1973_v25 = vmul.f32 -1.442695, %v1229_v21 }
0x13e6   :  { %2159 = vpow2.f32 %v1973_v25 }
0x13e9   :  { %v1227_v22 = vpop.f32.mrf.mxu2  ;;  %v1282_v24 = vpop.f32.mrf.mxu3 }
0x13eb   :  { %v859_v28 = vpop.permute.xlu1 %858  ;;  %v853_v29 = vpop.permute.xlu0 %852 }
0x13ec   :  { %v855_v38 = vmul.f32 %v853_v29, %v2521_v10  ;;  %v861_v40 = vmul.f32 %v859_v28, %v2525_v12  ;;  %v2160_v45 = vpop.eup %2159 }
0x13ed   :  { %v1233_v37 = vadd.f32 1.0, %v2160_v45 }
0x13ee   :  { %v856_v42 = vadd.f32 %v855_v38, %v850_v30 }
0x13ef   :  { %v1245_v11 = vand.u32 2147483648, %v1233_v37  ;;  %vm1239_vm4 = vweird.f32 %v1233_v37  ;;  %v1243_v14 = vand.u32 2147483647, %v1233_v37 }
0x13f0   :  { %v862_v32 = vadd.f32 %v861_v40, %v856_v42 }
0x13f1   :  { %v1246_v19 = vor.u32 1.1754944e-38, %v1245_v11  ;;  %vm1244_vm8 = vcmp.eq.f32.partialorder %v1243_v14, 8.507059e+37 }
0x13f2   :  { %v868_v34 = vadd.f32 %v867_v9, %v862_v32  ;;  %v1252_v32 = vrot.slane %v2617_v53, 6 }
0x13f4   :  { %v869_v31 = vadd.f32 %v868_v34, %v843_v13 }
0x13f6   :  { %v1960_v36 = vmul.f32 -1.442695, %v869_v31 }
0x13f8   :  { %2161 = vpow2.f32 %v1960_v36 }
0x13f9   :  { %2163 = vrcp.f32 %v1233_v37 }
0x13fe   :  { %v2162_v47 = vpop.eup %2161 }
0x13ff   :  { %v873_v48 = vadd.f32 1.0, %v2162_v47  ;;  %v2164_v52 = vpop.eup %2163 }
0x1400   :  { %v1235_v49 = vmul.f32 %v2164_v52, %v1233_v37  ;;  %vm1240_vm2 = vweird.f32 %v2164_v52 }
0x1401   :  { %2165 = vrcp.f32 %v873_v48  ;;  %v885_v56 = vand.u32 2147483648, %v873_v48  ;;  %v883_v3 = vand.u32 2147483647, %v873_v48  ;;  %vm879_vm15 = vweird.f32 %v873_v48  ;;  %vm1241_vm6 = vmor %vm1239_vm4, %vm1240_vm2 }
0x1402   :  { %v1236_v26 = vsub.f32 1.0, %v1235_v49  ;;  %2167 = vtanh.f32 %v869_v31 }
0x1403   :  { %v886_v63 = vor.u32 1.1754944e-38, %v885_v56  ;;  %vm884_vm1 = vcmp.eq.f32.partialorder %v883_v3, 8.507059e+37  ;;  %2169 = vtanh.f32 %v1229_v21 }
0x1404   :  { %v1237_v62 = vmul.f32 %v2164_v52, %v1236_v26  ;;  %v990_v26 = vadd.f32 %v2472_v0, %v2538_v17 }
0x1406   :  { %v1238_v1 = vadd.f32 %v2164_v52, %v1237_v62 }
0x1407   :  { %v2166_v50 = vpop.eup %2165 }
0x1408   :  { %v875_v51 = vmul.f32 %v2166_v50, %v873_v48  ;;  %vm880_vm14 = vweird.f32 %v2166_v50  ;;  %v2168_v6 = vpop.eup %2167  ;;  %v1242_v16 = vsel %vm1241_vm6, %v2164_v52, %v1238_v1 }
0x1409   :  { %vm881_vm0 = vmor %vm879_vm15, %vm880_vm14  ;;  %v1247_v54 = vsel %vm1244_vm8, %v1246_v19, %v1242_v16  ;;  %v2170_v22 = vpop.eup %2169 }
0x140a   :  { %v876_v55 = vsub.f32 1.0, %v875_v51  ;;  %v2666_v24 = vsel %vm2352_vm3, %v2170_v22, %v1247_v54 }
0x140b   :  { %v1254_v13 = vmul.f32 %v1252_v32, %v2666_v24 }
0x140c   :  { %v877_v61 = vmul.f32 %v2166_v50, %v876_v55 }
0x140e   :  { %v878_v27 = vadd.f32 %v2166_v50, %v877_v61 }
0x1410   :  { %v882_v41 = vsel %vm881_vm0, %v2166_v50, %v878_v27 }
0x1411   :  { %v887_v7 = vsel %vm884_vm1, %v886_v63, %v882_v41 }
0x1412   :  { %v890_v35 = vsel %vm2484_vm5, %v2168_v6, %v887_v7 }
0x1413   :  { %893 = vrot.lane.b32.xlu0 %v890_v35, %s2262_s9  ;;  %v891_v21 = vmul.f32 %v890_v35, %v2624_v2 }
0x141b   :  { %1256 = vrot.lane.b32.xlu0 %v2666_v24, %s2259_s1 }
0x1485   :  { %v894_v25 = vpop.permute.xlu0 %893 }
0x1486   :  { %v896_v28 = vmul.f32 %v894_v25, %v890_v35 }
0x1488   :  { %898 = vrot.lane.b32.xlu1 %v896_v28, %s2268_s11 }
0x148d   :  { %v1257_v42 = vpop.permute.xlu0 %1256 }
0x148e   :  { %v1259_v2 = vmul.f32 %v1257_v42, %v2666_v24 }
0x14fa   :  { %v899_v29 = vpop.permute.xlu1 %898 }
0x14fb   :  { %v2672_v30 = vadd.f32 %v899_v29, %v891_v21 }
0x14fd   :  { %2171 = vtanh.f32 %v2672_v30 }
0x1503   :  { %v2172_v38 = vpop.eup %2171 }
0x1504   :  { %904 = vrot.lane.b32.xlu2 %v2172_v38, %s2269_s5 }
0x155e   :  { %v905_v39 = vpop.permute.xlu2 %904 }
0x155f   :  { %v2676_v40 = vmul.f32 %v905_v39, %v890_v35 }
0x1561   :  { %1005 = vperm.xlu0 %2036, %v2676_v40   ;;  %999 = vperm.xlu2 %2035, %v2676_v40  }
0x1562   :  { %994 = vperm.xlu1 %2034, %v2676_v40  }
0x1569   :  { %1261 = vrot.lane.b32.xlu2 %v1259_v2, %s2260_s21  ;;  %2038 = vset.pattern.permute.xlu0 %v2265_v60 }
0x156a   :  { %2037 = vset.pattern.permute.xlu1 %v2267_v5  ;;  %2040 = vset.pattern.permute.xlu2 %v2264_v59 }
0x156b   :  { %1011 = vperm.xlu1 %2037, %v2676_v40  }
0x1573   :  { %2039 = vset.pattern.permute.xlu1 %v2266_v58 }
0x15bb   :  { %v1000_v9 = vpop.permute.xlu2 %999 }
0x15bc   :  { %v1002_v47 = vmul.f32 %v1000_v9, %v2521_v10 }
0x15c3   :  { %v1262_v34 = vpop.permute.xlu2 %1261 }
0x15c4   :  { %v2690_v45 = vadd.f32 %v1262_v34, %v1254_v13 }
0x15c6   :  { %2173 = vtanh.f32 %v2690_v45 }
0x15cc   :  { %v2174_v31 = vpop.eup %2173 }
0x15cd   :  { %1267 = vrot.lane.b32.xlu1 %v2174_v31, %s2259_s1 }
0x15d3   :  { %v1006_v48 = vpop.permute.xlu0 %1005 }
0x15d4   :  { %v995_v36 = vpop.permute.xlu1 %994  ;;  %v1008_v49 = vmul.f32 %v1006_v48, %v2525_v12 }
0x15d5   :  { %v997_v37 = vmul.f32 %v995_v36, %v2519_v8 }
0x15d7   :  { %v1003_v52 = vadd.f32 %v1002_v47, %v997_v37 }
0x15d9   :  { %v1009_v50 = vadd.f32 %v1008_v49, %v1003_v52 }
0x15dd   :  { %v1012_v53 = vpop.permute.xlu1 %1011 }
0x15de   :  { %v1014_v51 = vmul.f32 %v1012_v53, %v2528_v46 }
0x15e0   :  { %v1015_v55 = vadd.f32 %v1014_v51, %v1009_v50 }
0x15e2   :  { %v1016_v56 = vadd.f32 %v1015_v55, %v990_v26 }
0x15e4   :  { %v1965_v61 = vmul.f32 -1.442695, %v1016_v56 }
0x15e6   :  { %2175 = vpow2.f32 %v1965_v61 }
0x15ec   :  { %v2176_v3 = vpop.eup %2175 }
0x15ed   :  { %v1020_v62 = vadd.f32 1.0, %v2176_v3 }
0x15ef   :  { %2177 = vrcp.f32 %v1020_v62  ;;  %v1032_v1 = vand.u32 2147483648, %v1020_v62  ;;  %v1030_v7 = vand.u32 2147483647, %v1020_v62  ;;  %vm1026_vm10 = vweird.f32 %v1020_v62 }
0x15f0   :  { %2179 = vtanh.f32 %v1016_v56 }
0x15f1   :  { %v1033_v35 = vor.u32 1.1754944e-38, %v1032_v1  ;;  %vm1031_vm12 = vcmp.eq.f32.partialorder %v1030_v7, 8.507059e+37 }
0x15f5   :  { %v2178_v27 = vpop.eup %2177 }
0x15f6   :  { %v1022_v63 = vmul.f32 %v2178_v27, %v1020_v62  ;;  %vm1027_vm9 = vweird.f32 %v2178_v27  ;;  %v2180_v17 = vpop.eup %2179 }
0x15f7   :  { %vm1028_vm11 = vmor %vm1026_vm10, %vm1027_vm9 }
0x15f8   :  { %v1023_v41 = vsub.f32 1.0, %v1022_v63 }
0x15fa   :  { %v1024_v6 = vmul.f32 %v2178_v27, %v1023_v41 }
0x15fc   :  { %v1025_v11 = vadd.f32 %v2178_v27, %v1024_v6 }
0x15fe   :  { %v1029_v0 = vsel %vm1028_vm11, %v2178_v27, %v1025_v11 }
0x15ff   :  { %v1034_v14 = vsel %vm1031_vm12, %v1033_v35, %v1029_v0 }
0x1600   :  { %v1037_v16 = vsel %vm2484_vm5, %v2180_v17, %v1034_v14  ;;  %v2736_v14 = vld [vmem:[%s2977_s6] ss:$0 sm:$0xff]  ;;  %s2270_s6 = smov 116  }
0x1601   :  { %1040 = vrot.lane.b32.xlu2 %v1037_v16, %s2262_s9  ;;  %v1038_v29 = vmul.f32 %v1037_v16, %v2672_v30 }
0x163f   :  { %v1268_v19 = vpop.permute.xlu1 %1267 }
0x1640   :  { %v1270_v54 = vmul.f32 %v1268_v19, %v2666_v24 }
0x1642   :  { %v1352_v22 = vpack.c.bf16 %v1270_v54, %v1270_v54 }
0x1644   :  { %1354 = vrot.lane.b32.xlu1 %v1352_v22, %s2260_s21 }
0x165b   :  { %v1041_v25 = vpop.permute.xlu2 %1040 }
0x165c   :  { %v1043_v28 = vmul.f32 %v1041_v25, %v1037_v16 }
0x165e   :  { %1045 = vrot.lane.b32.xlu0 %v1043_v28, %s2268_s11 }
0x16b6   :  { %v1355_v21 = vpop.permute.xlu1 %1354 }
0x16b7   :  { %1977 = vmatmul.msk.bf16.vlgmr.msra.gmra.mxu0 %vm199_vm7, %v1355_v21  ;;  %1979 = vmatmul.msk.bf16.vlgmr.msrb.gmra.mxu1 %vm199_vm7, %v1355_v21 }
0x16d0   :  { %v1046_v38 = vpop.permute.xlu0 %1045 }
0x16d1   :  { %v2709_v39 = vadd.f32 %v1046_v38, %v1038_v29 }
0x16d3   :  { %2181 = vtanh.f32 %v2709_v39 }
0x16d9   :  { %v2182_v24 = vpop.eup %2181 }
0x16da   :  { %1051 = vrot.lane.b32.xlu2 %v2182_v24, %s2269_s5 }
0x1734   :  { %v1052_v42 = vpop.permute.xlu2 %1051  ;;  %v1368_v2 = vpop.f32.mrf.mxu0 }
0x1735   :  { %v2713_v9 = vmul.f32 %v1052_v42, %v1037_v16  ;;  %v1373_v32 = vrot.slane %v1368_v2, 6  ;;  %v2715_v13 = vpop.f32.mrf.mxu1  ;;  %v1137_v16 = vadd.f32 %v2736_v14, %v2587_v43 }
0x1737   :  { %v1375_v34 = vadd.f32 %v1373_v32, %v2652_v20  ;;  %1152 = vperm.xlu2 %2040, %v2713_v9   ;;  %1141 = vperm.xlu0 %2038, %v2713_v9  }
0x1738   :  { %1146 = vperm.xlu1 %2039, %v2713_v9  }
0x1739   :  { %v1978_v30 = vmul.f32 -1.442695, %v1375_v34 }
0x173b   :  { %2183 = vpow2.f32 %v1978_v30 }
0x173c   :  { %v1370_v31 = vpop.f32.mrf.mxu0 }
0x173d   :  { %v1428_v36 = vpop.f32.mrf.mxu1 }
0x173f   :  { %2042 = vset.pattern.permute.xlu2 %v2265_v60  ;;  %2043 = vset.pattern.permute.xlu0 %v2266_v58 }
0x1740   :  { %2041 = vset.pattern.permute.xlu1 %v2267_v5 }
0x1741   :  { %v2184_v37 = vpop.eup %2183  ;;  %1158 = vperm.xlu1 %2041, %v2713_v9  }
0x1742   :  { %v1379_v47 = vadd.f32 1.0, %v2184_v37 }
0x1744   :  { %2185 = vrcp.f32 %v1379_v47  ;;  %v1391_v53 = vand.u32 2147483648, %v1379_v47  ;;  %v1389_v51 = vand.u32 2147483647, %v1379_v47  ;;  %vm1385_vm14 = vweird.f32 %v1379_v47 }
0x1745   :  { %2187 = vtanh.f32 %v1375_v34 }
0x1746   :  { %v1392_v55 = vor.u32 1.1754944e-38, %v1391_v53  ;;  %vm1390_vm0 = vcmp.eq.f32.partialorder %v1389_v51, 8.507059e+37 }
0x1749   :  { %2044 = vset.pattern.permute.xlu1 %v2264_v59 }
0x174a   :  { %v2186_v48 = vpop.eup %2185 }
0x174b   :  { %v1381_v52 = vmul.f32 %v2186_v48, %v1379_v47  ;;  %vm1386_vm13 = vweird.f32 %v2186_v48  ;;  %v2188_v61 = vpop.eup %2187 }
0x174c   :  { %vm1387_vm15 = vmor %vm1385_vm14, %vm1386_vm13 }
0x174d   :  { %v1382_v49 = vsub.f32 1.0, %v1381_v52 }
0x174f   :  { %v1383_v50 = vmul.f32 %v2186_v48, %v1382_v49  ;;  %v1398_v49 = vrot.slane %v2690_v45, 6 }
0x1751   :  { %v1384_v26 = vadd.f32 %v2186_v48, %v1383_v50 }
0x1753   :  { %v1388_v56 = vsel %vm1387_vm15, %v2186_v48, %v1384_v26 }
0x1754   :  { %v1393_v3 = vsel %vm1390_vm0, %v1392_v55, %v1388_v56 }
0x1755   :  { %v1396_v62 = vsel %vm2352_vm3, %v2188_v61, %v1393_v3 }
0x1756   :  { %1402 = vrot.lane.b32.xlu0 %v1396_v62, %s2259_s1  ;;  %v1400_v53 = vmul.f32 %v1398_v49, %v1396_v62 }
0x1791   :  { %v1153_v6 = vpop.permute.xlu2 %1152 }
0x1792   :  { %v1155_v11 = vmul.f32 %v1153_v6, %v2525_v12 }
0x17a9   :  { %v1142_v27 = vpop.permute.xlu0 %1141 }
0x17aa   :  { %v1147_v63 = vpop.permute.xlu1 %1146  ;;  %v1144_v41 = vmul.f32 %v1142_v27, %v2519_v8 }
0x17ab   :  { %v1149_v1 = vmul.f32 %v1147_v63, %v2521_v10 }
0x17ad   :  { %v1150_v7 = vadd.f32 %v1149_v1, %v1144_v41 }
0x17af   :  { %v1156_v0 = vadd.f32 %v1155_v11, %v1150_v7 }
0x17b3   :  { %v1159_v35 = vpop.permute.xlu1 %1158 }
0x17b4   :  { %v1161_v17 = vmul.f32 %v1159_v35, %v2528_v46 }
0x17b6   :  { %v1162_v19 = vadd.f32 %v1161_v17, %v1156_v0 }
0x17b8   :  { %v1163_v54 = vadd.f32 %v1162_v19, %v1137_v16 }
0x17ba   :  { %v1970_v22 = vmul.f32 -1.442695, %v1163_v54 }
0x17bc   :  { %2189 = vpow2.f32 %v1970_v22  ;;  %v1281_v22 = vadd.f32 %v2736_v14, %v2646_v18 }
0x17c2   :  { %v2190_v25 = vpop.eup %2189 }
0x17c3   :  { %v1167_v28 = vadd.f32 1.0, %v2190_v25 }
0x17c5   :  { %2191 = vrcp.f32 %v1167_v28  ;;  %v1179_v24 = vand.u32 2147483648, %v1167_v28  ;;  %v1177_v2 = vand.u32 2147483647, %v1167_v28  ;;  %vm1173_vm2 = vweird.f32 %v1167_v28 }
0x17c6   :  { %2193 = vtanh.f32 %v1163_v54 }
0x17c7   :  { %v1180_v34 = vor.u32 1.1754944e-38, %v1179_v24  ;;  %vm1178_vm6 = vcmp.eq.f32.partialorder %v1177_v2, 8.507059e+37 }
0x17c8   :  { %v1403_v37 = vpop.permute.xlu0 %1402 }
0x17c9   :  { %v1405_v47 = vmul.f32 %v1403_v37, %v1396_v62 }
0x17cb   :  { %v2192_v21 = vpop.eup %2191 }
0x17cc   :  { %v1169_v29 = vmul.f32 %v2192_v21, %v1167_v28  ;;  %vm1174_vm1 = vweird.f32 %v2192_v21  ;;  %v2194_v30 = vpop.eup %2193 }
0x17cd   :  { %vm1175_vm4 = vmor %vm1173_vm2, %vm1174_vm1 }
0x17ce   :  { %v1170_v38 = vsub.f32 1.0, %v1169_v29 }
0x17d0   :  { %v1171_v42 = vmul.f32 %v2192_v21, %v1170_v38 }
0x17d2   :  { %v1172_v32 = vadd.f32 %v2192_v21, %v1171_v42 }
0x17d4   :  { %v1176_v43 = vsel %vm1175_vm4, %v2192_v21, %v1172_v32 }
0x17d5   :  { %v1181_v31 = vsel %vm1178_vm6, %v1180_v34, %v1176_v43 }
0x17d6   :  { %v1184_v36 = vsel %vm2484_vm5, %v2194_v30, %v1181_v31 }
0x17d7   :  { %1187 = vrot.lane.b32.xlu2 %v1184_v36, %s2262_s9  ;;  %v1185_v55 = vmul.f32 %v1184_v36, %v2709_v39 }
0x17df   :  { %1407 = vrot.lane.b32.xlu2 %v1405_v47, %s2260_s21 }
0x1831   :  { %v1188_v48 = vpop.permute.xlu2 %1187 }
0x1832   :  { %v1190_v52 = vmul.f32 %v1188_v48, %v1184_v36 }
0x1834   :  { %1192 = vrot.lane.b32.xlu1 %v1190_v52, %s2268_s11 }
0x1839   :  { %v1408_v50 = vpop.permute.xlu2 %1407 }
0x183a   :  { %v2746_v51 = vadd.f32 %v1408_v50, %v1400_v53 }
0x183c   :  { %2195 = vtanh.f32 %v2746_v51 }
0x1842   :  { %v2196_v26 = vpop.eup %2195 }
0x1843   :  { %1413 = vrot.lane.b32.xlu1 %v2196_v26, %s2259_s1 }
0x18a6   :  { %v1193_v56 = vpop.permute.xlu1 %1192 }
0x18a7   :  { %v2751_v61 = vadd.f32 %v1193_v56, %v1185_v55 }
0x18a9   :  { %2197 = vtanh.f32 %v2751_v61 }
0x18af   :  { %v2198_v3 = vpop.eup %2197 }
0x18b0   :  { %1198 = vrot.lane.b32.xlu0 %v2198_v3, %s2269_s5 }
0x18b5   :  { %v1414_v45 = vpop.permute.xlu1 %1413 }
0x18b6   :  { %v1416_v63 = vmul.f32 %v1414_v45, %v1396_v62 }
0x18b8   :  { %v1498_v39 = vpack.c.bf16 %v1416_v63, %v1416_v63 }
0x18ba   :  { %v1500_v1 = vrot.slane %v1498_v39, 1 }
0x1922   :  { %v1199_v27 = vpop.permute.xlu0 %1198 }
0x1923   :  { %v2755_v41 = vmul.f32 %v1199_v27, %v1184_v36 }
0x1925   :  { %1296 = vperm.xlu1 %2044, %v2755_v41   ;;  %1290 = vperm.xlu0 %2043, %v2755_v41  }
0x1926   :  { %1285 = vperm.xlu2 %2042, %v2755_v41  }
0x192d   :  { %1501 = vrot.lane.b32.xlu1 %v1500_v1, %s2260_s21 }
0x192e   :  { %2045 = vset.pattern.permute.xlu2 %v2267_v5 }
0x192f   :  { %1302 = vperm.xlu2 %2045, %v2755_v41  }
0x1937   :  { %2046 = vset.pattern.permute.xlu2 %v2265_v60 }
0x1980   :  { %v1286_v6 = vpop.permute.xlu2 %1285 }
0x1981   :  { %v1288_v11 = vmul.f32 %v1286_v6, %v2519_v8 }
0x1989   :  { %v1303_v0 = vpop.permute.xlu2 %1302 }
0x198a   :  { %v1305_v19 = vmul.f32 %v1303_v0, %v2528_v46 }
0x1997   :  { %v1297_v62 = vpop.permute.xlu1 %1296  ;;  %v1291_v7 = vpop.permute.xlu0 %1290 }
0x1998   :  { %v1293_v35 = vmul.f32 %v1291_v7, %v2521_v10  ;;  %v1299_v17 = vmul.f32 %v1297_v62, %v2525_v12 }
0x199a   :  { %v1294_v16 = vadd.f32 %v1293_v35, %v1288_v11 }
0x199c   :  { %v1300_v54 = vadd.f32 %v1299_v17, %v1294_v16 }
0x199e   :  { %v1306_v25 = vadd.f32 %v1305_v19, %v1300_v54 }
0x199f   :  { %v1502_v28 = vpop.permute.xlu1 %1501 }
0x19a0   :  { %v1307_v21 = vadd.f32 %v1306_v25, %v1281_v22  ;;  %1982 = vmatmul.msk.bf16.vlgmr.msrb.gmra.mxu2 %vm199_vm7, %v1502_v28  ;;  %1984 = vmatmul.msk.bf16.vlgmr.msrb.gmra.mxu3 %vm199_vm7, %v1502_v28 }
0x19a2   :  { %v1975_v29 = vmul.f32 -1.442695, %v1307_v21 }
0x19a4   :  { %2199 = vpow2.f32 %v1975_v29 }
0x19aa   :  { %v2200_v38 = vpop.eup %2199 }
0x19ab   :  { %v1311_v24 = vadd.f32 1.0, %v2200_v38 }
0x19ad   :  { %2201 = vrcp.f32 %v1311_v24  ;;  %v1323_v34 = vand.u32 2147483648, %v1311_v24  ;;  %v1321_v18 = vand.u32 2147483647, %v1311_v24  ;;  %vm1317_vm9 = vweird.f32 %v1311_v24 }
0x19ae   :  { %2203 = vtanh.f32 %v1307_v21 }
0x19af   :  { %v1324_v31 = vor.u32 1.1754944e-38, %v1323_v34  ;;  %vm1322_vm11 = vcmp.eq.f32.partialorder %v1321_v18, 8.507059e+37 }
0x19b3   :  { %v2202_v42 = vpop.eup %2201 }
0x19b4   :  { %v1313_v2 = vmul.f32 %v2202_v42, %v1311_v24  ;;  %vm1318_vm8 = vweird.f32 %v2202_v42  ;;  %v2204_v37 = vpop.eup %2203 }
0x19b5   :  { %vm1319_vm10 = vmor %vm1317_vm9, %vm1318_vm8 }
0x19b6   :  { %v1314_v32 = vsub.f32 1.0, %v1313_v2 }
0x19b8   :  { %v1315_v43 = vmul.f32 %v2202_v42, %v1314_v32 }
0x19ba   :  { %v1316_v30 = vadd.f32 %v2202_v42, %v1315_v43 }
0x19bc   :  { %v1320_v36 = vsel %vm1319_vm10, %v2202_v42, %v1316_v30 }
0x19bd   :  { %v1325_v47 = vsel %vm1322_vm11, %v1324_v31, %v1320_v36  ;;  %v1427_v36 = vadd.f32 %v2736_v14, %v2715_v13 }
0x19be   :  { %v1328_v48 = vsel %vm2484_vm5, %v2204_v37, %v1325_v47 }
0x19bf   :  { %1331 = vrot.lane.b32.xlu2 %v1328_v48, %s2262_s9  ;;  %v1329_v56 = vmul.f32 %v1328_v48, %v2751_v61 }
0x1a19   :  { %v1332_v52 = vpop.permute.xlu2 %1331 }
0x1a1a   :  { %v1334_v49 = vmul.f32 %v1332_v52, %v1328_v48 }
0x1a1c   :  { %1336 = vrot.lane.b32.xlu0 %v1334_v49, %s2268_s11 }
0x1a23   :  { %v1515_v53 = vpop.f32.mrf.mxu2  ;;  %v2776_v50 = vpop.f32.mrf.mxu3 }
0x1a24   :  { %v1520_v63 = vrot.slane %v1515_v53, 4 }
0x1a26   :  { %v1522_v39 = vadd.f32 %v1520_v63, %v2652_v20 }
0x1a28   :  { %v1983_v1 = vmul.f32 -1.442695, %v1522_v39 }
0x1a2b   :  { %v1517_v26 = vpop.f32.mrf.mxu2  ;;  %v1575_v55 = vpop.f32.mrf.mxu3 }
0x1a8e   :  { %v1337_v3 = vpop.permute.xlu0 %1336 }
0x1a8f   :  { %v2779_v45 = vadd.f32 %v1337_v3, %v1329_v56 }
0x1a91   :  { %2205 = vtanh.f32 %v2779_v45 }
0x1a92   :  { %2207 = vpow2.f32 %v1983_v1 }
0x1a97   :  { %v2206_v27 = vpop.eup %2205 }
0x1a98   :  { %1342 = vrot.lane.b32.xlu1 %v2206_v27, %s2269_s5  ;;  %v2208_v6 = vpop.eup %2207 }
0x1a99   :  { %v1526_v62 = vadd.f32 1.0, %v2208_v6 }
0x1a9b   :  { %2209 = vrcp.f32 %v1526_v62  ;;  %v1538_v19 = vand.u32 2147483648, %v1526_v62  ;;  %vm1532_vm13 = vweird.f32 %v1526_v62  ;;  %v1536_v54 = vand.u32 2147483647, %v1526_v62 }
0x1a9c   :  { %2211 = vtanh.f32 %v1522_v39 }
0x1a9d   :  { %v1539_v25 = vor.u32 1.1754944e-38, %v1538_v19  ;;  %vm1537_vm15 = vcmp.eq.f32.partialorder %v1536_v54, 8.507059e+37 }
0x1aa1   :  { %v2210_v7 = vpop.eup %2209 }
0x1aa2   :  { %v1528_v11 = vmul.f32 %v2210_v7, %v1526_v62  ;;  %vm1533_vm12 = vweird.f32 %v2210_v7  ;;  %v2212_v21 = vpop.eup %2211 }
0x1aa3   :  { %vm1534_vm14 = vmor %vm1532_vm13, %vm1533_vm12 }
0x1aa4   :  { %v1529_v35 = vsub.f32 1.0, %v1528_v11 }
0x1aa6   :  { %v1530_v61 = vmul.f32 %v2210_v7, %v1529_v35  ;;  %v1545_v35 = vrot.slane %v2746_v51, 6 }
0x1aa8   :  { %v1531_v17 = vadd.f32 %v2210_v7, %v1530_v61 }
0x1aaa   :  { %v1535_v22 = vsel %vm1534_vm14, %v2210_v7, %v1531_v17 }
0x1aab   :  { %v1540_v28 = vsel %vm1537_vm15, %v1539_v25, %v1535_v22 }
0x1aac   :  { %v1543_v29 = vsel %vm2352_vm3, %v2212_v21, %v1540_v28 }
0x1aad   :  { %v1547_v61 = vmul.f32 %v1545_v35, %v1543_v29 }
0x1b0a   :  { %v1343_v0 = vpop.permute.xlu1 %1342 }
0x1b0b   :  { %v2784_v16 = vmul.f32 %v1343_v0, %v1328_v48 }
0x1b0d   :  { %1442 = vperm.xlu1 %2044, %v2784_v16   ;;  %1436 = vperm.xlu0 %2043, %v2784_v16  }
0x1b0e   :  { %1431 = vperm.xlu2 %2046, %v2784_v16  }
0x1b15   :  { %1549 = vrot.lane.b32.xlu0 %v1543_v29, %s2259_s1  ;;  %2048 = vset.pattern.permute.xlu1 %v2265_v60 }
0x1b16   :  { %2047 = vset.pattern.permute.xlu2 %v2267_v5  ;;  %2050 = vset.pattern.permute.xlu0 %v2264_v59 }
0x1b17   :  { %1448 = vperm.xlu2 %2047, %v2784_v16  }
0x1b1f   :  { %2049 = vset.pattern.permute.xlu2 %v2266_v58 }
0x1b68   :  { %v1432_v38 = vpop.permute.xlu2 %1431 }
0x1b69   :  { %v1434_v2 = vmul.f32 %v1432_v38, %v2519_v8 }
0x1b71   :  { %v1449_v34 = vpop.permute.xlu2 %1448 }
0x1b72   :  { %v1451_v30 = vmul.f32 %v1449_v34, %v2528_v46 }
0x1b7f   :  { %v1443_v24 = vpop.permute.xlu1 %1442  ;;  %v1437_v42 = vpop.permute.xlu0 %1436 }
0x1b80   :  { %v1439_v32 = vmul.f32 %v1437_v42, %v2521_v10  ;;  %v1445_v43 = vmul.f32 %v1443_v24, %v2525_v12 }
0x1b82   :  { %v1440_v18 = vadd.f32 %v1439_v32, %v1434_v2 }
0x1b84   :  { %v1446_v31 = vadd.f32 %v1445_v43, %v1440_v18 }
0x1b86   :  { %v1452_v37 = vadd.f32 %v1451_v30, %v1446_v31 }
0x1b87   :  { %v1550_v47 = vpop.permute.xlu0 %1549 }
0x1b88   :  { %v1453_v48 = vadd.f32 %v1452_v37, %v1427_v36  ;;  %v1552_v52 = vmul.f32 %v1550_v47, %v1543_v29 }
0x1b8a   :  { %v1980_v49 = vmul.f32 -1.442695, %v1453_v48  ;;  %1554 = vrot.lane.b32.xlu1 %v1552_v52, %s2260_s21 }
0x1b8c   :  { %2213 = vpow2.f32 %v1980_v49 }
0x1b92   :  { %v2214_v53 = vpop.eup %2213 }
0x1b93   :  { %v1457_v26 = vadd.f32 1.0, %v2214_v53 }
0x1b95   :  { %2215 = vrcp.f32 %v1457_v26  ;;  %v1469_v27 = vand.u32 2147483648, %v1457_v26  ;;  %v1467_v39 = vand.u32 2147483647, %v1457_v26  ;;  %vm1463_vm1 = vweird.f32 %v1457_v26 }
0x1b96   :  { %2217 = vtanh.f32 %v1453_v48 }
0x1b97   :  { %v1470_v1 = vor.u32 1.1754944e-38, %v1469_v27  ;;  %vm1468_vm4 = vcmp.eq.f32.partialorder %v1467_v39, 8.507059e+37 }
0x1b9b   :  { %v2216_v55 = vpop.eup %2215 }
0x1b9c   :  { %v1459_v56 = vmul.f32 %v2216_v55, %v1457_v26  ;;  %vm1464_vm0 = vweird.f32 %v2216_v55  ;;  %v2218_v62 = vpop.eup %2217 }
0x1b9d   :  { %vm1465_vm2 = vmor %vm1463_vm1, %vm1464_vm0 }
0x1b9e   :  { %v1460_v3 = vsub.f32 1.0, %v1459_v56 }
0x1ba0   :  { %v1461_v63 = vmul.f32 %v2216_v55, %v1460_v3 }
0x1ba2   :  { %v1462_v13 = vadd.f32 %v2216_v55, %v1461_v63  ;;  %v1574_v63 = vadd.f32 %v2736_v14, %v2776_v50 }
0x1ba4   :  { %v1466_v6 = vsel %vm1465_vm2, %v2216_v55, %v1462_v13 }
0x1ba5   :  { %v1471_v7 = vsel %vm1468_vm4, %v1470_v1, %v1466_v6 }
0x1ba6   :  { %v1474_v11 = vsel %vm2484_vm5, %v2218_v62, %v1471_v7 }
0x1ba7   :  { %1477 = vrot.lane.b32.xlu2 %v1474_v11, %s2262_s9  ;;  %v1475_v25 = vmul.f32 %v1474_v11, %v2779_v45 }
0x1bfc   :  { %v1555_v0 = vpop.permute.xlu1 %1554 }
0x1bfd   :  { %v2808_v17 = vadd.f32 %v1555_v0, %v1547_v61 }
0x1bff   :  { %2219 = vtanh.f32 %v2808_v17  ;;  %v1692_v23 = vrot.slane %v2808_v17, 6 }
0x1c01   :  { %v1478_v19 = vpop.permute.xlu2 %1477 }
0x1c02   :  { %v1480_v54 = vmul.f32 %v1478_v19, %v1474_v11 }
0x1c04   :  { %1482 = vrot.lane.b32.xlu0 %v1480_v54, %s2268_s11 }
0x1c05   :  { %v2220_v22 = vpop.eup %2219 }
0x1c06   :  { %1560 = vrot.lane.b32.xlu1 %v2220_v22, %s2259_s1 }
0x1c76   :  { %v1483_v28 = vpop.permute.xlu0 %1482 }
0x1c77   :  { %v2814_v21 = vadd.f32 %v1483_v28, %v1475_v25 }
0x1c78   :  { %v1561_v38 = vpop.permute.xlu1 %1560 }
0x1c79   :  { %2221 = vtanh.f32 %v2814_v21  ;;  %v1563_v51 = vmul.f32 %v1561_v38, %v1543_v29 }
0x1c7b   :  { %v1645_v24 = vpack.c.bf16 %v1563_v51, %v1563_v51 }
0x1c7d   :  { %v1647_v42 = vrot.slane %v1645_v24, 2 }
0x1c7f   :  { %v2222_v2 = vpop.eup %2221  ;;  %1648 = vrot.lane.b32.xlu2 %v1647_v42, %s2260_s21 }
0x1c80   :  { %1488 = vrot.lane.b32.xlu0 %v2222_v2, %s2269_s5 }
0x1cd9   :  { %v1649_v32 = vpop.permute.xlu2 %1648 }
0x1cda   :  { %1987 = vmatmul.msk.bf16.vlgmr.msrb.gmra.mxu0 %vm199_vm7, %v1649_v32  ;;  %1989 = vmatmul.msk.bf16.vlgmr.msra.gmra.mxu1 %vm199_vm7, %v1649_v32 }
0x1cf2   :  { %v1489_v45 = vpop.permute.xlu0 %1488 }
0x1cf3   :  { %v2821_v34 = vmul.f32 %v1489_v45, %v1474_v11 }
0x1cf5   :  { %1589 = vperm.xlu0 %2050, %v2821_v34   ;;  %1583 = vperm.xlu2 %2049, %v2821_v34  }
0x1cf6   :  { %1578 = vperm.xlu1 %2048, %v2821_v34  }
0x1cfd   :  { %2053 = vset.pattern.permute.xlu0 %v2266_v58  ;;  %2052 = vset.pattern.permute.xlu2 %v2265_v60 }
0x1cfe   :  { %2051 = vset.pattern.permute.xlu1 %v2267_v5 }
0x1cff   :  { %1595 = vperm.xlu1 %2051, %v2821_v34  }
0x1d07   :  { %2054 = vset.pattern.permute.xlu1 %v2264_v59 }
0x1d4f   :  { %v1584_v47 = vpop.permute.xlu2 %1583 }
0x1d50   :  { %v1586_v52 = vmul.f32 %v1584_v47, %v2521_v10 }
0x1d57   :  { %v1662_v29 = vpop.f32.mrf.mxu0  ;;  %v2831_v43 = vpop.f32.mrf.mxu1 }
0x1d58   :  { %v1667_v31 = vrot.slane %v1662_v29, 2 }
0x1d5a   :  { %v1669_v36 = vadd.f32 %v1667_v31, %v2652_v20 }
0x1d5c   :  { %v1988_v49 = vmul.f32 -1.442695, %v1669_v36 }
0x1d5e   :  { %2223 = vpow2.f32 %v1988_v49 }
0x1d5f   :  { %v1664_v18 = vpop.f32.mrf.mxu0  ;;  %v1722_v30 = vpop.f32.mrf.mxu1 }
0x1d64   :  { %v2224_v39 = vpop.eup %2223 }
0x1d65   :  { %v1673_v6 = vadd.f32 1.0, %v2224_v39 }
0x1d67   :  { %v1590_v53 = vpop.permute.xlu0 %1589  ;;  %v1685_v45 = vand.u32 2147483648, %v1673_v6  ;;  %vm1679_vm12 = vweird.f32 %v1673_v6  ;;  %v1683_v18 = vand.u32 2147483647, %v1673_v6 }
0x1d68   :  { %v1579_v37 = vpop.permute.xlu1 %1578  ;;  %v1592_v55 = vmul.f32 %v1590_v53, %v2525_v12 }
0x1d69   :  { %v1581_v48 = vmul.f32 %v1579_v37, %v2519_v8  ;;  %v1686_v31 = vor.u32 1.1754944e-38, %v1685_v45  ;;  %vm1684_vm14 = vcmp.eq.f32.partialorder %v1683_v18, 8.507059e+37 }
0x1d6b   :  { %v1587_v26 = vadd.f32 %v1586_v52, %v1581_v48 }
0x1d6d   :  { %v1593_v3 = vadd.f32 %v1592_v55, %v1587_v26 }
0x1d71   :  { %v1596_v56 = vpop.permute.xlu1 %1595 }
0x1d72   :  { %v1598_v27 = vmul.f32 %v1596_v56, %v2528_v46 }
0x1d74   :  { %v1599_v20 = vadd.f32 %v1598_v27, %v1593_v3 }
0x1d76   :  { %v1600_v13 = vadd.f32 %v1599_v20, %v1574_v63 }
0x1d78   :  { %v1985_v1 = vmul.f32 -1.442695, %v1600_v13 }
0x1d7a   :  { %2225 = vpow2.f32 %v1985_v1 }
0x1d7b   :  { %2227 = vrcp.f32 %v1673_v6 }
0x1d80   :  { %v2226_v62 = vpop.eup %2225 }
0x1d81   :  { %v1604_v7 = vadd.f32 1.0, %v2226_v62  ;;  %v2228_v11 = vpop.eup %2227 }
0x1d82   :  { %v1675_v35 = vmul.f32 %v2228_v11, %v1673_v6  ;;  %vm1680_vm11 = vweird.f32 %v2228_v11 }
0x1d83   :  { %2229 = vrcp.f32 %v1604_v7  ;;  %v1616_v22 = vand.u32 2147483648, %v1604_v7  ;;  %v1614_v50 = vand.u32 2147483647, %v1604_v7  ;;  %vm1610_vm8 = vweird.f32 %v1604_v7  ;;  %vm1681_vm13 = vmor %vm1679_vm12, %vm1680_vm11 }
0x1d84   :  { %v1676_v19 = vsub.f32 1.0, %v1675_v35  ;;  %2231 = vtanh.f32 %v1600_v13 }
0x1d85   :  { %v1617_v51 = vor.u32 1.1754944e-38, %v1616_v22  ;;  %vm1615_vm10 = vcmp.eq.f32.partialorder %v1614_v50, 8.507059e+37  ;;  %2233 = vtanh.f32 %v1669_v36 }
0x1d86   :  { %v1677_v28 = vmul.f32 %v2228_v11, %v1676_v19 }
0x1d88   :  { %v1678_v42 = vadd.f32 %v2228_v11, %v1677_v28 }
0x1d89   :  { %v2230_v61 = vpop.eup %2229 }
0x1d8a   :  { %v1606_v0 = vmul.f32 %v2230_v61, %v1604_v7  ;;  %vm1611_vm6 = vweird.f32 %v2230_v61  ;;  %v2232_v2 = vpop.eup %2231  ;;  %v1682_v30 = vsel %vm1681_vm13, %v2228_v11, %v1678_v42 }
0x1d8b   :  { %vm1612_vm9 = vmor %vm1610_vm8, %vm1611_vm6  ;;  %v1687_v37 = vsel %vm1684_vm14, %v1686_v31, %v1682_v30  ;;  %v2234_v47 = vpop.eup %2233 }
0x1d8c   :  { %v1607_v54 = vsub.f32 1.0, %v1606_v0  ;;  %v1690_v48 = vsel %vm2352_vm3, %v2234_v47, %v1687_v37 }
0x1d8d   :  { %v1694_v63 = vmul.f32 %v1692_v23, %v1690_v48 }
0x1d8e   :  { %v1608_v25 = vmul.f32 %v2230_v61, %v1607_v54 }
0x1d90   :  { %v1609_v38 = vadd.f32 %v2230_v61, %v1608_v25 }
0x1d92   :  { %v1613_v24 = vsel %vm1612_vm9, %v2230_v61, %v1609_v38 }
0x1d93   :  { %v1618_v32 = vsel %vm1615_vm10, %v1617_v51, %v1613_v24 }
0x1d94   :  { %v1621_v29 = vsel %vm2484_vm5, %v2232_v2, %v1618_v32 }
0x1d95   :  { %1624 = vrot.lane.b32.xlu2 %v1621_v29, %s2262_s9  ;;  %v1622_v36 = vmul.f32 %v1621_v29, %v2814_v21 }
0x1d9d   :  { %1696 = vrot.lane.b32.xlu2 %v1690_v48, %s2259_s1 }
0x1def   :  { %v1625_v52 = vpop.permute.xlu2 %1624 }
0x1df0   :  { %v1627_v49 = vmul.f32 %v1625_v52, %v1621_v29 }
0x1df2   :  { %1629 = vrot.lane.b32.xlu1 %v1627_v49, %s2268_s11 }
0x1df7   :  { %v1697_v53 = vpop.permute.xlu2 %1696 }
0x1df8   :  { %v1699_v26 = vmul.f32 %v1697_v53, %v1690_v48 }
0x1dfa   :  { %1701 = vrot.lane.b32.xlu1 %v1699_v26, %s2260_s21 }
0x1e64   :  { %v1630_v55 = vpop.permute.xlu1 %1629 }
0x1e65   :  { %v2849_v56 = vadd.f32 %v1630_v55, %v1622_v36 }
0x1e67   :  { %2235 = vtanh.f32 %v2849_v56 }
0x1e6c   :  { %v1702_v27 = vpop.permute.xlu1 %1701 }
0x1e6d   :  { %v2236_v3 = vpop.eup %2235  ;;  %v1704_v20 = vadd.f32 %v1702_v27, %v1694_v63 }
0x1e6e   :  { %1635 = vrot.lane.b32.xlu0 %v2236_v3, %s2269_s5 }
0x1e6f   :  { %2237 = vtanh.f32 %v1704_v20 }
0x1e75   :  { %v2238_v21 = vpop.eup %2237 }
0x1ee0   :  { %v1636_v39 = vpop.permute.xlu0 %1635 }
0x1ee1   :  { %v2854_v13 = vmul.f32 %v1636_v39, %v1621_v29 }
0x1ee3   :  { %1736 = vperm.xlu1 %2054, %v2854_v13   ;;  %1730 = vperm.xlu0 %2053, %v2854_v13  }
0x1ee4   :  { %1725 = vperm.xlu2 %2052, %v2854_v13  }
0x1eeb   :  { %1707 = vrot.lane.b32.xlu1 %v2238_v21, %s2259_s1  ;;  %2056 = vset.pattern.permute.xlu0 %v2265_v60 }
0x1eec   :  { %2055 = vset.pattern.permute.xlu2 %v2267_v5  ;;  %2057 = vset.pattern.permute.xlu1 %v2266_v58  ;;  %v1721_v58 = vadd.f32 %v2736_v14, %v2831_v43 }
0x1eed   :  { %1742 = vperm.xlu2 %2055, %v2854_v13  }
0x1ef5   :  { %2058 = vset.pattern.permute.xlu2 %v2264_v59 }
0x1f3e   :  { %v1726_v17 = vpop.permute.xlu2 %1725 }
0x1f3f   :  { %v1728_v62 = vmul.f32 %v1726_v17, %v2519_v8 }
0x1f47   :  { %v1743_v11 = vpop.permute.xlu2 %1742 }
0x1f48   :  { %v1745_v60 = vmul.f32 %v1743_v11, %v2528_v46 }
0x1f55   :  { %v1737_v1 = vpop.permute.xlu1 %1736  ;;  %v1731_v6 = vpop.permute.xlu0 %1730 }
0x1f56   :  { %v1733_v7 = vmul.f32 %v1731_v6, %v2521_v10  ;;  %v1739_v35 = vmul.f32 %v1737_v1, %v2525_v12 }
0x1f58   :  { %v1734_v61 = vadd.f32 %v1733_v7, %v1728_v62 }
0x1f5a   :  { %v1740_v0 = vadd.f32 %v1739_v35, %v1734_v61 }
0x1f5c   :  { %v1746_v19 = vadd.f32 %v1745_v60, %v1740_v0 }
0x1f5d   :  { %v1708_v54 = vpop.permute.xlu1 %1707 }
0x1f5e   :  { %v1747_v59 = vadd.f32 %v1746_v19, %v1721_v58  ;;  %v1710_v22 = vmul.f32 %v1708_v54, %v1690_v48 }
0x1f60   :  { %v1990_v25 = vmul.f32 -1.442695, %v1747_v59  ;;  %v1792_v50 = vpack.c.bf16 %v1710_v22, %v1710_v22 }
0x1f62   :  { %2239 = vpow2.f32 %v1990_v25  ;;  %v1794_v28 = vrot.slane %v1792_v50, 3 }
0x1f64   :  { %1795 = vrot.lane.b32.xlu0 %v1794_v28, %s2260_s21 }
0x1f68   :  { %v2240_v38 = vpop.eup %2239 }
0x1f69   :  { %v1751_v51 = vadd.f32 1.0, %v2240_v38 }
0x1f6b   :  { %2241 = vrcp.f32 %v1751_v51  ;;  %v1763_v32 = vand.u32 2147483648, %v1751_v51  ;;  %v1761_v43 = vand.u32 2147483647, %v1751_v51  ;;  %vm1757_vm15 = vweird.f32 %v1751_v51 }
0x1f6c   :  { %2243 = vtanh.f32 %v1747_v59 }
0x1f6d   :  { %v1764_v18 = vor.u32 1.1754944e-38, %v1763_v32  ;;  %vm1762_vm1 = vcmp.eq.f32.partialorder %v1761_v43, 8.507059e+37 }
0x1f71   :  { %v2242_v24 = vpop.eup %2241 }
0x1f72   :  { %v1753_v42 = vmul.f32 %v2242_v24, %v1751_v51  ;;  %vm1758_vm3 = vweird.f32 %v2242_v24  ;;  %v2244_v31 = vpop.eup %2243 }
0x1f73   :  { %vm1759_vm0 = vmor %vm1757_vm15, %vm1758_vm3 }
0x1f74   :  { %v1754_v2 = vsub.f32 1.0, %v1753_v42 }
0x1f76   :  { %v1755_v45 = vmul.f32 %v2242_v24, %v1754_v2 }
0x1f78   :  { %v1756_v29 = vadd.f32 %v2242_v24, %v1755_v45 }
0x1f7a   :  { %v1760_v30 = vsel %vm1759_vm0, %v2242_v24, %v1756_v29 }
0x1f7b   :  { %v1765_v37 = vsel %vm1762_vm1, %v1764_v18, %v1760_v30 }
0x1f7c   :  { %v1768_v47 = vsel %vm2484_vm5, %v2244_v31, %v1765_v37 }
0x1f7d   :  { %1771 = vrot.lane.b32.xlu2 %v1768_v47, %s2262_s9  ;;  %v1769_v53 = vmul.f32 %v1768_v47, %v2849_v56 }
0x1fd6   :  { %v1796_v48 = vpop.permute.xlu0 %1795 }
0x1fd7   :  { %1992 = vmatmul.msk.bf16.vlgmr.msra.gmra.mxu2 %vm199_vm7, %v1796_v48  ;;  %v1772_v52 = vpop.permute.xlu2 %1771 }
0x1fd8   :  { %v1774_v49 = vmul.f32 %v1772_v52, %v1768_v47 }
0x1fda   :  { %1776 = vrot.lane.b32.xlu1 %v1774_v49, %s2268_s11 }
0x204c   :  { %v1777_v26 = vpop.permute.xlu1 %1776 }
0x204d   :  { %v2878_v36 = vadd.f32 %v1777_v26, %v1769_v53 }
0x204f   :  { %2245 = vtanh.f32 %v2878_v36 }
0x2055   :  { %v2246_v55 = vpop.eup %2245 }
0x2056   :  { %1782 = vrot.lane.b32.xlu2 %v2246_v55, %s2269_s5 }
0x205a   :  { %v1809_v3 = vpop.f32.mrf.mxu2 }
0x205b   :  { %v1810_v35 = vadd.f32 %v2736_v14, %v1809_v3 }
0x2062   :  { %v1811_v23 = vpop.f32.mrf.mxu2 }
0x20b0   :  { %v1783_v27 = vpop.permute.xlu2 %1782 }
0x20b1   :  { %v2882_v63 = vmul.f32 %v1783_v27, %v1768_v47 }
0x20b3   :  { %1825 = vperm.xlu2 %2058, %v2882_v63   ;;  %1819 = vperm.xlu1 %2057, %v2882_v63  }
0x20b4   :  { %1814 = vperm.xlu0 %2056, %v2882_v63  }
0x20bb   :  { %2059 = vset.pattern.permute.xlu1 %v2267_v5 }
0x20bc   :  { %1831 = vperm.xlu1 %2059, %v2882_v63   ;;  %2060 = vset.pattern.permute.xlu0 %v2267_v5 }
0x210d   :  { %v1826_v17 = vpop.permute.xlu2 %1825 }
0x210e   :  { %v1828_v6 = vmul.f32 %v1826_v17, %v2525_v12 }
0x2125   :  { %v1820_v56 = vpop.permute.xlu1 %1819 }
0x2126   :  { %v1815_v20 = vpop.permute.xlu0 %1814  ;;  %v1822_v39 = vmul.f32 %v1820_v56, %v2521_v10 }
0x2127   :  { %v1817_v21 = vmul.f32 %v1815_v20, %v2519_v8 }
0x2129   :  { %v1823_v1 = vadd.f32 %v1822_v39, %v1817_v21 }
0x212b   :  { %v1829_v7 = vadd.f32 %v1828_v6, %v1823_v1 }
0x212e   :  { %v1832_v62 = vpop.permute.xlu1 %1831 }
0x212f   :  { %v1834_v11 = vmul.f32 %v1832_v62, %v2528_v46 }
0x2131   :  { %v1835_v61 = vadd.f32 %v1834_v11, %v1829_v7 }
0x2133   :  { %v1836_v60 = vadd.f32 %v1835_v61, %v1810_v35 }
0x2135   :  { %v1993_v0 = vmul.f32 -1.442695, %v1836_v60 }
0x2137   :  { %2247 = vpow2.f32 %v1993_v0 }
0x213d   :  { %v2248_v5 = vpop.eup %2247 }
0x213e   :  { %v1840_v58 = vadd.f32 1.0, %v2248_v5 }
0x2140   :  { %2249 = vrcp.f32 %v1840_v58  ;;  %v1852_v54 = vand.u32 2147483648, %v1840_v58  ;;  %v1850_v12 = vand.u32 2147483647, %v1840_v58  ;;  %vm1846_vm2 = vweird.f32 %v1840_v58 }
0x2141   :  { %2251 = vtanh.f32 %v1836_v60 }
0x2142   :  { %v1853_v46 = vor.u32 1.1754944e-38, %v1852_v54  ;;  %vm1851_vm6 = vcmp.eq.f32.partialorder %v1850_v12, 8.507059e+37 }
0x2146   :  { %v2250_v10 = vpop.eup %2249 }
0x2147   :  { %v1842_v19 = vmul.f32 %v2250_v10, %v1840_v58  ;;  %vm1847_vm7 = vweird.f32 %v2250_v10  ;;  %v2252_v25 = vpop.eup %2251 }
0x2148   :  { %vm1848_vm4 = vmor %vm1846_vm2, %vm1847_vm7 }
0x2149   :  { %v1843_v8 = vsub.f32 1.0, %v1842_v19 }
0x214b   :  { %v1844_v59 = vmul.f32 %v2250_v10, %v1843_v8 }
0x214d   :  { %v1845_v22 = vadd.f32 %v2250_v10, %v1844_v59 }
0x214f   :  { %v1849_v14 = vsel %vm1848_vm4, %v2250_v10, %v1845_v22 }
0x2150   :  { %v1854_v50 = vsel %vm1851_vm6, %v1853_v46, %v1849_v14 }
0x2151   :  { %v1857_v28 = vsel %vm2484_vm5, %v2252_v25, %v1854_v50  ;;  %vm324_vm5 = vcmask 25600  }
0x2152   :  { %1860 = vrot.lane.b32.xlu2 %v1857_v28, %s2262_s9 }
0x215a   :  { %321 = vrot.lane.b32.xlu2 %v2501_v4, %s2270_s6 }
0x2162   :  { %763 = vrot.lane.b32.xlu2 %v2636_v15, %s2270_s6 }
0x216a   :  { %1203 = vrot.lane.b32.xlu2 %v2755_v41, %s2270_s6 }
0x2172   :  { %1640 = vrot.lane.b32.xlu2 %v2854_v13, %s2270_s6 }
0x21ac   :  { %v1861_v38 = vpop.permute.xlu2 %1860 }
0x21ad   :  { %v1863_v51 = vmul.f32 %v1861_v38, %v1857_v28 }
0x21af   :  { %1865 = vrot.lane.b32.xlu0 %v1863_v51, %s2268_s11 }
0x21b4   :  { %v322_v44 = vpop.permute.xlu2 %321 }
0x21b5   :  { %325 = vst.msk [vmem:[%s2979_s7] sm:$0x3] %vm324_vm5, %v322_v44 }
0x21b7   :  { %472 = vrot.lane.b32.xlu0 %v2550_v33, %s2270_s6  ;;  %v1858_v33 = vmul.f32 %v1857_v28, %v2878_v36 }
0x21bc   :  { %v764_v4 = vpop.permute.xlu2 %763 }
0x21bd   :  { %1956 = vst.msk [vmem:[%s2979_s7 + $0x6] sm:$0x3] %vm324_vm5, %v764_v4 }
0x21bf   :  { %909 = vrot.lane.b32.xlu0 %v2676_v40, %s2270_s6 }
0x21c4   :  { %v1204_v15 = vpop.permute.xlu2 %1203 }
0x21c5   :  { %1971 = vst.msk [vmem:[%s2979_s7 + $0xc] sm:$0x3] %vm324_vm5, %v1204_v15 }
0x21c7   :  { %1347 = vrot.lane.b32.xlu0 %v2784_v16, %s2270_s6 }
0x21cc   :  { %v1641_v41 = vpop.permute.xlu2 %1640 }
0x21cd   :  { %1986 = vst.msk [vmem:[%s2979_s7 + $0x12] sm:$0x3] %vm324_vm5, %v1641_v41 }
0x21cf   :  { %1787 = vrot.lane.b32.xlu0 %v2882_v63, %s2270_s6 }
0x2221   :  { %v1866_v40 = vpop.permute.xlu0 %1865 }
0x2222   :  { %v1868_v13 = vadd.f32 %v1866_v40, %v1858_v33 }
0x2224   :  { %2253 = vtanh.f32 %v1868_v13 }
0x2229   :  { %v473_v24 = vpop.permute.xlu0 %472 }
0x222a   :  { %v2254_v42 = vpop.eup %2253  ;;  %1946 = vst.msk [vmem:[%s2979_s7 + $0x2] sm:$0x3] %vm324_vm5, %v473_v24 }
0x222b   :  { %1871 = vrot.lane.b32.xlu1 %v2254_v42, %s2269_s5 }
0x2231   :  { %v910_v16 = vpop.permute.xlu0 %909 }
0x2232   :  { %1961 = vst.msk [vmem:[%s2979_s7 + $0x8] sm:$0x3] %vm324_vm5, %v910_v16 }
0x2233   :  { %619 = vrot.lane.b32.xlu1 %v2595_v57, %s2270_s6 }
0x2239   :  { %v1348_v2 = vpop.permute.xlu0 %1347 }
0x223a   :  { %1976 = vst.msk [vmem:[%s2979_s7 + $0xe] sm:$0x3] %vm324_vm5, %v1348_v2 }
0x223b   :  { %1056 = vrot.lane.b32.xlu1 %v2713_v9, %s2270_s6 }
0x2241   :  { %v1788_v32 = vpop.permute.xlu0 %1787 }
0x2242   :  { %1991 = vst.msk [vmem:[%s2979_s7 + $0x14] sm:$0x3] %vm324_vm5, %v1788_v32 }
0x2243   :  { %1493 = vrot.lane.b32.xlu1 %v2821_v34, %s2270_s6 }
0x229d   :  { %v1872_v45 = vpop.permute.xlu1 %1871 }
0x229e   :  { %v1874_v57 = vmul.f32 %v1872_v45, %v1857_v28 }
0x22a0   :  { %1876 = vrot.lane.b32.xlu1 %v1874_v57, %s2270_s6 }
0x22a5   :  { %v620_v43 = vpop.permute.xlu1 %619 }
0x22a6   :  { %1951 = vst.msk [vmem:[%s2979_s7 + $0x4] sm:$0x3] %vm324_vm5, %v620_v43 }
0x22ad   :  { %v1057_v9 = vpop.permute.xlu1 %1056 }
0x22ae   :  { %1966 = vst.msk [vmem:[%s2979_s7 + $0xa] sm:$0x3] %vm324_vm5, %v1057_v9 }
0x22b5   :  { %v1494_v29 = vpop.permute.xlu1 %1493 }
0x22b6   :  { %1981 = vst.msk [vmem:[%s2979_s7 + $0x10] sm:$0x3] %vm324_vm5, %v1494_v29 }
0x2312   :  { %v1877_v34 = vpop.permute.xlu1 %1876 }
0x2313   :  { %1994 = vst.msk [vmem:[%s2979_s7 + $0x16] sm:$0x3] %vm324_vm5, %v1877_v34 }

</bundles_post_ra>
